<compile_context>
chip_gen: v7x
topology: tpu7x:2x2x1
jax: 0.10.0
libtpu: 0.0.40
codegen_flags: <defaults>
</compile_context>

<pallas_src>
import jax
import jax.numpy as jnp
from jax.experimental import pallas as pl
from jax.experimental.pallas import tpu as pltpu

IMAGE_SIZE = (28, 28)
IN_FEATURES = IMAGE_SIZE[0] * IMAGE_SIZE[1]   # 784 (multiple of 8 sublanes)
HIDDEN_SIZE = 500
NUM_CLASSES = 10

HIDDEN_PAD = 512     # 500 -> 512: lane-dense (multiple of 128) MXU tiles
OUT_PAD = 128        # 10  -> 128: unmasked vector stores on the output slab
MXU_TILE_ROWS = 256  # MXU row dim on v6e/v7x; multiple of v5e's 128 and of 16 (bf16 sublane pack)


def mlp_kernel(x_ref, w1_ref, b1_ref, w2_ref, b2_ref, w3_ref, b3_ref,
               w4_ref, b4_ref, o_ref):
    # x_ref: (TB, 784) f32; wN_ref: (in_pad, out_pad) bf16; bN_ref: (1, out_pad) f32
    # o_ref: (TB, OUT_PAD) bf16
    x = x_ref[...].astype(jnp.bfloat16)            # in-kernel cast: VPU work under MXU slack
    h = jnp.dot(x, w1_ref[...], preferred_element_type=jnp.float32)
    h = (h + b1_ref[...]).astype(jnp.bfloat16)
    h = jnp.dot(h, w2_ref[...], preferred_element_type=jnp.float32)
    h = (h + b2_ref[...]).astype(jnp.bfloat16)
    h = jnp.dot(h, w3_ref[...], preferred_element_type=jnp.float32)
    h = (h + b3_ref[...]).astype(jnp.bfloat16)
    o_ref[...] = (jnp.dot(h, w4_ref[...], preferred_element_type=jnp.float32)
                  + b4_ref[...]).astype(o_ref.dtype)


def init_params(key):
    """PyTorch-layout params: W is (out, in), b is (out,), f32 (Linear default init)."""
    dims = [(HIDDEN_SIZE, IN_FEATURES),
            (HIDDEN_SIZE, HIDDEN_SIZE),
            (HIDDEN_SIZE, HIDDEN_SIZE),
            (NUM_CLASSES, HIDDEN_SIZE)]
    params = []
    for i, (out_f, in_f) in enumerate(dims):
        kw, kb = jax.random.split(jax.random.fold_in(key, i))
        bound = float(in_f) ** -0.5
        w = jax.random.uniform(kw, (out_f, in_f), jnp.float32, -bound, bound)
        b = jax.random.uniform(kb, (out_f,), jnp.float32, -bound, bound)
        params.append((w, b))
    return params


def prepare_params(params):
    """One-time prep (outside the per-forward path): transpose to (in, out),
    zero-pad to lane-friendly sizes, cast weights to bf16, biases stay f32."""
    (w1, b1), (w2, b2), (w3, b3), (w4, b4) = params

    def prep_w(w, in_pad, out_pad):
        wt = w.T.astype(jnp.float32)                                 # (in, out)
        wt = jnp.pad(wt, ((0, in_pad - wt.shape[0]),
                          (0, out_pad - wt.shape[1])))
        return wt.astype(jnp.bfloat16)

    def prep_b(b, out_pad):
        b = jnp.pad(b.astype(jnp.float32), (0, out_pad - b.shape[0]))
        return b.reshape(1, out_pad)

    return (
        prep_w(w1, IN_FEATURES, HIDDEN_PAD), prep_b(b1, HIDDEN_PAD),
        prep_w(w2, HIDDEN_PAD, HIDDEN_PAD),  prep_b(b2, HIDDEN_PAD),
        prep_w(w3, HIDDEN_PAD, HIDDEN_PAD),  prep_b(b3, HIDDEN_PAD),
        prep_w(w4, HIDDEN_PAD, OUT_PAD),     prep_b(b4, OUT_PAD),
    )


def _round_up(a, m):
    return ((a + m - 1) // m) * m


def _select_batch_tile(batch, batch_tile):
    """MXU-row-dense batch tile; on large batches keep >=2 grid steps (v7x megacore)."""
    b_pad = _round_up(max(batch, 1), MXU_TILE_ROWS)
    tb = min(_round_up(batch_tile, MXU_TILE_ROWS), b_pad)
    if b_pad // tb < 2 and b_pad >= 2 * MXU_TILE_ROWS:
        tb = _round_up(b_pad // 2, MXU_TILE_ROWS)
    return tb


def _vmem_bytes_estimate(tb, x_itemsize):
    x_tile = tb * IN_FEATURES * x_itemsize * 2                  # input, double-buffered
    out_tile = tb * OUT_PAD * 2 * 2                             # bf16 output, double-buffered
    weights = (IN_FEATURES * HIDDEN_PAD + 2 * HIDDEN_PAD * HIDDEN_PAD
               + HIDDEN_PAD * OUT_PAD) * 2                      # bf16, single-buffered
    biases = (3 * HIDDEN_PAD + OUT_PAD) * 4
    temps = 3 * tb * HIDDEN_PAD * 4                             # live f32/bf16 activations
    return x_tile + out_tile + weights + biases + temps


def _resident_spec(arr):
    """Whole-array, constant-index block; single-buffered (index never changes)."""
    zeros = (0,) * arr.ndim
    return pl.BlockSpec(arr.shape, lambda i, _z=zeros: _z,
                        pipeline_mode=pl.Buffered(1))


def mlp_forward(x, prepared_params, *, batch_tile=1024):
    """x: (B, 1, 28, 28) or (B, 28, 28). Returns (B, NUM_CLASSES) float32 logits."""
    # Flatten exactly like torch.reshape(x, (-1, 784)); NO dtype pass over x here —
    # the kernel ingests it as-is and casts to bf16 on the VPU.
    x2d = jnp.reshape(x, (-1, IN_FEATURES))
    if x2d.dtype not in (jnp.float32, jnp.bfloat16):
        x2d = x2d.astype(jnp.float32)
    B = x2d.shape[0]

    tb = _select_batch_tile(B, batch_tile)
    B_pad = _round_up(B, tb)
    if B_pad != B:
        x2d = jnp.pad(x2d, ((0, B_pad - B), (0, 0)))    # inert zero rows, sliced off below

    grid = (B_pad // tb,)
    w1, b1, w2, b2, w3, b3, w4, b4 = prepared_params

    vmem_limit = int(min(max(2 * _vmem_bytes_estimate(tb, jnp.dtype(x2d.dtype).itemsize),
                             32 * 1024 * 1024),
                         48 * 1024 * 1024))

    out = pl.pallas_call(
        mlp_kernel,
        out_shape=jax.ShapeDtypeStruct((B_pad, OUT_PAD), jnp.bfloat16),
        grid_spec=pltpu.PrefetchScalarGridSpec(
            num_scalar_prefetch=0,
            grid=grid,
            in_specs=[
                # x keeps default double-buffering so its DMA hides under MXU time.
                pl.BlockSpec((tb, IN_FEATURES), lambda i: (i, 0)),
                _resident_spec(w1), _resident_spec(b1),
                _resident_spec(w2), _resident_spec(b2),
                _resident_spec(w3), _resident_spec(b3),
                _resident_spec(w4), _resident_spec(b4),
            ],
            out_specs=pl.BlockSpec((tb, OUT_PAD), lambda i: (i, 0)),
        ),
        compiler_params=pltpu.CompilerParams(
            dimension_semantics=("parallel",),   # batch tiles shard across TCs (v7x)
            vmem_limit_bytes=vmem_limit,
        ),
    )(x2d, w1, b1, w2, b2, w3, b3, w4, b4)

    # Tiny post-ops: drop padded rows / lanes, restore f32 logits for the caller.
    return out[:B, :NUM_CLASSES].astype(jnp.float32)


def mlp_reference_f32(x, params):
    x2d = jnp.reshape(x, (-1, IN_FEATURES)).astype(jnp.float32)
    h = x2d
    for w, b in params:
        h = h @ w.T.astype(jnp.float32) + b
    return h


def mlp_reference_bf16(x, prepared_params):
    """Mirrors the kernel math exactly (bf16 operands, f32 accumulation, bf16 store)."""
    x2d = jnp.reshape(x, (-1, IN_FEATURES)).astype(jnp.bfloat16)
    w1, b1, w2, b2, w3, b3, w4, b4 = prepared_params
    h = jnp.dot(x2d, w1, preferred_element_type=jnp.float32) + b1
    h = jnp.dot(h.astype(jnp.bfloat16), w2, preferred_element_type=jnp.float32) + b2
    h = jnp.dot(h.astype(jnp.bfloat16), w3, preferred_element_type=jnp.float32) + b3
    h = jnp.dot(h.astype(jnp.bfloat16), w4, preferred_element_type=jnp.float32) + b4
    return h.astype(jnp.bfloat16).astype(jnp.float32)[:, :NUM_CLASSES]


if __name__ == "__main__":
    key = jax.random.PRNGKey(0)
    k_x, k_p = jax.random.split(key)

    params = init_params(k_p)
    prepared = prepare_params(params)

    # Small demo batch (single grid step).
    B = 8
    x = jax.random.normal(k_x, (B, 1, IMAGE_SIZE[0], IMAGE_SIZE[1]), jnp.float32)
    out = jax.block_until_ready(mlp_forward(x, prepared))
    assert out.shape == (B, NUM_CLASSES) and out.dtype == jnp.float32

    ref_bf16 = mlp_reference_bf16(x, prepared)
    assert jnp.allclose(out, ref_bf16, atol=2e-2, rtol=2e-2), "mismatch vs bf16 reference"
    ref_f32 = mlp_reference_f32(x, params)
    assert jnp.allclose(out, ref_f32, atol=1e-1, rtol=1e-1), "mismatch vs f32 reference"

    # Slightly larger ragged batch: exercises batch padding + a >=2-step parallel
    # grid (both TensorCores on v7x) while staying small.
    B2 = 300
    x2 = jax.random.normal(jax.random.fold_in(k_x, 1),
                           (B2, IMAGE_SIZE[0], IMAGE_SIZE[1]), jnp.float32)
    out2 = jax.block_until_ready(mlp_forward(x2, prepared))
    assert out2.shape == (B2, NUM_CLASSES)
    ref2 = mlp_reference_bf16(x2, prepared)
    assert jnp.allclose(out2, ref2, atol=2e-2, rtol=2e-2), "mismatch vs bf16 reference (B=300)"

    print("KERNEL_OK")
</pallas_src>

<mosaic_0001>
module attributes {stable_mosaic.version = 11 : i64} {
  func.func @mlp_kernel(%arg0: i32, %arg1: memref<256x784xf32, #tpu.memory_space<vmem>>, %arg2: memref<784x512xbf16, #tpu.memory_space<vmem>>, %arg3: memref<1x512xf32, #tpu.memory_space<vmem>>, %arg4: memref<512x512xbf16, #tpu.memory_space<vmem>>, %arg5: memref<1x512xf32, #tpu.memory_space<vmem>>, %arg6: memref<512x512xbf16, #tpu.memory_space<vmem>>, %arg7: memref<1x512xf32, #tpu.memory_space<vmem>>, %arg8: memref<512x128xbf16, #tpu.memory_space<vmem>>, %arg9: memref<1x128xf32, #tpu.memory_space<vmem>>, %arg10: memref<256x128xbf16, #tpu.memory_space<vmem>>) attributes {dimension_semantics = [#tpu.dimension_semantics<parallel>], iteration_bounds = array<i64: 1>, scalar_prefetch = 0 : i64, scratch_operands = 0 : i64, tpu.core_type = #tpu.core_type<tc>, window_params = [{transform_indices = @transform_0, window_bounds = array<i64: 256, 784>}, {pipeline_mode = #tpu.pipeline_mode<synchronous>, transform_indices = @transform_1, window_bounds = array<i64: 784, 512>}, {pipeline_mode = #tpu.pipeline_mode<synchronous>, transform_indices = @transform_2, window_bounds = array<i64: 1, 512>}, {pipeline_mode = #tpu.pipeline_mode<synchronous>, transform_indices = @transform_3, window_bounds = array<i64: 512, 512>}, {pipeline_mode = #tpu.pipeline_mode<synchronous>, transform_indices = @transform_4, window_bounds = array<i64: 1, 512>}, {pipeline_mode = #tpu.pipeline_mode<synchronous>, transform_indices = @transform_5, window_bounds = array<i64: 512, 512>}, {pipeline_mode = #tpu.pipeline_mode<synchronous>, transform_indices = @transform_6, window_bounds = array<i64: 1, 512>}, {pipeline_mode = #tpu.pipeline_mode<synchronous>, transform_indices = @transform_7, window_bounds = array<i64: 512, 128>}, {pipeline_mode = #tpu.pipeline_mode<synchronous>, transform_indices = @transform_8, window_bounds = array<i64: 1, 128>}, {transform_indices = @transform_9, window_bounds = array<i64: 256, 128>}]} {
    %c0 = arith.constant 0 : index
    %c0_0 = arith.constant 0 : index
    %0 = vector.load %arg1[%c0, %c0_0] : memref<256x784xf32, #tpu.memory_space<vmem>>, vector<256x784xf32>
    %1 = arith.truncf %0 : vector<256x784xf32> to vector<256x784xbf16>
    %c0_1 = arith.constant 0 : index
    %c0_2 = arith.constant 0 : index
    %2 = vector.load %arg2[%c0_1, %c0_2] : memref<784x512xbf16, #tpu.memory_space<vmem>>, vector<784x512xbf16>
    %cst = arith.constant dense<0.000000e+00> : vector<256x512xf32>
    %3 = tpu.matmul %1, %2, %cst {dimension_numbers = #tpu.dot_dimension_numbers<[1], [0], [0], [1], [0, 0, 1, 1], [], []>} : vector<256x784xbf16>, vector<784x512xbf16>, vector<256x512xf32> -> vector<256x512xf32>
    %c0_3 = arith.constant 0 : index
    %c0_4 = arith.constant 0 : index
    %4 = vector.load %arg3[%c0_3, %c0_4] : memref<1x512xf32, #tpu.memory_space<vmem>>, vector<1x512xf32>
    %5 = vector.broadcast %4 : vector<1x512xf32> to vector<256x512xf32>
    %6 = arith.addf %3, %5 : vector<256x512xf32>
    %7 = arith.truncf %6 : vector<256x512xf32> to vector<256x512xbf16>
    %c0_5 = arith.constant 0 : index
    %c0_6 = arith.constant 0 : index
    %8 = vector.load %arg4[%c0_5, %c0_6] : memref<512x512xbf16, #tpu.memory_space<vmem>>, vector<512x512xbf16>
    %cst_7 = arith.constant dense<0.000000e+00> : vector<256x512xf32>
    %9 = tpu.matmul %7, %8, %cst_7 {dimension_numbers = #tpu.dot_dimension_numbers<[1], [0], [0], [1], [0, 0, 1, 1], [], []>} : vector<256x512xbf16>, vector<512x512xbf16>, vector<256x512xf32> -> vector<256x512xf32>
    %c0_8 = arith.constant 0 : index
    %c0_9 = arith.constant 0 : index
    %10 = vector.load %arg5[%c0_8, %c0_9] : memref<1x512xf32, #tpu.memory_space<vmem>>, vector<1x512xf32>
    %11 = vector.broadcast %10 : vector<1x512xf32> to vector<256x512xf32>
    %12 = arith.addf %9, %11 : vector<256x512xf32>
    %13 = arith.truncf %12 : vector<256x512xf32> to vector<256x512xbf16>
    %c0_10 = arith.constant 0 : index
    %c0_11 = arith.constant 0 : index
    %14 = vector.load %arg6[%c0_10, %c0_11] : memref<512x512xbf16, #tpu.memory_space<vmem>>, vector<512x512xbf16>
    %cst_12 = arith.constant dense<0.000000e+00> : vector<256x512xf32>
    %15 = tpu.matmul %13, %14, %cst_12 {dimension_numbers = #tpu.dot_dimension_numbers<[1], [0], [0], [1], [0, 0, 1, 1], [], []>} : vector<256x512xbf16>, vector<512x512xbf16>, vector<256x512xf32> -> vector<256x512xf32>
    %c0_13 = arith.constant 0 : index
    %c0_14 = arith.constant 0 : index
    %16 = vector.load %arg7[%c0_13, %c0_14] : memref<1x512xf32, #tpu.memory_space<vmem>>, vector<1x512xf32>
    %17 = vector.broadcast %16 : vector<1x512xf32> to vector<256x512xf32>
    %18 = arith.addf %15, %17 : vector<256x512xf32>
    %19 = arith.truncf %18 : vector<256x512xf32> to vector<256x512xbf16>
    %c0_15 = arith.constant 0 : index
    %c0_16 = arith.constant 0 : index
    %20 = vector.load %arg8[%c0_15, %c0_16] : memref<512x128xbf16, #tpu.memory_space<vmem>>, vector<512x128xbf16>
    %cst_17 = arith.constant dense<0.000000e+00> : vector<256x128xf32>
    %21 = tpu.matmul %19, %20, %cst_17 {dimension_numbers = #tpu.dot_dimension_numbers<[1], [0], [0], [1], [0, 0, 1, 1], [], []>} : vector<256x512xbf16>, vector<512x128xbf16>, vector<256x128xf32> -> vector<256x128xf32>
    %c0_18 = arith.constant 0 : index
    %c0_19 = arith.constant 0 : index
    %22 = vector.load %arg9[%c0_18, %c0_19] : memref<1x128xf32, #tpu.memory_space<vmem>>, vector<1x128xf32>
    %23 = vector.broadcast %22 : vector<1x128xf32> to vector<256x128xf32>
    %24 = arith.addf %21, %23 : vector<256x128xf32>
    %25 = arith.truncf %24 : vector<256x128xf32> to vector<256x128xbf16>
    %c0_20 = arith.constant 0 : index
    %c0_21 = arith.constant 0 : index
    %26 = vector.load %arg10[%c0_20, %c0_21] : memref<256x128xbf16, #tpu.memory_space<vmem>>, vector<256x128xbf16>
    tpu.vector_store %arg10[%c0_20, %c0_21], %25 {strides = array<i32>} : memref<256x128xbf16, #tpu.memory_space<vmem>>, vector<256x128xbf16>,
    return
  }
  func.func @transform_0(%arg0: i32) -> (i32, i32) {
    %c0_i32 = arith.constant 0 : i32
    %c0_i32_0 = arith.constant 0 : i32
    return %arg0, %c0_i32 : i32, i32
  }
  func.func @transform_1(%arg0: i32) -> (i32, i32) {
    %c0_i32 = arith.constant 0 : i32
    %c0_i32_0 = arith.constant 0 : i32
    %c0_i32_1 = arith.constant 0 : i32
    return %c0_i32, %c0_i32_0 : i32, i32
  }
  func.func @transform_2(%arg0: i32) -> (i32, i32) {
    %c0_i32 = arith.constant 0 : i32
    %c0_i32_0 = arith.constant 0 : i32
    %c0_i32_1 = arith.constant 0 : i32
    return %c0_i32, %c0_i32_0 : i32, i32
  }
  func.func @transform_3(%arg0: i32) -> (i32, i32) {
    %c0_i32 = arith.constant 0 : i32
    %c0_i32_0 = arith.constant 0 : i32
    %c0_i32_1 = arith.constant 0 : i32
    return %c0_i32, %c0_i32_0 : i32, i32
  }
  func.func @transform_4(%arg0: i32) -> (i32, i32) {
    %c0_i32 = arith.constant 0 : i32
    %c0_i32_0 = arith.constant 0 : i32
    %c0_i32_1 = arith.constant 0 : i32
    return %c0_i32, %c0_i32_0 : i32, i32
  }
  func.func @transform_5(%arg0: i32) -> (i32, i32) {
    %c0_i32 = arith.constant 0 : i32
    %c0_i32_0 = arith.constant 0 : i32
    %c0_i32_1 = arith.constant 0 : i32
    return %c0_i32, %c0_i32_0 : i32, i32
  }
  func.func @transform_6(%arg0: i32) -> (i32, i32) {
    %c0_i32 = arith.constant 0 : i32
    %c0_i32_0 = arith.constant 0 : i32
    %c0_i32_1 = arith.constant 0 : i32
    return %c0_i32, %c0_i32_0 : i32, i32
  }
  func.func @transform_7(%arg0: i32) -> (i32, i32) {
    %c0_i32 = arith.constant 0 : i32
    %c0_i32_0 = arith.constant 0 : i32
    %c0_i32_1 = arith.constant 0 : i32
    return %c0_i32, %c0_i32_0 : i32, i32
  }
  func.func @transform_8(%arg0: i32) -> (i32, i32) {
    %c0_i32 = arith.constant 0 : i32
    %c0_i32_0 = arith.constant 0 : i32
    %c0_i32_1 = arith.constant 0 : i32
    return %c0_i32, %c0_i32_0 : i32, i32
  }
  func.func @transform_9(%arg0: i32) -> (i32, i32) {
    %c0_i32 = arith.constant 0 : i32
    %c0_i32_0 = arith.constant 0 : i32
    return %arg0, %c0_i32 : i32, i32
  }
}

</mosaic_0001>

<bundles_post_ra>
// kernel: tpu_custom_call.1
= control target key start
LH: loop header
LB: loop body
LE: loop exit
PB: predicated region body
PF: predicated region fallthrough
CT: control target
= control target key end

     0   :  { %14 = vsyncpa [#allocation3], 0  ;;  %s12557_s0 = inlined_call_operand.vmem [shape: f32[256,784], index: 0, kind: input, shape index: {}]   ;;  %s12558_s1 = inlined_call_operand.vmem [shape: bf16[784,512], index: 1, kind: input, shape index: {}]   ;;  %s12559_s2 = inlined_call_operand.vmem [shape: f32[1,512], index: 2, kind: input, shape index: {}]   ;;  %s12560_s3 = inlined_call_operand.vmem [shape: bf16[512,512], index: 3, kind: input, shape index: {}]   ;;  %s12561_s4 = inlined_call_operand.vmem [shape: f32[1,512], index: 4, kind: input, shape index: {}]   ;;  %s12562_s5 = inlined_call_operand.hbm [shape: bf16[512,512], index: 5, kind: input, shape index: {}]   ;;  %s12563_s6 = inlined_call_operand.vmem [shape: f32[1,512], index: 6, kind: input, shape index: {}]   ;;  %s12564_s7 = inlined_call_operand.vmem [shape: bf16[512,128], index: 7, kind: input, shape index: {}]   ;;  %s12565_s8 = inlined_call_operand.vmem [shape: f32[1,128], index: 8, kind: input, shape index: {}]   ;;  %s12566_s9 = inlined_call_operand.hbm [shape: bf16[256,128], index: 9, kind: output, shape index: {}]  }
   0x1   :  { %15 = vsyncpa [#allocation4], 0  ;;  %s9942_s30 = smov [#allocation2]   ;;  %s9894_s13 = scalar_lea.hbm %s12562_s5, 16384 }
   0x2   :  { %s31_s10 = sshll.u32 %s9942_s30, 4  ;;  %p9895_p0 = scmp.ne.s32.totalorder %s12562_s5, %s9894_s13  ;;  %s32_s10 = int_to_ptr.vmem [resolvable:$true] %s31_s10 }
   0x3   :  { %p9898_p1 = scmp.lt.u32.totalorder %s9894_s13, %s12562_s5 }
   0x5   :  { %p9900_p2 = pnand %p9898_p1, %p9895_p0 }
   0x7   :  { %9903 = shalt.err (!%p9900_p2)
}
   0x8   :  { %s9904_s18 = scalar_lea.vmem %s32_s10, 16384  ;;  %p9909_p4 = scmp.lt.s32.totalorder %s32_s10, %s32_s10 }
   0x9   :  { %p9905_p3 = scmp.ne.s32.totalorder %s32_s10, %s9904_s18  ;;  %p9910_p5 = scmp.lt.s32.totalorder %s9904_s18, %s9904_s18 }
   0xb   :  { %p9911_p6 = por %p9910_p5, %p9909_p4 }
   0xd   :  { %p9912_p7 = pnand %p9911_p6, %p9905_p3 }
   0xf   :  { %9915 = shalt.err (!%p9912_p7)
}
  0x10   :  { %s9943_s19 = smov 256   ;;  %s9944_s20 = smov 16  }
  0x11   :  { %37 = dma.hbm_to_vmem [thread:$0]  %s12562_s5, 16384, %s32_s10, [#allocation3], %s9943_s19, %s9943_s19, %s9944_s20  }
  0x12   :  { %9938 = dma.done.wait [#allocation3], 16384  }
  0x13   :  { %9939 = vsyncadd [#allocation3], 4294950912  ;;  %v9184_v0 = vld [vmem:[%s12558_s1 + $0x4] ss:$16 sps:$4 sm:$0xff]   ;;  %v9186_v1 = vld [vmem:[%s12558_s1 + $0xc] ss:$16 sps:$4 sm:$0xff]  }
  0x14   :  { %1631 = vmatprep.subr.bf16.mxu0 %v9184_v0  ;;  %v9188_v2 = vld [vmem:[%s12558_s1] ss:$16 sps:$4 sm:$0xff]   ;;  %v9189_v3 = vld [vmem:[%s12558_s1 + $0x8] ss:$16 sps:$4 sm:$0xff]   ;;  %2403 = vmatprep.subr.bf16.mxu1 %v9186_v1  ;;  %v9190_v4 = vld [vmem:[%s12558_s1 + $0x24] ss:$16 sps:$4 sm:$0xff]  }
  0x15   :  { %1632 = vmatpush1.bf16.msra.mxu0 %v9188_v2  ;;  %2404 = vmatpush1.bf16.msra.mxu1 %v9189_v3  ;;  %v9192_v5 = vld [vmem:[%s12558_s1 + $0x2c] ss:$16 sps:$4 sm:$0xff]   ;;  %v9194_v6 = vld [vmem:[%s12558_s1 + $0x20] ss:$16 sps:$4 sm:$0xff]   ;;  %v9195_v7 = vld [vmem:[%s12558_s1 + $0x28] ss:$16 sps:$4 sm:$0xff]  }
  0x16   :  { %1633 = vmatprep.subr.bf16.mxu0 %v9190_v4  ;;  %2405 = vmatprep.subr.bf16.mxu1 %v9192_v5  ;;  %v9196_v8 = vld [vmem:[%s12558_s1 + $0x44] ss:$16 sps:$4 sm:$0xff]   ;;  %v9198_v9 = vld [vmem:[%s12558_s1 + $0x4c] ss:$16 sps:$4 sm:$0xff]   ;;  %v9200_v10 = vld [vmem:[%s12558_s1 + $0x40] ss:$16 sps:$4 sm:$0xff]  }
  0x17   :  { %v9201_v11 = vld [vmem:[%s12558_s1 + $0x48] ss:$16 sps:$4 sm:$0xff]   ;;  %v9202_v12 = vld [vmem:[%s12558_s1 + $0x64] ss:$16 sps:$4 sm:$0xff]   ;;  %v9204_v13 = vld [vmem:[%s12558_s1 + $0x6c] ss:$16 sps:$4 sm:$0xff]  }
  0x18   :  { %v9206_v14 = vld [vmem:[%s12558_s1 + $0x60] ss:$16 sps:$4 sm:$0xff]   ;;  %v9207_v15 = vld [vmem:[%s12558_s1 + $0x68] ss:$16 sps:$4 sm:$0xff]   ;;  %v9208_v16 = vld [vmem:[%s12558_s1 + $0x84] ss:$16 sps:$4 sm:$0xff]  }
  0x19   :  { %1634 = vmatpush1.bf16.msra.mxu0 %v9194_v6  ;;  %2406 = vmatpush1.bf16.msra.mxu1 %v9195_v7  ;;  %v9210_v17 = vld [vmem:[%s12558_s1 + $0x8c] ss:$16 sps:$4 sm:$0xff]   ;;  %v9212_v18 = vld [vmem:[%s12558_s1 + $0x80] ss:$16 sps:$4 sm:$0xff]   ;;  %v9213_v19 = vld [vmem:[%s12558_s1 + $0x88] ss:$16 sps:$4 sm:$0xff]  }
  0x1a   :  { %1635 = vmatprep.subr.bf16.mxu0 %v9196_v8  ;;  %2407 = vmatprep.subr.bf16.mxu1 %v9198_v9  ;;  %v9214_v20 = vld [vmem:[%s12558_s1 + $0xa4] ss:$16 sps:$4 sm:$0xff]   ;;  %v9216_v21 = vld [vmem:[%s12558_s1 + $0xac] ss:$16 sps:$4 sm:$0xff]   ;;  %v9218_v22 = vld [vmem:[%s12558_s1 + $0xa0] ss:$16 sps:$4 sm:$0xff]  }
  0x1b   :  { %v9219_v23 = vld [vmem:[%s12558_s1 + $0xa8] ss:$16 sps:$4 sm:$0xff]   ;;  %v9220_v24 = vld [vmem:[%s12558_s1 + $0xc4] ss:$16 sps:$4 sm:$0xff]   ;;  %v9222_v25 = vld [vmem:[%s12558_s1 + $0xcc] ss:$16 sps:$4 sm:$0xff]  }
  0x1c   :  { %v9224_v26 = vld [vmem:[%s12558_s1 + $0xc0] ss:$16 sps:$4 sm:$0xff]   ;;  %v9225_v27 = vld [vmem:[%s12558_s1 + $0xc8] ss:$16 sps:$4 sm:$0xff]   ;;  %v9226_v28 = vld [vmem:[%s12558_s1 + $0xe4] ss:$16 sps:$4 sm:$0xff]  }
  0x1d   :  { %1636 = vmatpush1.bf16.msra.mxu0 %v9200_v10  ;;  %2408 = vmatpush1.bf16.msra.mxu1 %v9201_v11  ;;  %v9228_v29 = vld [vmem:[%s12558_s1 + $0xec] ss:$16 sps:$4 sm:$0xff]   ;;  %v9230_v30 = vld [vmem:[%s12558_s1 + $0xe0] ss:$16 sps:$4 sm:$0xff]   ;;  %v9231_v31 = vld [vmem:[%s12558_s1 + $0xe8] ss:$16 sps:$4 sm:$0xff]  }
  0x1e   :  { %1637 = vmatprep.subr.bf16.mxu0 %v9202_v12  ;;  %2409 = vmatprep.subr.bf16.mxu1 %v9204_v13  ;;  %v9232_v32 = vld [vmem:[%s12558_s1 + $0x104] ss:$16 sps:$4 sm:$0xff]   ;;  %v9234_v33 = vld [vmem:[%s12558_s1 + $0x10c] ss:$16 sps:$4 sm:$0xff]   ;;  %v9236_v34 = vld [vmem:[%s12558_s1 + $0x100] ss:$16 sps:$4 sm:$0xff]  }
  0x1f   :  { %v9237_v35 = vld [vmem:[%s12558_s1 + $0x108] ss:$16 sps:$4 sm:$0xff]   ;;  %v9238_v36 = vld [vmem:[%s12558_s1 + $0x124] ss:$16 sps:$4 sm:$0xff]   ;;  %v9240_v37 = vld [vmem:[%s12558_s1 + $0x12c] ss:$16 sps:$4 sm:$0xff]  }
  0x20   :  { %v9242_v38 = vld [vmem:[%s12558_s1 + $0x120] ss:$16 sps:$4 sm:$0xff]   ;;  %v9243_v39 = vld [vmem:[%s12558_s1 + $0x128] ss:$16 sps:$4 sm:$0xff]   ;;  %v9244_v40 = vld [vmem:[%s12558_s1 + $0x144] ss:$16 sps:$4 sm:$0xff]  }
  0x21   :  { %1638 = vmatpush1.bf16.msra.mxu0 %v9206_v14  ;;  %2410 = vmatpush1.bf16.msra.mxu1 %v9207_v15  ;;  %v9246_v41 = vld [vmem:[%s12558_s1 + $0x14c] ss:$16 sps:$4 sm:$0xff]   ;;  %v9248_v42 = vld [vmem:[%s12558_s1 + $0x140] ss:$16 sps:$4 sm:$0xff]   ;;  %v9249_v43 = vld [vmem:[%s12558_s1 + $0x148] ss:$16 sps:$4 sm:$0xff]  }
  0x22   :  { %1639 = vmatprep.subr.bf16.mxu0 %v9208_v16  ;;  %2411 = vmatprep.subr.bf16.mxu1 %v9210_v17  ;;  %v9250_v44 = vld [vmem:[%s12558_s1 + $0x164] ss:$16 sps:$4 sm:$0xff]   ;;  %v9252_v45 = vld [vmem:[%s12558_s1 + $0x16c] ss:$16 sps:$4 sm:$0xff]   ;;  %v9254_v47 = vld [vmem:[%s12558_s1 + $0x160] ss:$16 sps:$4 sm:$0xff]  }
  0x23   :  { %v49_v46 = vld [vmem:[%s12557_s0 + $0x8] sm:$0xff]  ;;  %v56_v48 = vld [vmem:[%s12557_s0 + $0x40] sm:$0xff]  ;;  %v55_v4 = vld [vmem:[%s12557_s0 + $0x38] sm:$0xff]  ;;  %vm1582_vm0 = vcmask 130048  }
  0x24   :  { %v9255_v49 = vld [vmem:[%s12558_s1 + $0x168] ss:$16 sps:$4 sm:$0xff]   ;;  %v273_v50 = vpack.c.bf16 %v56_v48, %v49_v46  ;;  %v9256_v51 = vld [vmem:[%s12558_s1 + $0x184] ss:$16 sps:$4 sm:$0xff]   ;;  %v9258_v52 = vld [vmem:[%s12558_s1 + $0x18c] ss:$16 sps:$4 sm:$0xff]  }
  0x25   :  { %1640 = vmatpush1.bf16.msra.mxu0 %v9212_v18  ;;  %2412 = vmatpush1.bf16.msra.mxu1 %v9213_v19  ;;  %v9260_v53 = vld [vmem:[%s12558_s1 + $0x180] ss:$16 sps:$4 sm:$0xff]   ;;  %v9261_v54 = vld [vmem:[%s12558_s1 + $0x188] ss:$16 sps:$4 sm:$0xff]   ;;  %v9262_v55 = vld [vmem:[%s12558_s1 + $0x1a4] ss:$16 sps:$4 sm:$0xff]  }
  0x26   :  { %1641 = vmatprep.subr.bf16.mxu0 %v9214_v20  ;;  %2413 = vmatprep.subr.bf16.mxu1 %v9216_v21  ;;  %v9264_v56 = vld [vmem:[%s12558_s1 + $0x1ac] ss:$16 sps:$4 sm:$0xff]   ;;  %v9266_v57 = vld [vmem:[%s12558_s1 + $0x1a0] ss:$16 sps:$4 sm:$0xff]   ;;  %v9267_v58 = vld [vmem:[%s12558_s1 + $0x1a8] ss:$16 sps:$4 sm:$0xff]  }
  0x27   :  { %1663 = vmatprep.mubr.bf16.mxu0 %v273_v50  ;;  %2435 = vmatprep.mubr.bf16.mxu1 %v273_v50  ;;  %v9268_v59 = vld [vmem:[%s12558_s1 + $0x1c4] ss:$16 sps:$4 sm:$0xff]   ;;  %v9270_v60 = vld [vmem:[%s12558_s1 + $0x1cc] ss:$16 sps:$4 sm:$0xff]   ;;  %v9272_v61 = vld [vmem:[%s12558_s1 + $0x1c0] ss:$16 sps:$4 sm:$0xff]  }
  0x28   :  { %v9273_v62 = vld [vmem:[%s12558_s1 + $0x1c8] ss:$16 sps:$4 sm:$0xff]   ;;  %v9274_v63 = vld [vmem:[%s12558_s1 + $0x1e4] ss:$16 sps:$4 sm:$0xff]   ;;  %v9276_v0 = vld [vmem:[%s12558_s1 + $0x1ec] ss:$16 sps:$4 sm:$0xff]  }
  0x29   :  { %1642 = vmatpush1.bf16.msra.mxu0 %v9218_v22  ;;  %2414 = vmatpush1.bf16.msra.mxu1 %v9219_v23  ;;  %v9278_v1 = vld [vmem:[%s12558_s1 + $0x1e0] ss:$16 sps:$4 sm:$0xff]   ;;  %v9279_v2 = vld [vmem:[%s12558_s1 + $0x1e8] ss:$16 sps:$4 sm:$0xff]   ;;  %v9282_v5 = vld [vmem:[%s12558_s1 + $0x204] ss:$16 sps:$4 sm:$0xff]  }
  0x2a   :  { %1643 = vmatprep.subr.bf16.mxu0 %v9220_v24  ;;  %2415 = vmatprep.subr.bf16.mxu1 %v9222_v25  ;;  %v48_v3 = vld [vmem:[%s12557_s0] sm:$0xff]  ;;  %v63_v6 = vld [vmem:[%s12557_s0 + $0x78] sm:$0xff]  ;;  %v70_v7 = vld [vmem:[%s12557_s0 + $0xb0] sm:$0xff] }
  0x2b   :  { %v272_v8 = vpack.c.bf16 %v55_v4, %v48_v3  ;;  %v9280_v9 = vld [vmem:[%s12558_s1 + $0x200] ss:$16 sps:$4 sm:$0xff]   ;;  %v280_v10 = vpack.c.bf16 %v70_v7, %v63_v6  ;;  %v9285_v11 = vld [vmem:[%s12558_s1 + $0x224] ss:$16 sps:$4 sm:$0xff]   ;;  %v69_v13 = vld [vmem:[%s12557_s0 + $0xa8] sm:$0xff] }
  0x2c   :  { %v62_v12 = vld [vmem:[%s12557_s0 + $0x70] sm:$0xff]  ;;  %v9307_v15 = vld [vmem:[%s12558_s1 + $0x208] ss:$16 sps:$4 sm:$0xff]   ;;  %v9309_v16 = vld [vmem:[%s12558_s1 + $0x20c] ss:$16 sps:$4 sm:$0xff]  }
  0x2d   :  { %1644 = vmatpush1.bf16.msra.mxu0 %v9224_v26  ;;  %2416 = vmatpush1.bf16.msra.mxu1 %v9225_v27  ;;  %v9283_v14 = vld [vmem:[%s12558_s1 + $0x220] ss:$16 sps:$4 sm:$0xff]   ;;  %v77_v17 = vld [vmem:[%s12557_s0 + $0xe8] sm:$0xff]  ;;  %v9288_v19 = vld [vmem:[%s12558_s1 + $0x244] ss:$16 sps:$4 sm:$0xff]   ;;  %v279_v21 = vpack.c.bf16 %v69_v13, %v62_v12 }
  0x2e   :  { %1645 = vmatprep.subr.bf16.mxu0 %v9226_v28  ;;  %2417 = vmatprep.subr.bf16.mxu1 %v9228_v29  ;;  %v84_v18 = vld [vmem:[%s12557_s0 + $0x120] sm:$0xff]  ;;  %v9312_v20 = vld [vmem:[%s12558_s1 + $0x22c] ss:$16 sps:$4 sm:$0xff]   ;;  %v9310_v24 = vld [vmem:[%s12558_s1 + $0x228] ss:$16 sps:$4 sm:$0xff]  }
  0x2f   :  { %v287_v22 = vpack.c.bf16 %v84_v18, %v77_v17  ;;  %v9286_v23 = vld [vmem:[%s12558_s1 + $0x240] ss:$16 sps:$4 sm:$0xff]   ;;  %v9291_v26 = vld [vmem:[%s12558_s1 + $0x264] ss:$16 sps:$4 sm:$0xff]   ;;  %v9318_v27 = vld [vmem:[%s12558_s1 + $0x24c] ss:$16 sps:$4 sm:$0xff]  }
  0x30   :  { %v76_v25 = vld [vmem:[%s12557_s0 + $0xe0] sm:$0xff]  ;;  %v83_v28 = vld [vmem:[%s12557_s0 + $0x118] sm:$0xff]  ;;  %v125_v6 = vld [vmem:[%s12557_s0 + $0x268] sm:$0xff] }
  0x31   :  { %1646 = vmatpush1.bf16.msra.mxu0 %v9230_v30  ;;  %2418 = vmatpush1.bf16.msra.mxu1 %v9231_v31  ;;  %v91_v29 = vld [vmem:[%s12557_s0 + $0x158] sm:$0xff]  ;;  %v98_v30 = vld [vmem:[%s12557_s0 + $0x190] sm:$0xff]  ;;  %v133_v7 = vld [vmem:[%s12557_s0 + $0x2a8] sm:$0xff] }
  0x32   :  { %1647 = vmatprep.subr.bf16.mxu0 %v9232_v32  ;;  %2419 = vmatprep.subr.bf16.mxu1 %v9234_v33  ;;  %v9289_v31 = vld [vmem:[%s12558_s1 + $0x260] ss:$16 sps:$4 sm:$0xff]   ;;  %v9316_v32 = vld [vmem:[%s12558_s1 + $0x248] ss:$16 sps:$4 sm:$0xff]   ;;  %v9294_v33 = vld [vmem:[%s12558_s1 + $0x284] ss:$16 sps:$4 sm:$0xff]  }
  0x33   :  { %v9325_v46 = vld [vmem:[%s12558_s1 + $0x288] ss:$16 sps:$4 sm:$0xff]   ;;  %v9330_v48 = vld [vmem:[%s12558_s1 + $0x2ac] ss:$16 sps:$4 sm:$0xff]   ;;  %v9315_v3 = vld [vmem:[%s12558_s1 + $0x324] ss:$16 sps:$4 sm:$0xff]  }
  0x34   :  { %v9345_v4 = vld [vmem:[%s12558_s1 + $0x30c] ss:$16 sps:$4 sm:$0xff]   ;;  %v9333_v17 = vld [vmem:[%s12558_s1 + $0x364] ss:$16 sps:$4 sm:$0xff]  }
  0x35   :  { %1648 = vmatpush1.bf16.msra.mxu0 %v9236_v34  ;;  %2420 = vmatpush1.bf16.msra.mxu1 %v9237_v35  ;;  %v9321_v34 = vld [vmem:[%s12558_s1 + $0x26c] ss:$16 sps:$4 sm:$0xff]   ;;  %v286_v35 = vpack.c.bf16 %v83_v28, %v76_v25  ;;  %v9342_v25 = vld [vmem:[%s12558_s1 + $0x384] ss:$16 sps:$4 sm:$0xff]  }
  0x36   :  { %1649 = vmatprep.subr.bf16.mxu0 %v9238_v36  ;;  %2421 = vmatprep.subr.bf16.mxu1 %v9240_v37  ;;  %v294_v36 = vpack.c.bf16 %v98_v30, %v91_v29  ;;  %v9292_v37 = vld [vmem:[%s12558_s1 + $0x280] ss:$16 sps:$4 sm:$0xff]   ;;  %v9348_v12 = vld [vmem:[%s12558_s1 + $0x32c] ss:$16 sps:$4 sm:$0xff]   ;;  %v9355_v30 = vld [vmem:[%s12558_s1 + $0x368] ss:$16 sps:$4 sm:$0xff]  }
  0x37   :  { %v9354_v18 = vld [vmem:[%s12558_s1 + $0x34c] ss:$16 sps:$4 sm:$0xff]   ;;  %v9340_v29 = vld [vmem:[%s12558_s1 + $0x380] ss:$16 sps:$4 sm:$0xff]  }
  0x39   :  { %1650 = vmatpush1.bf16.msra.mxu0 %v9242_v38  ;;  %2422 = vmatpush1.bf16.msra.mxu1 %v9243_v39  ;;  %v9319_v38 = vld [vmem:[%s12558_s1 + $0x268] ss:$16 sps:$4 sm:$0xff]   ;;  %v9297_v39 = vld [vmem:[%s12558_s1 + $0x2a4] ss:$16 sps:$4 sm:$0xff]  }
  0x3a   :  { %1651 = vmatprep.subr.bf16.mxu0 %v9244_v40  ;;  %2423 = vmatprep.subr.bf16.mxu1 %v9246_v41  ;;  %v9327_v40 = vld [vmem:[%s12558_s1 + $0x28c] ss:$16 sps:$4 sm:$0xff]   ;;  %v90_v41 = vld [vmem:[%s12557_s0 + $0x150] sm:$0xff] }
  0x3d   :  { %1652 = vmatpush1.bf16.msra.mxu0 %v9248_v42  ;;  %2424 = vmatpush1.bf16.msra.mxu1 %v9249_v43  ;;  %v97_v42 = vld [vmem:[%s12557_s0 + $0x188] sm:$0xff] }
  0x3e   :  { %1653 = vmatprep.subr.bf16.mxu0 %v9250_v44  ;;  %2425 = vmatprep.subr.bf16.mxu1 %v9252_v45  ;;  %v105_v43 = vld [vmem:[%s12557_s0 + $0x1c8] sm:$0xff]  ;;  %v112_v44 = vld [vmem:[%s12557_s0 + $0x200] sm:$0xff] }
  0x3f   :  { %v9295_v45 = vld [vmem:[%s12558_s1 + $0x2a0] ss:$16 sps:$4 sm:$0xff]   ;;  %v301_v50 = vpack.c.bf16 %v112_v44, %v105_v43  ;;  %v9364_v44 = vld [vmem:[%s12558_s1 + $0x3a8] ss:$16 sps:$4 sm:$0xff]  }
  0x40   :  { %v9358_v43 = vld [vmem:[%s12558_s1 + $0x3c0] ss:$16 sps:$4 sm:$0xff]  }
  0x41   :  { %1654 = vmatpush1.bf16.msra.mxu0 %v9254_v47  ;;  %2426 = vmatpush1.bf16.msra.mxu1 %v9255_v49  ;;  %v9300_v47 = vld [vmem:[%s12558_s1 + $0x2c4] ss:$16 sps:$4 sm:$0xff]   ;;  %v293_v49 = vpack.c.bf16 %v97_v42, %v90_v41 }
  0x42   :  { %1655 = vmatprep.subr.bf16.mxu0 %v9256_v51  ;;  %2427 = vmatprep.subr.bf16.mxu1 %v9258_v52  ;;  %v9298_v51 = vld [vmem:[%s12558_s1 + $0x2c0] ss:$16 sps:$4 sm:$0xff]   ;;  %v9328_v52 = vld [vmem:[%s12558_s1 + $0x2a8] ss:$16 sps:$4 sm:$0xff]  }
  0x45   :  { %1656 = vmatpush1.bf16.msra.mxu0 %v9260_v53  ;;  %2428 = vmatpush1.bf16.msra.mxu1 %v9261_v54  ;;  %v104_v53 = vld [vmem:[%s12557_s0 + $0x1c0] sm:$0xff] }
  0x46   :  { %1657 = vmatprep.subr.bf16.mxu0 %v9262_v55  ;;  %2429 = vmatprep.subr.bf16.mxu1 %v9264_v56  ;;  %v9303_v54 = vld [vmem:[%s12558_s1 + $0x2e4] ss:$16 sps:$4 sm:$0xff]   ;;  %v9336_v55 = vld [vmem:[%s12558_s1 + $0x2cc] ss:$16 sps:$4 sm:$0xff]  }
  0x47   :  { %v111_v56 = vld [vmem:[%s12557_s0 + $0x1f8] sm:$0xff] }
  0x49   :  { %1658 = vmatpush1.bf16.msra.mxu0 %v9266_v57  ;;  %2430 = vmatpush1.bf16.msra.mxu1 %v9267_v58  ;;  %v119_v57 = vld [vmem:[%s12557_s0 + $0x238] sm:$0xff]  ;;  %v126_v58 = vld [vmem:[%s12557_s0 + $0x270] sm:$0xff] }
  0x4a   :  { %1659 = vmatprep.subr.bf16.mxu0 %v9268_v59  ;;  %2431 = vmatprep.subr.bf16.mxu1 %v9270_v60  ;;  %v9301_v59 = vld [vmem:[%s12558_s1 + $0x2e0] ss:$16 sps:$4 sm:$0xff]   ;;  %v9334_v60 = vld [vmem:[%s12558_s1 + $0x2c8] ss:$16 sps:$4 sm:$0xff]  }
  0x4d   :  { %1660 = vmatpush1.bf16.msra.mxu0 %v9272_v61  ;;  %2432 = vmatpush1.bf16.msra.mxu1 %v9273_v62  ;;  %v9306_v61 = vld [vmem:[%s12558_s1 + $0x304] ss:$16 sps:$4 sm:$0xff]   ;;  %v9339_v62 = vld [vmem:[%s12558_s1 + $0x2ec] ss:$16 sps:$4 sm:$0xff]  }
  0x4e   :  { %1661 = vmatprep.subr.bf16.mxu0 %v9274_v63  ;;  %2433 = vmatprep.subr.bf16.mxu1 %v9276_v0  ;;  %v300_v63 = vpack.c.bf16 %v111_v56, %v104_v53  ;;  %v308_v0 = vpack.c.bf16 %v126_v58, %v119_v57  ;;  %v9375_v53 = vld [vmem:[%s12558_s1 + $0x3ec] ss:$16 sps:$4 sm:$0xff]   ;;  %v9373_v57 = vld [vmem:[%s12558_s1 + $0x3e8] ss:$16 sps:$4 sm:$0xff]   ;;  %v174_v58 = vld [vmem:[%s12557_s0 + $0x3f0] sm:$0xff] }
  0x51   :  { %1662 = vmatpush1.bf16.msra.mxu0 %v9278_v1  ;;  %2434 = vmatpush1.bf16.msra.mxu1 %v9279_v2  ;;  %v9304_v1 = vld [vmem:[%s12558_s1 + $0x300] ss:$16 sps:$4 sm:$0xff]   ;;  %v9337_v2 = vld [vmem:[%s12558_s1 + $0x2e8] ss:$16 sps:$4 sm:$0xff]  }
  0x52   :  { %1824 = vmatprep.subr.bf16.mxu0 %v9282_v5  ;;  %2596 = vmatprep.subr.bf16.mxu1 %v9309_v16  ;;  %v118_v5 = vld [vmem:[%s12557_s0 + $0x230] sm:$0xff]  ;;  %v9346_v16 = vld [vmem:[%s12558_s1 + $0x328] ss:$16 sps:$4 sm:$0xff]  }
  0x53   :  { %v307_v13 = vpack.c.bf16 %v125_v6, %v118_v5 }
  0x54   :  { %1664 = vmatmul.mubr.bf16.vlgmr.msra.gmra.mrb[0].mxu0 %v272_v8  ;;  %2436 = vmatmul.mubr.bf16.vlgmr.msra.gmra.mrb[0].mxu1 %v272_v8  ;;  %v140_v8 = vld [vmem:[%s12557_s0 + $0x2e0] sm:$0xff] }
  0x55   :  { %1825 = vmatpush1.bf16.msra.mxu0 %v9280_v9  ;;  %1673 = vmatprep.mubr.bf16.mxu0 %v280_v10  ;;  %v9313_v9 = vld [vmem:[%s12558_s1 + $0x320] ss:$16 sps:$4 sm:$0xff]  }
  0x56   :  { %2445 = vmatprep.mubr.bf16.mxu1 %v280_v10  ;;  %1826 = vmatprep.subr.bf16.mxu0 %v9285_v11  ;;  %v9343_v10 = vld [vmem:[%s12558_s1 + $0x308] ss:$16 sps:$4 sm:$0xff]   ;;  %v9324_v11 = vld [vmem:[%s12558_s1 + $0x344] ss:$16 sps:$4 sm:$0xff]  }
  0x57   :  { %2597 = vmatpush1.bf16.msra.mxu1 %v9307_v15  ;;  %v9322_v15 = vld [vmem:[%s12558_s1 + $0x340] ss:$16 sps:$4 sm:$0xff]  }
  0x58   :  { %2598 = vmatprep.subr.bf16.mxu1 %v9312_v20  ;;  %v139_v20 = vld [vmem:[%s12557_s0 + $0x2d8] sm:$0xff] }
  0x59   :  { %1827 = vmatpush1.bf16.msra.mxu0 %v9283_v14  ;;  %v315_v14 = vpack.c.bf16 %v140_v8, %v133_v7  ;;  %v202_v7 = vld [vmem:[%s12557_s0 + $0x4d0] sm:$0xff]  ;;  %v209_v8 = vld [vmem:[%s12557_s0 + $0x508] sm:$0xff] }
  0x5a   :  { %1828 = vmatprep.subr.bf16.mxu0 %v9288_v19  ;;  %v132_v19 = vld [vmem:[%s12557_s0 + $0x2a0] sm:$0xff] }
  0x5b   :  { %2599 = vmatpush1.bf16.msra.mxu1 %v9310_v24  ;;  %v9352_v24 = vld [vmem:[%s12558_s1 + $0x348] ss:$16 sps:$4 sm:$0xff]  }
  0x5c   :  { %1674 = vmatmul.mubr.bf16.gmra.mrb[4].mxu0 %v279_v21  ;;  %2446 = vmatmul.mubr.bf16.gmra.mrb[4].mxu1 %v279_v21  ;;  %v147_v21 = vld [vmem:[%s12557_s0 + $0x318] sm:$0xff] }
  0x5d   :  { %1683 = vmatprep.mubr.bf16.mxu0 %v287_v22  ;;  %2455 = vmatprep.mubr.bf16.mxu1 %v287_v22  ;;  %v154_v22 = vld [vmem:[%s12557_s0 + $0x350] sm:$0xff] }
  0x5e   :  { %1829 = vmatpush1.bf16.msra.mxu0 %v9286_v23  ;;  %2600 = vmatprep.subr.bf16.mxu1 %v9318_v27  ;;  %v9331_v23 = vld [vmem:[%s12558_s1 + $0x360] ss:$16 sps:$4 sm:$0xff]   ;;  %v314_v27 = vpack.c.bf16 %v139_v20, %v132_v19  ;;  %v322_v28 = vpack.c.bf16 %v154_v22, %v147_v21  ;;  %v237_v20 = vld [vmem:[%s12557_s0 + $0x5e8] sm:$0xff] }
  0x5f   :  { %1830 = vmatprep.subr.bf16.mxu0 %v9291_v26  ;;  %2601 = vmatpush1.bf16.msra.mxu1 %v9316_v32  ;;  %v9357_v26 = vld [vmem:[%s12558_s1 + $0x36c] ss:$16 sps:$4 sm:$0xff]   ;;  %v230_v19 = vld [vmem:[%s12557_s0 + $0x5b0] sm:$0xff]  ;;  %v252_v22 = vld [vmem:[%s12557_s0 + $0x660] sm:$0xff] }
  0x60   :  { %2602 = vmatprep.subr.bf16.mxu1 %v9321_v34  ;;  %v9363_v32 = vld [vmem:[%s12558_s1 + $0x38c] ss:$16 sps:$4 sm:$0xff]  }
  0x61   :  { %v153_v34 = vld [vmem:[%s12557_s0 + $0x348] sm:$0xff] }
  0x62   :  { %1831 = vmatpush1.bf16.msra.mxu0 %v9289_v31  ;;  %v9351_v31 = vld [vmem:[%s12558_s1 + $0x3a4] ss:$16 sps:$4 sm:$0xff]   ;;  %v245_v21 = vld [vmem:[%s12557_s0 + $0x628] sm:$0xff] }
  0x63   :  { %1832 = vmatprep.subr.bf16.mxu0 %v9294_v33  ;;  %2603 = vmatpush1.bf16.msra.mxu1 %v9319_v38  ;;  %v146_v33 = vld [vmem:[%s12557_s0 + $0x310] sm:$0xff]  ;;  %v9361_v38 = vld [vmem:[%s12558_s1 + $0x388] ss:$16 sps:$4 sm:$0xff]  }
  0x64   :  { %1684 = vmatmul.mubr.bf16.gmra.mrb[8].mxu0 %v286_v35  ;;  %2456 = vmatmul.mubr.bf16.gmra.mrb[8].mxu1 %v286_v35  ;;  %v161_v35 = vld [vmem:[%s12557_s0 + $0x388] sm:$0xff]  ;;  %v321_v41 = vpack.c.bf16 %v153_v34, %v146_v33  ;;  %v51_v33 = vld [vmem:[%s12557_s0 + $0x18] sm:$0xff]  ;;  %v58_v34 = vld [vmem:[%s12557_s0 + $0x50] sm:$0xff] }
  0x65   :  { %1693 = vmatprep.mubr.bf16.mxu0 %v294_v36  ;;  %2465 = vmatprep.mubr.bf16.mxu1 %v294_v36  ;;  %v168_v36 = vld [vmem:[%s12557_s0 + $0x3c0] sm:$0xff] }
  0x66   :  { %1833 = vmatpush1.bf16.msra.mxu0 %v9292_v37  ;;  %2604 = vmatprep.subr.bf16.mxu1 %v9327_v40  ;;  %v9349_v37 = vld [vmem:[%s12558_s1 + $0x3a0] ss:$16 sps:$4 sm:$0xff]   ;;  %v9366_v40 = vld [vmem:[%s12558_s1 + $0x3ac] ss:$16 sps:$4 sm:$0xff]   ;;  %v329_v42 = vpack.c.bf16 %v168_v36, %v161_v35  ;;  %v275_v36 = vpack.c.bf16 %v58_v34, %v51_v33 }
  0x67   :  { %1834 = vmatprep.subr.bf16.mxu0 %v9297_v39  ;;  %2605 = vmatpush1.bf16.msra.mxu1 %v9325_v46  ;;  %v9360_v39 = vld [vmem:[%s12558_s1 + $0x3c4] ss:$16 sps:$4 sm:$0xff]   ;;  %v9372_v46 = vld [vmem:[%s12558_s1 + $0x3cc] ss:$16 sps:$4 sm:$0xff]   ;;  %v9400_v33 = vld [vmem:[%s12558_s1 + $0x500] ss:$16 sps:$4 sm:$0xff]  }
  0x68   :  { %2606 = vmatprep.subr.bf16.mxu1 %v9330_v48  ;;  %v167_v48 = vld [vmem:[%s12557_s0 + $0x3b8] sm:$0xff] }
  0x69   :  { %v9441_v34 = vld [vmem:[%s12558_s1 + $0x50c] ss:$16 sps:$4 sm:$0xff]  }
  0x6a   :  { %1835 = vmatpush1.bf16.msra.mxu0 %v9295_v45  ;;  %v9369_v45 = vld [vmem:[%s12558_s1 + $0x3e4] ss:$16 sps:$4 sm:$0xff]  }
  0x6b   :  { %1836 = vmatprep.subr.bf16.mxu0 %v9300_v47  ;;  %2607 = vmatpush1.bf16.msra.mxu1 %v9328_v52  ;;  %v160_v47 = vld [vmem:[%s12557_s0 + $0x380] sm:$0xff]  ;;  %v9370_v52 = vld [vmem:[%s12558_s1 + $0x3c8] ss:$16 sps:$4 sm:$0xff]  }
  0x6c   :  { %1694 = vmatmul.mubr.bf16.gmra.mrb[12].mxu0 %v293_v49  ;;  %2466 = vmatmul.mubr.bf16.gmra.mrb[12].mxu1 %v293_v49  ;;  %v175_v49 = vld [vmem:[%s12557_s0 + $0x3f8] sm:$0xff] }
  0x6d   :  { %1703 = vmatprep.mubr.bf16.mxu0 %v301_v50  ;;  %2475 = vmatprep.mubr.bf16.mxu1 %v301_v50  ;;  %v182_v50 = vld [vmem:[%s12557_s0 + $0x430] sm:$0xff] }
  0x6e   :  { %1837 = vmatpush1.bf16.msra.mxu0 %v9298_v51  ;;  %2608 = vmatprep.subr.bf16.mxu1 %v9336_v55  ;;  %v9367_v51 = vld [vmem:[%s12558_s1 + $0x3e0] ss:$16 sps:$4 sm:$0xff]   ;;  %v328_v55 = vpack.c.bf16 %v167_v48, %v160_v47  ;;  %v336_v56 = vpack.c.bf16 %v182_v50, %v175_v49  ;;  %v71_v47 = vld [vmem:[%s12557_s0 + $0xb8] sm:$0xff] }
  0x6f   :  { %1838 = vmatprep.subr.bf16.mxu0 %v9303_v54  ;;  %2609 = vmatpush1.bf16.msra.mxu1 %v9334_v60  ;;  %v9378_v54 = vld [vmem:[%s12558_s1 + $0x404] ss:$16 sps:$4 sm:$0xff]   ;;  %v181_v60 = vld [vmem:[%s12557_s0 + $0x428] sm:$0xff]  ;;  %v9379_v48 = vld [vmem:[%s12558_s1 + $0x420] ss:$16 sps:$4 sm:$0xff]  }
  0x70   :  { %2610 = vmatprep.subr.bf16.mxu1 %v9339_v62  ;;  %v196_v62 = vld [vmem:[%s12557_s0 + $0x4a0] sm:$0xff]  ;;  %v9408_v49 = vld [vmem:[%s12558_s1 + $0x42c] ss:$16 sps:$4 sm:$0xff]  }
  0x71   :  { %v79_v50 = vld [vmem:[%s12557_s0 + $0xf8] sm:$0xff] }
  0x72   :  { %1839 = vmatpush1.bf16.msra.mxu0 %v9301_v59  ;;  %v9405_v59 = vld [vmem:[%s12558_s1 + $0x40c] ss:$16 sps:$4 sm:$0xff]  }
  0x73   :  { %1840 = vmatprep.subr.bf16.mxu0 %v9306_v61  ;;  %2611 = vmatpush1.bf16.msra.mxu1 %v9337_v2  ;;  %v189_v61 = vld [vmem:[%s12557_s0 + $0x468] sm:$0xff]  ;;  %v195_v2 = vld [vmem:[%s12557_s0 + $0x498] sm:$0xff] }
  0x74   :  { %1704 = vmatmul.mubr.bf16.gmra.mrb[16].mxu0 %v300_v63  ;;  %2476 = vmatmul.mubr.bf16.gmra.mrb[16].mxu1 %v300_v63  ;;  %v335_v63 = vpack.c.bf16 %v181_v60, %v174_v58  ;;  %v9387_v58 = vld [vmem:[%s12558_s1 + $0x464] ss:$16 sps:$4 sm:$0xff]  }
  0x75   :  { %1713 = vmatprep.mubr.bf16.mxu0 %v308_v0  ;;  %2485 = vmatprep.mubr.bf16.mxu1 %v308_v0  ;;  %v343_v0 = vpack.c.bf16 %v196_v62, %v189_v61  ;;  %v78_v60 = vld [vmem:[%s12557_s0 + $0xf0] sm:$0xff]  ;;  %v85_v61 = vld [vmem:[%s12557_s0 + $0x128] sm:$0xff] }
  0x76   :  { %1841 = vmatpush1.bf16.msra.mxu0 %v9304_v1  ;;  %2612 = vmatprep.subr.bf16.mxu1 %v9345_v4  ;;  %v188_v1 = vld [vmem:[%s12557_s0 + $0x460] sm:$0xff]  ;;  %v210_v4 = vld [vmem:[%s12557_s0 + $0x510] sm:$0xff]  ;;  %v93_v62 = vld [vmem:[%s12557_s0 + $0x168] sm:$0xff] }
  0x77   :  { %1842 = vmatprep.subr.bf16.mxu0 %v9315_v3  ;;  %2613 = vmatpush1.bf16.msra.mxu1 %v9343_v10  ;;  %v203_v3 = vld [vmem:[%s12557_s0 + $0x4d8] sm:$0xff]  ;;  %v342_v5 = vpack.c.bf16 %v195_v2, %v188_v1  ;;  %v224_v10 = vld [vmem:[%s12557_s0 + $0x580] sm:$0xff] }
  0x78   :  { %2614 = vmatprep.subr.bf16.mxu1 %v9348_v12  ;;  %v350_v6 = vpack.c.bf16 %v210_v4, %v203_v3  ;;  %v9417_v1 = vld [vmem:[%s12558_s1 + $0x46c] ss:$16 sps:$4 sm:$0xff]   ;;  %v9390_v2 = vld [vmem:[%s12558_s1 + $0x484] ss:$16 sps:$4 sm:$0xff]   ;;  %v9415_v3 = vld [vmem:[%s12558_s1 + $0x468] ss:$16 sps:$4 sm:$0xff]   ;;  %v288_v4 = vpack.c.bf16 %v85_v61, %v78_v60 }
  0x79   :  { %v9436_v61 = vld [vmem:[%s12558_s1 + $0x580] ss:$16 sps:$4 sm:$0xff]  }
  0x7a   :  { %1843 = vmatpush1.bf16.msra.mxu0 %v9313_v9  ;;  %v217_v9 = vld [vmem:[%s12557_s0 + $0x548] sm:$0xff] }
  0x7b   :  { %1844 = vmatprep.subr.bf16.mxu0 %v9324_v11  ;;  %2615 = vmatpush1.bf16.msra.mxu1 %v9346_v16  ;;  %v349_v11 = vpack.c.bf16 %v209_v8, %v202_v7  ;;  %v357_v12 = vpack.c.bf16 %v224_v10, %v217_v9  ;;  %v238_v16 = vld [vmem:[%s12557_s0 + $0x5f0] sm:$0xff]  ;;  %v9421_v9 = vld [vmem:[%s12558_s1 + $0x488] ss:$16 sps:$4 sm:$0xff]   ;;  %v92_v10 = vld [vmem:[%s12557_s0 + $0x160] sm:$0xff] }
  0x7c   :  { %1714 = vmatmul.mubr.bf16.gmra.mrb[20].mxu0 %v307_v13  ;;  %2486 = vmatmul.mubr.bf16.gmra.mrb[20].mxu1 %v307_v13  ;;  %v216_v13 = vld [vmem:[%s12557_s0 + $0x540] sm:$0xff] }
  0x7d   :  { %1723 = vmatprep.mubr.bf16.mxu0 %v315_v14  ;;  %2495 = vmatprep.mubr.bf16.mxu1 %v315_v14  ;;  %v223_v14 = vld [vmem:[%s12557_s0 + $0x578] sm:$0xff]  ;;  %v9393_v8 = vld [vmem:[%s12558_s1 + $0x4a4] ss:$16 sps:$4 sm:$0xff]  }
  0x7e   :  { %1845 = vmatpush1.bf16.msra.mxu0 %v9322_v15  ;;  %2616 = vmatprep.subr.bf16.mxu1 %v9354_v18  ;;  %v231_v15 = vld [vmem:[%s12557_s0 + $0x5b8] sm:$0xff] }
  0x7f   :  { %1846 = vmatprep.subr.bf16.mxu0 %v9333_v17  ;;  %2617 = vmatpush1.bf16.msra.mxu1 %v9352_v24  ;;  %v356_v17 = vpack.c.bf16 %v223_v14, %v216_v13  ;;  %v364_v18 = vpack.c.bf16 %v238_v16, %v231_v15  ;;  %v371_v24 = vpack.c.bf16 %v252_v22, %v245_v21  ;;  %v114_v13 = vld [vmem:[%s12557_s0 + $0x210] sm:$0xff]  ;;  %v9426_v15 = vld [vmem:[%s12558_s1 + $0x4ac] ss:$16 sps:$4 sm:$0xff]  }
  0x80   :  { %2618 = vmatprep.subr.bf16.mxu1 %v9357_v26  ;;  %v251_v26 = vld [vmem:[%s12557_s0 + $0x658] sm:$0xff]  ;;  %v9391_v14 = vld [vmem:[%s12558_s1 + $0x4a0] ss:$16 sps:$4 sm:$0xff]   ;;  %v9396_v16 = vld [vmem:[%s12558_s1 + $0x4c4] ss:$16 sps:$4 sm:$0xff]  }
  0x81   :  { %v9399_v22 = vld [vmem:[%s12558_s1 + $0x4e4] ss:$16 sps:$4 sm:$0xff]  }
  0x82   :  { %1847 = vmatpush1.bf16.msra.mxu0 %v9331_v23  ;;  %v363_v23 = vpack.c.bf16 %v237_v20, %v230_v19  ;;  %v9394_v19 = vld [vmem:[%s12558_s1 + $0x4c0] ss:$16 sps:$4 sm:$0xff]   ;;  %v9432_v20 = vld [vmem:[%s12558_s1 + $0x4cc] ss:$16 sps:$4 sm:$0xff]  }
  0x83   :  { %1848 = vmatprep.subr.bf16.mxu0 %v9342_v25  ;;  %2619 = vmatpush1.bf16.msra.mxu1 %v9355_v30  ;;  %v244_v25 = vld [vmem:[%s12557_s0 + $0x620] sm:$0xff] }
  0x84   :  { %1724 = vmatmul.mubr.bf16.gmra.mrb[24].mxu0 %v314_v27  ;;  %2496 = vmatmul.mubr.bf16.gmra.mrb[24].mxu1 %v314_v27  ;;  %v259_v27 = vld [vmem:[%s12557_s0 + $0x698] sm:$0xff] }
  0x85   :  { %1733 = vmatprep.mubr.bf16.mxu0 %v322_v28  ;;  %2505 = vmatprep.mubr.bf16.mxu1 %v322_v28  ;;  %v266_v28 = vld [vmem:[%s12557_s0 + $0x6d0] sm:$0xff] }
  0x86   :  { %1849 = vmatpush1.bf16.msra.mxu0 %v9340_v29  ;;  %2620 = vmatprep.subr.bf16.mxu1 %v9363_v32  ;;  %v370_v29 = vpack.c.bf16 %v251_v26, %v244_v25  ;;  %v378_v30 = vpack.c.bf16 %v266_v28, %v259_v27  ;;  %v265_v32 = vld [vmem:[%s12557_s0 + $0x6c8] sm:$0xff]  ;;  %v128_v27 = vld [vmem:[%s12557_s0 + $0x280] sm:$0xff] }
  0x87   :  { %1850 = vmatprep.subr.bf16.mxu0 %v9351_v31  ;;  %2621 = vmatpush1.bf16.msra.mxu1 %v9361_v38  ;;  %v258_v31 = vld [vmem:[%s12557_s0 + $0x690] sm:$0xff]  ;;  %v57_v38 = vld [vmem:[%s12557_s0 + $0x48] sm:$0xff] }
  0x88   :  { %2622 = vmatprep.subr.bf16.mxu1 %v9366_v40  ;;  %v377_v35 = vpack.c.bf16 %v265_v32, %v258_v31  ;;  %v72_v40 = vld [vmem:[%s12557_s0 + $0xc0] sm:$0xff]  ;;  %v113_v25 = vld [vmem:[%s12557_s0 + $0x208] sm:$0xff] }
  0x89   :  { %v121_v26 = vld [vmem:[%s12557_s0 + $0x248] sm:$0xff]  ;;  %v9397_v28 = vld [vmem:[%s12558_s1 + $0x4e0] ss:$16 sps:$4 sm:$0xff]  }
  0x8a   :  { %1851 = vmatpush1.bf16.msra.mxu0 %v9349_v37  ;;  %v50_v37 = vld [vmem:[%s12557_s0 + $0x10] sm:$0xff]  ;;  %v9433_v31 = vld [vmem:[%s12558_s1 + $0x4e8] ss:$16 sps:$4 sm:$0xff]  }
  0x8b   :  { %1852 = vmatprep.subr.bf16.mxu0 %v9360_v39  ;;  %2623 = vmatpush1.bf16.msra.mxu1 %v9364_v44  ;;  %v65_v39 = vld [vmem:[%s12557_s0 + $0x88] sm:$0xff] }
  0x8c   :  { %1734 = vmatmul.mubr.bf16.gmra.mrb[28].mxu0 %v321_v41  ;;  %2506 = vmatmul.mubr.bf16.gmra.mrb[28].mxu1 %v321_v41  ;;  %v9376_v41 = vld [vmem:[%s12558_s1 + $0x400] ss:$16 sps:$4 sm:$0xff]   ;;  %v282_v44 = vpack.c.bf16 %v72_v40, %v65_v39  ;;  %v127_v39 = vld [vmem:[%s12557_s0 + $0x278] sm:$0xff] }
  0x8d   :  { %1743 = vmatprep.mubr.bf16.mxu0 %v329_v42  ;;  %2515 = vmatprep.mubr.bf16.mxu1 %v329_v42  ;;  %v274_v42 = vpack.c.bf16 %v57_v38, %v50_v37  ;;  %v9439_v37 = vld [vmem:[%s12558_s1 + $0x508] ss:$16 sps:$4 sm:$0xff]   ;;  %v120_v38 = vld [vmem:[%s12557_s0 + $0x240] sm:$0xff] }
  0x8e   :  { %1853 = vmatpush1.bf16.msra.mxu0 %v9358_v43  ;;  %2624 = vmatprep.subr.bf16.mxu1 %v9372_v46  ;;  %v9381_v43 = vld [vmem:[%s12558_s1 + $0x424] ss:$16 sps:$4 sm:$0xff]   ;;  %v135_v40 = vld [vmem:[%s12557_s0 + $0x2b8] sm:$0xff] }
  0x8f   :  { %1854 = vmatprep.subr.bf16.mxu0 %v9369_v45  ;;  %2625 = vmatpush1.bf16.msra.mxu1 %v9370_v52  ;;  %v9403_v45 = vld [vmem:[%s12558_s1 + $0x408] ss:$16 sps:$4 sm:$0xff]   ;;  %v64_v46 = vld [vmem:[%s12557_s0 + $0x80] sm:$0xff] }
  0x90   :  { %2626 = vmatprep.subr.bf16.mxu1 %v9375_v53  ;;  %v9384_v52 = vld [vmem:[%s12558_s1 + $0x444] ss:$16 sps:$4 sm:$0xff]   ;;  %v9406_v53 = vld [vmem:[%s12558_s1 + $0x428] ss:$16 sps:$4 sm:$0xff]  }
  0x92   :  { %1855 = vmatpush1.bf16.msra.mxu0 %v9367_v51  ;;  %v86_v51 = vld [vmem:[%s12557_s0 + $0x130] sm:$0xff] }
  0x93   :  { %2017 = vmatprep.subr.bf16.mxu0 %v9378_v54  ;;  %2627 = vmatpush1.bf16.msra.mxu1 %v9373_v57  ;;  %v281_v54 = vpack.c.bf16 %v71_v47, %v64_v46  ;;  %v289_v57 = vpack.c.bf16 %v86_v51, %v79_v50  ;;  %v309_v46 = vpack.c.bf16 %v127_v39, %v120_v38  ;;  %v9418_v47 = vld [vmem:[%s12558_s1 + $0x540] ss:$16 sps:$4 sm:$0xff]   ;;  %v9429_v50 = vld [vmem:[%s12558_s1 + $0x564] ss:$16 sps:$4 sm:$0xff]   ;;  %v9448_v51 = vld [vmem:[%s12558_s1 + $0x548] ss:$16 sps:$4 sm:$0xff]  }
  0x94   :  { %1744 = vmatmul.mubr.bf16.gmra.mrb[32].mxu0 %v328_v55  ;;  %2516 = vmatmul.mubr.bf16.gmra.mrb[32].mxu1 %v328_v55  ;;  %v9382_v55 = vld [vmem:[%s12558_s1 + $0x440] ss:$16 sps:$4 sm:$0xff]   ;;  %v211_v39 = vld [vmem:[%s12557_s0 + $0x518] sm:$0xff] }
  0x95   :  { %1753 = vmatprep.mubr.bf16.mxu0 %v336_v56  ;;  %2525 = vmatprep.mubr.bf16.mxu1 %v336_v56  ;;  %v9414_v56 = vld [vmem:[%s12558_s1 + $0x44c] ss:$16 sps:$4 sm:$0xff]   ;;  %v204_v38 = vld [vmem:[%s12557_s0 + $0x4e0] sm:$0xff] }
  0x96   :  { %2789 = vmatprep.subr.bf16.mxu1 %v9405_v59  ;;  %v9412_v59 = vld [vmem:[%s12558_s1 + $0x448] ss:$16 sps:$4 sm:$0xff]  }
  0x9c   :  { %1754 = vmatmul.mubr.bf16.gmra.mrb[36].mxu0 %v335_v63  ;;  %2526 = vmatmul.mubr.bf16.gmra.mrb[36].mxu1 %v335_v63  ;;  %v100_v63 = vld [vmem:[%s12557_s0 + $0x1a0] sm:$0xff] }
  0x9d   :  { %1763 = vmatprep.mubr.bf16.mxu0 %v343_v0  ;;  %2535 = vmatprep.mubr.bf16.mxu1 %v343_v0  ;;  %v9385_v0 = vld [vmem:[%s12558_s1 + $0x460] ss:$16 sps:$4 sm:$0xff]   ;;  %v296_v7 = vpack.c.bf16 %v100_v63, %v93_v62  ;;  %v9459_v62 = vld [vmem:[%s12558_s1 + $0x58c] ss:$16 sps:$4 sm:$0xff]  }
  0xa4   :  { %1764 = vmatmul.mubr.bf16.gmra.mrb[40].mxu0 %v342_v5  ;;  %2536 = vmatmul.mubr.bf16.gmra.mrb[40].mxu1 %v342_v5  ;;  %v9388_v5 = vld [vmem:[%s12558_s1 + $0x480] ss:$16 sps:$4 sm:$0xff]  }
  0xa5   :  { %1773 = vmatprep.mubr.bf16.mxu0 %v350_v6  ;;  %2545 = vmatprep.mubr.bf16.mxu1 %v350_v6  ;;  %v9423_v6 = vld [vmem:[%s12558_s1 + $0x48c] ss:$16 sps:$4 sm:$0xff]  }
  0xac   :  { %1774 = vmatmul.mubr.bf16.gmra.mrb[44].mxu0 %v349_v11  ;;  %2546 = vmatmul.mubr.bf16.gmra.mrb[44].mxu1 %v349_v11  ;;  %v99_v11 = vld [vmem:[%s12557_s0 + $0x198] sm:$0xff] }
  0xad   :  { %1783 = vmatprep.mubr.bf16.mxu0 %v357_v12  ;;  %2555 = vmatprep.mubr.bf16.mxu1 %v357_v12  ;;  %v107_v12 = vld [vmem:[%s12557_s0 + $0x1d8] sm:$0xff] }
  0xae   :  { %v303_v21 = vpack.c.bf16 %v114_v13, %v107_v12  ;;  %v9468_v12 = vld [vmem:[%s12558_s1 + $0x5cc] ss:$16 sps:$4 sm:$0xff]  }
  0xb4   :  { %1784 = vmatmul.mubr.bf16.gmra.mrb[48].mxu0 %v356_v17  ;;  %2556 = vmatmul.mubr.bf16.gmra.mrb[48].mxu1 %v356_v17  ;;  %v9424_v17 = vld [vmem:[%s12558_s1 + $0x4a8] ss:$16 sps:$4 sm:$0xff]  }
  0xb5   :  { %1793 = vmatprep.mubr.bf16.mxu0 %v364_v18  ;;  %2565 = vmatprep.mubr.bf16.mxu1 %v364_v18  ;;  %v295_v18 = vpack.c.bf16 %v99_v11, %v92_v10  ;;  %v9454_v11 = vld [vmem:[%s12558_s1 + $0x5c0] ss:$16 sps:$4 sm:$0xff]  }
  0xbc   :  { %1794 = vmatmul.mubr.bf16.gmra.mrb[52].mxu0 %v363_v23  ;;  %2566 = vmatmul.mubr.bf16.gmra.mrb[52].mxu1 %v363_v23  ;;  %v9430_v23 = vld [vmem:[%s12558_s1 + $0x4c8] ss:$16 sps:$4 sm:$0xff]  }
  0xbd   :  { %1803 = vmatprep.mubr.bf16.mxu0 %v371_v24  ;;  %2575 = vmatprep.mubr.bf16.mxu1 %v371_v24  ;;  %v106_v24 = vld [vmem:[%s12557_s0 + $0x1d0] sm:$0xff] }
  0xbe   :  { %v302_v32 = vpack.c.bf16 %v113_v25, %v106_v24 }
  0xc4   :  { %1804 = vmatmul.mubr.bf16.gmra.mrb[56].mxu0 %v370_v29  ;;  %2576 = vmatmul.mubr.bf16.gmra.mrb[56].mxu1 %v370_v29  ;;  %v9435_v29 = vld [vmem:[%s12558_s1 + $0x4ec] ss:$16 sps:$4 sm:$0xff]  }
  0xc5   :  { %1813 = vmatprep.mubr.bf16.mxu0 %v378_v30  ;;  %2585 = vmatprep.mubr.bf16.mxu1 %v378_v30  ;;  %v9402_v30 = vld [vmem:[%s12558_s1 + $0x504] ss:$16 sps:$4 sm:$0xff]  }
  0xcc   :  { %1814 = vmatmul.mubr.bf16.gmra.mrb[60].mxu0 %v377_v35  ;;  %2586 = vmatmul.mubr.bf16.gmra.mrb[60].mxu1 %v377_v35  ;;  %v310_v35 = vpack.c.bf16 %v128_v27, %v121_v26  ;;  %v176_v26 = vld [vmem:[%s12557_s0 + $0x400] sm:$0xff]  ;;  %v183_v27 = vld [vmem:[%s12557_s0 + $0x438] sm:$0xff] }
  0xcd   :  { %1856 = vmatprep.mubr.bf16.mxu0 %v275_v36  ;;  %2628 = vmatprep.mubr.bf16.mxu1 %v275_v36  ;;  %v9411_v36 = vld [vmem:[%s12558_s1 + $0x524] ss:$16 sps:$4 sm:$0xff]  }
  0xd4   :  { %1857 = vmatmul.mubr.bf16.vlgmr.msra.gmra.mrb[0].mxu0 %v274_v42  ;;  %2629 = vmatmul.mubr.bf16.vlgmr.msra.gmra.mrb[0].mxu1 %v274_v42  ;;  %v9409_v42 = vld [vmem:[%s12558_s1 + $0x520] ss:$16 sps:$4 sm:$0xff]  }
  0xd5   :  { %2018 = vmatpush1.bf16.msra.mxu0 %v9376_v41  ;;  %1866 = vmatprep.mubr.bf16.mxu0 %v282_v44  ;;  %v142_v41 = vld [vmem:[%s12557_s0 + $0x2f0] sm:$0xff] }
  0xd6   :  { %2638 = vmatprep.mubr.bf16.mxu1 %v282_v44  ;;  %2019 = vmatprep.subr.bf16.mxu0 %v9381_v43  ;;  %v9444_v43 = vld [vmem:[%s12558_s1 + $0x52c] ss:$16 sps:$4 sm:$0xff]   ;;  %v9420_v44 = vld [vmem:[%s12558_s1 + $0x544] ss:$16 sps:$4 sm:$0xff]  }
  0xd7   :  { %2790 = vmatpush1.bf16.msra.mxu1 %v9403_v45  ;;  %v9442_v45 = vld [vmem:[%s12558_s1 + $0x528] ss:$16 sps:$4 sm:$0xff]  }
  0xd8   :  { %2791 = vmatprep.subr.bf16.mxu1 %v9408_v49  ;;  %v317_v49 = vpack.c.bf16 %v142_v41, %v135_v40  ;;  %v219_v40 = vld [vmem:[%s12557_s0 + $0x558] sm:$0xff]  ;;  %v226_v41 = vld [vmem:[%s12557_s0 + $0x590] sm:$0xff] }
  0xd9   :  { %2020 = vmatpush1.bf16.msra.mxu0 %v9379_v48  ;;  %v9450_v48 = vld [vmem:[%s12558_s1 + $0x54c] ss:$16 sps:$4 sm:$0xff]  }
  0xda   :  { %2021 = vmatprep.subr.bf16.mxu0 %v9384_v52  ;;  %v134_v52 = vld [vmem:[%s12557_s0 + $0x2b0] sm:$0xff] }
  0xdb   :  { %2792 = vmatpush1.bf16.msra.mxu1 %v9406_v53  ;;  %v141_v53 = vld [vmem:[%s12557_s0 + $0x2e8] sm:$0xff] }
  0xdc   :  { %1867 = vmatmul.mubr.bf16.gmra.mrb[4].mxu0 %v281_v54  ;;  %2639 = vmatmul.mubr.bf16.gmra.mrb[4].mxu1 %v281_v54  ;;  %v149_v54 = vld [vmem:[%s12557_s0 + $0x328] sm:$0xff]  ;;  %v316_v60 = vpack.c.bf16 %v141_v53, %v134_v52  ;;  %v247_v52 = vld [vmem:[%s12557_s0 + $0x638] sm:$0xff]  ;;  %v254_v53 = vld [vmem:[%s12557_s0 + $0x670] sm:$0xff] }
  0xdd   :  { %1876 = vmatprep.mubr.bf16.mxu0 %v289_v57  ;;  %2648 = vmatprep.mubr.bf16.mxu1 %v289_v57  ;;  %v9453_v57 = vld [vmem:[%s12558_s1 + $0x56c] ss:$16 sps:$4 sm:$0xff]  }
  0xde   :  { %2022 = vmatpush1.bf16.msra.mxu0 %v9382_v55  ;;  %2793 = vmatprep.subr.bf16.mxu1 %v9414_v56  ;;  %v156_v55 = vld [vmem:[%s12557_s0 + $0x360] sm:$0xff] }
  0xdf   :  { %2023 = vmatprep.subr.bf16.mxu0 %v9387_v58  ;;  %2794 = vmatpush1.bf16.msra.mxu1 %v9412_v59  ;;  %v9427_v56 = vld [vmem:[%s12558_s1 + $0x560] ss:$16 sps:$4 sm:$0xff]   ;;  %v9438_v58 = vld [vmem:[%s12558_s1 + $0x584] ss:$16 sps:$4 sm:$0xff]   ;;  %v9451_v59 = vld [vmem:[%s12558_s1 + $0x568] ss:$16 sps:$4 sm:$0xff]   ;;  %v324_v63 = vpack.c.bf16 %v156_v55, %v149_v54  ;;  %v373_v55 = vpack.c.bf16 %v254_v53, %v247_v52 }
  0xe0   :  { %2795 = vmatprep.subr.bf16.mxu1 %v9417_v1  ;;  %v9457_v1 = vld [vmem:[%s12558_s1 + $0x588] ss:$16 sps:$4 sm:$0xff]   ;;  %v172_v52 = vld [vmem:[%s12557_s0 + $0x3e0] sm:$0xff] }
  0xe2   :  { %2024 = vmatpush1.bf16.msra.mxu0 %v9385_v0  ;;  %v9447_v0 = vld [vmem:[%s12558_s1 + $0x5a4] ss:$16 sps:$4 sm:$0xff]  }
  0xe3   :  { %2025 = vmatprep.subr.bf16.mxu0 %v9390_v2  ;;  %2796 = vmatpush1.bf16.msra.mxu1 %v9415_v3  ;;  %v148_v2 = vld [vmem:[%s12557_s0 + $0x320] sm:$0xff]  ;;  %v155_v3 = vld [vmem:[%s12557_s0 + $0x358] sm:$0xff] }
  0xe4   :  { %1877 = vmatmul.mubr.bf16.gmra.mrb[8].mxu0 %v288_v4  ;;  %2649 = vmatmul.mubr.bf16.gmra.mrb[8].mxu1 %v288_v4  ;;  %v163_v4 = vld [vmem:[%s12557_s0 + $0x398] sm:$0xff]  ;;  %v323_v10 = vpack.c.bf16 %v155_v3, %v148_v2 }
  0xe5   :  { %1886 = vmatprep.mubr.bf16.mxu0 %v296_v7  ;;  %2658 = vmatprep.mubr.bf16.mxu1 %v296_v7  ;;  %v9462_v7 = vld [vmem:[%s12558_s1 + $0x5ac] ss:$16 sps:$4 sm:$0xff]  }
  0xe6   :  { %2026 = vmatpush1.bf16.msra.mxu0 %v9388_v5  ;;  %2797 = vmatprep.subr.bf16.mxu1 %v9423_v6  ;;  %v170_v5 = vld [vmem:[%s12557_s0 + $0x3d0] sm:$0xff] }
  0xe7   :  { %2027 = vmatprep.subr.bf16.mxu0 %v9393_v8  ;;  %2798 = vmatpush1.bf16.msra.mxu1 %v9421_v9  ;;  %v9445_v6 = vld [vmem:[%s12558_s1 + $0x5a0] ss:$16 sps:$4 sm:$0xff]   ;;  %v9456_v8 = vld [vmem:[%s12558_s1 + $0x5c4] ss:$16 sps:$4 sm:$0xff]   ;;  %v9460_v9 = vld [vmem:[%s12558_s1 + $0x5a8] ss:$16 sps:$4 sm:$0xff]   ;;  %v331_v13 = vpack.c.bf16 %v170_v5, %v163_v4 }
  0xe8   :  { %2799 = vmatprep.subr.bf16.mxu1 %v9426_v15  ;;  %v9466_v15 = vld [vmem:[%s12558_s1 + $0x5c8] ss:$16 sps:$4 sm:$0xff]   ;;  %v9477_v4 = vld [vmem:[%s12558_s1 + $0x60c] ss:$16 sps:$4 sm:$0xff]   ;;  %v52_v5 = vld [vmem:[%s12557_s0 + $0x20] sm:$0xff] }
  0xea   :  { %2028 = vmatpush1.bf16.msra.mxu0 %v9391_v14  ;;  %v9465_v14 = vld [vmem:[%s12558_s1 + $0x5e4] ss:$16 sps:$4 sm:$0xff]  }
  0xeb   :  { %2029 = vmatprep.subr.bf16.mxu0 %v9396_v16  ;;  %2800 = vmatpush1.bf16.msra.mxu1 %v9424_v17  ;;  %v162_v16 = vld [vmem:[%s12557_s0 + $0x390] sm:$0xff]  ;;  %v169_v17 = vld [vmem:[%s12557_s0 + $0x3c8] sm:$0xff] }
  0xec   :  { %1887 = vmatmul.mubr.bf16.gmra.mrb[12].mxu0 %v295_v18  ;;  %2659 = vmatmul.mubr.bf16.gmra.mrb[12].mxu1 %v295_v18  ;;  %v177_v18 = vld [vmem:[%s12557_s0 + $0x408] sm:$0xff]  ;;  %v330_v24 = vpack.c.bf16 %v169_v17, %v162_v16  ;;  %v88_v16 = vld [vmem:[%s12557_s0 + $0x140] sm:$0xff] }
  0xed   :  { %1896 = vmatprep.mubr.bf16.mxu0 %v303_v21  ;;  %2668 = vmatprep.mubr.bf16.mxu1 %v303_v21  ;;  %v9471_v21 = vld [vmem:[%s12558_s1 + $0x5ec] ss:$16 sps:$4 sm:$0xff]  }
  0xee   :  { %2030 = vmatpush1.bf16.msra.mxu0 %v9394_v19  ;;  %2801 = vmatprep.subr.bf16.mxu1 %v9432_v20  ;;  %v184_v19 = vld [vmem:[%s12557_s0 + $0x440] sm:$0xff] }
  0xef   :  { %2031 = vmatprep.subr.bf16.mxu0 %v9399_v22  ;;  %2802 = vmatpush1.bf16.msra.mxu1 %v9430_v23  ;;  %v9463_v20 = vld [vmem:[%s12558_s1 + $0x5e0] ss:$16 sps:$4 sm:$0xff]   ;;  %v9469_v22 = vld [vmem:[%s12558_s1 + $0x5e8] ss:$16 sps:$4 sm:$0xff]   ;;  %v9474_v23 = vld [vmem:[%s12558_s1 + $0x604] ss:$16 sps:$4 sm:$0xff]   ;;  %v338_v25 = vpack.c.bf16 %v184_v19, %v177_v18 }
  0xf0   :  { %2803 = vmatprep.subr.bf16.mxu1 %v9435_v29  ;;  %v198_v29 = vld [vmem:[%s12557_s0 + $0x4b0] sm:$0xff]  ;;  %v80_v19 = vld [vmem:[%s12557_s0 + $0x100] sm:$0xff] }
  0xf2   :  { %2032 = vmatpush1.bf16.msra.mxu0 %v9397_v28  ;;  %v191_v28 = vld [vmem:[%s12557_s0 + $0x478] sm:$0xff] }
  0xf3   :  { %2033 = vmatprep.subr.bf16.mxu0 %v9402_v30  ;;  %2804 = vmatpush1.bf16.msra.mxu1 %v9433_v31  ;;  %v337_v30 = vpack.c.bf16 %v183_v27, %v176_v26  ;;  %v345_v31 = vpack.c.bf16 %v198_v29, %v191_v28  ;;  %v101_v26 = vld [vmem:[%s12557_s0 + $0x1a8] sm:$0xff]  ;;  %v116_v28 = vld [vmem:[%s12557_s0 + $0x220] sm:$0xff] }
  0xf4   :  { %1897 = vmatmul.mubr.bf16.gmra.mrb[16].mxu0 %v302_v32  ;;  %2669 = vmatmul.mubr.bf16.gmra.mrb[16].mxu1 %v302_v32  ;;  %v190_v32 = vld [vmem:[%s12557_s0 + $0x470] sm:$0xff]  ;;  %v109_v27 = vld [vmem:[%s12557_s0 + $0x1e8] sm:$0xff] }
  0xf5   :  { %1906 = vmatprep.mubr.bf16.mxu0 %v310_v35  ;;  %2678 = vmatprep.mubr.bf16.mxu1 %v310_v35  ;;  %v212_v35 = vld [vmem:[%s12557_s0 + $0x520] sm:$0xff] }
  0xf6   :  { %2034 = vmatpush1.bf16.msra.mxu0 %v9400_v33  ;;  %2805 = vmatprep.subr.bf16.mxu1 %v9441_v34  ;;  %v197_v33 = vld [vmem:[%s12557_s0 + $0x4a8] sm:$0xff] }
  0xf7   :  { %2035 = vmatprep.subr.bf16.mxu0 %v9411_v36  ;;  %2806 = vmatpush1.bf16.msra.mxu1 %v9439_v37  ;;  %v205_v34 = vld [vmem:[%s12557_s0 + $0x4e8] sm:$0xff]  ;;  %v344_v36 = vpack.c.bf16 %v197_v33, %v190_v32  ;;  %v115_v32 = vld [vmem:[%s12557_s0 + $0x218] sm:$0xff] }
  0xf8   :  { %2807 = vmatprep.subr.bf16.mxu1 %v9444_v43  ;;  %v352_v37 = vpack.c.bf16 %v212_v35, %v205_v34  ;;  %v359_v43 = vpack.c.bf16 %v226_v41, %v219_v40  ;;  %v123_v33 = vld [vmem:[%s12557_s0 + $0x258] sm:$0xff]  ;;  %v130_v34 = vld [vmem:[%s12557_s0 + $0x290] sm:$0xff]  ;;  %v144_v40 = vld [vmem:[%s12557_s0 + $0x300] sm:$0xff] }
  0xfa   :  { %2036 = vmatpush1.bf16.msra.mxu0 %v9409_v42  ;;  %v351_v42 = vpack.c.bf16 %v211_v39, %v204_v38  ;;  %v129_v38 = vld [vmem:[%s12557_s0 + $0x288] sm:$0xff] }
  0xfb   :  { %2037 = vmatprep.subr.bf16.mxu0 %v9420_v44  ;;  %2808 = vmatpush1.bf16.msra.mxu1 %v9442_v45  ;;  %v218_v44 = vld [vmem:[%s12557_s0 + $0x550] sm:$0xff]  ;;  %v225_v45 = vld [vmem:[%s12557_s0 + $0x588] sm:$0xff] }
  0xfc   :  { %1907 = vmatmul.mubr.bf16.gmra.mrb[20].mxu0 %v309_v46  ;;  %2679 = vmatmul.mubr.bf16.gmra.mrb[20].mxu1 %v309_v46  ;;  %v233_v46 = vld [vmem:[%s12557_s0 + $0x5c8] sm:$0xff] }
  0xfd   :  { %1916 = vmatprep.mubr.bf16.mxu0 %v317_v49  ;;  %2688 = vmatprep.mubr.bf16.mxu1 %v317_v49  ;;  %v137_v39 = vld [vmem:[%s12557_s0 + $0x2c8] sm:$0xff] }
  0xfe   :  { %2038 = vmatpush1.bf16.msra.mxu0 %v9418_v47  ;;  %2809 = vmatprep.subr.bf16.mxu1 %v9450_v48  ;;  %v240_v47 = vld [vmem:[%s12557_s0 + $0x600] sm:$0xff]  ;;  %v358_v48 = vpack.c.bf16 %v225_v45, %v218_v44  ;;  %v143_v44 = vld [vmem:[%s12557_s0 + $0x2f8] sm:$0xff] }
  0xff   :  { %2039 = vmatprep.subr.bf16.mxu0 %v9429_v50  ;;  %2810 = vmatpush1.bf16.msra.mxu1 %v9448_v51  ;;  %v366_v49 = vpack.c.bf16 %v240_v47, %v233_v46  ;;  %v232_v50 = vld [vmem:[%s12557_s0 + $0x5c0] sm:$0xff]  ;;  %v239_v51 = vld [vmem:[%s12557_s0 + $0x5f8] sm:$0xff]  ;;  %v158_v46 = vld [vmem:[%s12557_s0 + $0x370] sm:$0xff] }
 0x100   :  { %2811 = vmatprep.subr.bf16.mxu1 %v9453_v57  ;;  %v365_v54 = vpack.c.bf16 %v239_v51, %v232_v50  ;;  %v253_v57 = vld [vmem:[%s12557_s0 + $0x668] sm:$0xff]  ;;  %v151_v45 = vld [vmem:[%s12557_s0 + $0x338] sm:$0xff] }
 0x101   :  { %v157_v50 = vld [vmem:[%s12557_s0 + $0x368] sm:$0xff] }
 0x102   :  { %2040 = vmatpush1.bf16.msra.mxu0 %v9427_v56  ;;  %v246_v56 = vld [vmem:[%s12557_s0 + $0x630] sm:$0xff]  ;;  %v165_v51 = vld [vmem:[%s12557_s0 + $0x3a8] sm:$0xff] }
 0x103   :  { %2041 = vmatprep.subr.bf16.mxu0 %v9438_v58  ;;  %2812 = vmatpush1.bf16.msra.mxu1 %v9451_v59  ;;  %v261_v58 = vld [vmem:[%s12557_s0 + $0x6a8] sm:$0xff]  ;;  %v268_v59 = vld [vmem:[%s12557_s0 + $0x6e0] sm:$0xff] }
 0x104   :  { %1917 = vmatmul.mubr.bf16.gmra.mrb[24].mxu0 %v316_v60  ;;  %2689 = vmatmul.mubr.bf16.gmra.mrb[24].mxu1 %v316_v60  ;;  %v372_v60 = vpack.c.bf16 %v253_v57, %v246_v56  ;;  %v171_v56 = vld [vmem:[%s12557_s0 + $0x3d8] sm:$0xff] }
 0x105   :  { %1926 = vmatprep.mubr.bf16.mxu0 %v324_v63  ;;  %2698 = vmatprep.mubr.bf16.mxu1 %v324_v63  ;;  %v267_v63 = vld [vmem:[%s12557_s0 + $0x6d8] sm:$0xff] }
 0x106   :  { %2042 = vmatpush1.bf16.msra.mxu0 %v9436_v61  ;;  %2813 = vmatprep.subr.bf16.mxu1 %v9459_v62  ;;  %v380_v61 = vpack.c.bf16 %v268_v59, %v261_v58  ;;  %v260_v62 = vld [vmem:[%s12557_s0 + $0x6a0] sm:$0xff]  ;;  %v179_v57 = vld [vmem:[%s12557_s0 + $0x418] sm:$0xff]  ;;  %v186_v58 = vld [vmem:[%s12557_s0 + $0x450] sm:$0xff] }
 0x107   :  { %2043 = vmatprep.subr.bf16.mxu0 %v9447_v0  ;;  %2814 = vmatpush1.bf16.msra.mxu1 %v9457_v1  ;;  %v53_v0 = vld [vmem:[%s12557_s0 + $0x28] sm:$0xff]  ;;  %v60_v1 = vld [vmem:[%s12557_s0 + $0x60] sm:$0xff]  ;;  %v379_v2 = vpack.c.bf16 %v267_v63, %v260_v62 }
 0x108   :  { %2815 = vmatprep.subr.bf16.mxu1 %v9462_v7  ;;  %v277_v3 = vpack.c.bf16 %v60_v1, %v53_v0  ;;  %v67_v7 = vld [vmem:[%s12557_s0 + $0x98] sm:$0xff]  ;;  %v185_v62 = vld [vmem:[%s12557_s0 + $0x448] sm:$0xff]  ;;  %v200_v0 = vld [vmem:[%s12557_s0 + $0x4c0] sm:$0xff] }
 0x109   :  { %v193_v63 = vld [vmem:[%s12557_s0 + $0x488] sm:$0xff] }
 0x10a   :  { %2044 = vmatpush1.bf16.msra.mxu0 %v9445_v6  ;;  %v59_v6 = vld [vmem:[%s12557_s0 + $0x58] sm:$0xff] }
 0x10b   :  { %2045 = vmatprep.subr.bf16.mxu0 %v9456_v8  ;;  %2816 = vmatpush1.bf16.msra.mxu1 %v9460_v9  ;;  %v74_v8 = vld [vmem:[%s12557_s0 + $0xd0] sm:$0xff]  ;;  %v276_v9 = vpack.c.bf16 %v59_v6, %v52_v5  ;;  %v207_v5 = vld [vmem:[%s12557_s0 + $0x4f8] sm:$0xff] }
 0x10c   :  { %1927 = vmatmul.mubr.bf16.gmra.mrb[28].mxu0 %v323_v10  ;;  %2699 = vmatmul.mubr.bf16.gmra.mrb[28].mxu1 %v323_v10  ;;  %v9472_v10 = vld [vmem:[%s12558_s1 + $0x600] ss:$16 sps:$4 sm:$0xff]  }
 0x10d   :  { %1936 = vmatprep.mubr.bf16.mxu0 %v331_v13  ;;  %2708 = vmatprep.mubr.bf16.mxu1 %v331_v13  ;;  %v66_v13 = vld [vmem:[%s12557_s0 + $0x90] sm:$0xff] }
 0x10e   :  { %2046 = vmatpush1.bf16.msra.mxu0 %v9454_v11  ;;  %2817 = vmatprep.subr.bf16.mxu1 %v9468_v12  ;;  %v284_v11 = vpack.c.bf16 %v74_v8, %v67_v7  ;;  %v9475_v12 = vld [vmem:[%s12558_s1 + $0x608] ss:$16 sps:$4 sm:$0xff]   ;;  %v214_v6 = vld [vmem:[%s12557_s0 + $0x530] sm:$0xff] }
 0x10f   :  { %2047 = vmatprep.subr.bf16.mxu0 %v9465_v14  ;;  %2818 = vmatpush1.bf16.msra.mxu1 %v9466_v15  ;;  %v73_v14 = vld [vmem:[%s12557_s0 + $0xc8] sm:$0xff]  ;;  %v354_v8 = vpack.c.bf16 %v214_v6, %v207_v5  ;;  %v103_v5 = vld [vmem:[%s12557_s0 + $0x1b8] sm:$0xff]  ;;  %v9493_v6 = vld [vmem:[%s12560_s3 + $0xa0] ss:$16 sps:$4 sm:$0xff]  }
 0x110   :  { %2819 = vmatprep.subr.bf16.mxu1 %v9471_v21  ;;  %v81_v15 = vld [vmem:[%s12557_s0 + $0x108] sm:$0xff]  ;;  %v283_v17 = vpack.c.bf16 %v73_v14, %v66_v13  ;;  %v95_v21 = vld [vmem:[%s12557_s0 + $0x178] sm:$0xff] }
 0x111   :  { %v291_v18 = vpack.c.bf16 %v88_v16, %v81_v15  ;;  %v9480_v15 = vld [vmem:[%s12560_s3 + $0x4] ss:$16 sps:$4 sm:$0xff]  }
 0x112   :  { %2048 = vmatpush1.bf16.msra.mxu0 %v9463_v20  ;;  %v87_v20 = vld [vmem:[%s12557_s0 + $0x138] sm:$0xff]  ;;  %v220_v16 = vld [vmem:[%s12557_s0 + $0x560] sm:$0xff] }
 0x113   :  { %2820 = vmatpush1.bf16.msra.mxu1 %v9469_v22  ;;  %2210 = vmatprep.subr.bf16.mxu0 %v9474_v23  ;;  %v102_v22 = vld [vmem:[%s12557_s0 + $0x1b0] sm:$0xff]  ;;  %v290_v23 = vpack.c.bf16 %v87_v20, %v80_v19 }
 0x114   :  { %1937 = vmatmul.mubr.bf16.gmra.mrb[32].mxu0 %v330_v24  ;;  %2709 = vmatmul.mubr.bf16.gmra.mrb[32].mxu1 %v330_v24  ;;  %v298_v24 = vpack.c.bf16 %v102_v22, %v95_v21  ;;  %v242_v19 = vld [vmem:[%s12557_s0 + $0x610] sm:$0xff] }
 0x115   :  { %1946 = vmatprep.mubr.bf16.mxu0 %v338_v25  ;;  %2718 = vmatprep.mubr.bf16.mxu1 %v338_v25  ;;  %v94_v25 = vld [vmem:[%s12557_s0 + $0x170] sm:$0xff] }
 0x116   :  { %2982 = vmatprep.subr.bf16.mxu1 %v9477_v4  ;;  %v297_v29 = vpack.c.bf16 %v101_v26, %v94_v25  ;;  %v199_v4 = vld [vmem:[%s12557_s0 + $0x4b8] sm:$0xff]  ;;  %v234_v22 = vld [vmem:[%s12557_s0 + $0x5d0] sm:$0xff]  ;;  %v256_v25 = vld [vmem:[%s12557_s0 + $0x680] sm:$0xff] }
 0x11c   :  { %1947 = vmatmul.mubr.bf16.gmra.mrb[36].mxu0 %v337_v30  ;;  %2719 = vmatmul.mubr.bf16.gmra.mrb[36].mxu1 %v337_v30  ;;  %v305_v30 = vpack.c.bf16 %v116_v28, %v109_v27  ;;  %v248_v28 = vld [vmem:[%s12557_s0 + $0x640] sm:$0xff] }
 0x11d   :  { %1956 = vmatprep.mubr.bf16.mxu0 %v345_v31  ;;  %2728 = vmatprep.mubr.bf16.mxu1 %v345_v31  ;;  %v108_v31 = vld [vmem:[%s12557_s0 + $0x1e0] sm:$0xff] }
 0x11e   :  { %v304_v35 = vpack.c.bf16 %v115_v32, %v108_v31  ;;  %v270_v31 = vld [vmem:[%s12557_s0 + $0x6f0] sm:$0xff] }
 0x124   :  { %1957 = vmatmul.mubr.bf16.gmra.mrb[40].mxu0 %v344_v36  ;;  %2729 = vmatmul.mubr.bf16.gmra.mrb[40].mxu1 %v344_v36  ;;  %v312_v36 = vpack.c.bf16 %v130_v34, %v123_v33  ;;  %v262_v34 = vld [vmem:[%s12557_s0 + $0x6b0] sm:$0xff] }
 0x125   :  { %1966 = vmatprep.mubr.bf16.mxu0 %v352_v37  ;;  %2738 = vmatprep.mubr.bf16.mxu1 %v352_v37  ;;  %v122_v37 = vld [vmem:[%s12557_s0 + $0x250] sm:$0xff] }
 0x126   :  { %v311_v41 = vpack.c.bf16 %v129_v38, %v122_v37  ;;  %v9945_v37 = vmov 0   ;;  %v54_v38 = vld [vmem:[%s12557_s0 + $0x30] sm:$0xff] }
 0x12c   :  { %1967 = vmatmul.mubr.bf16.gmra.mrb[44].mxu0 %v351_v42  ;;  %2739 = vmatmul.mubr.bf16.gmra.mrb[44].mxu1 %v351_v42  ;;  %v319_v42 = vpack.c.bf16 %v144_v40, %v137_v39  ;;  %v61_v39 = vld [vmem:[%s12557_s0 + $0x68] sm:$0xff] }
 0x12d   :  { %1976 = vmatprep.mubr.bf16.mxu0 %v359_v43  ;;  %2748 = vmatprep.mubr.bf16.mxu1 %v359_v43  ;;  %v136_v43 = vld [vmem:[%s12557_s0 + $0x2c0] sm:$0xff]  ;;  %v9507_v40 = vld [vmem:[%s12560_s3 + $0xc] ss:$16 sps:$4 sm:$0xff]  }
 0x12e   :  { %v318_v47 = vpack.c.bf16 %v143_v44, %v136_v43  ;;  %v9505_v43 = vld [vmem:[%s12560_s3 + $0x8] ss:$16 sps:$4 sm:$0xff]   ;;  %v9483_v44 = vld [vmem:[%s12560_s3 + $0x24] ss:$16 sps:$4 sm:$0xff]  }
 0x134   :  { %1977 = vmatmul.mubr.bf16.gmra.mrb[48].mxu0 %v358_v48  ;;  %2749 = vmatmul.mubr.bf16.gmra.mrb[48].mxu1 %v358_v48  ;;  %v326_v48 = vpack.c.bf16 %v158_v46, %v151_v45  ;;  %v9510_v45 = vld [vmem:[%s12560_s3 + $0x2c] ss:$16 sps:$4 sm:$0xff]   ;;  %v68_v46 = vld [vmem:[%s12557_s0 + $0xa0] sm:$0xff] }
 0x135   :  { %1986 = vmatprep.mubr.bf16.mxu0 %v366_v49  ;;  %2758 = vmatprep.mubr.bf16.mxu1 %v366_v49  ;;  %v150_v49 = vld [vmem:[%s12557_s0 + $0x330] sm:$0xff] }
 0x136   :  { %v325_v53 = vpack.c.bf16 %v157_v50, %v150_v49  ;;  %v9508_v49 = vld [vmem:[%s12560_s3 + $0x28] ss:$16 sps:$4 sm:$0xff]   ;;  %v9486_v50 = vld [vmem:[%s12560_s3 + $0x44] ss:$16 sps:$4 sm:$0xff]  }
 0x13c   :  { %1987 = vmatmul.mubr.bf16.gmra.mrb[52].mxu0 %v365_v54  ;;  %2759 = vmatmul.mubr.bf16.gmra.mrb[52].mxu1 %v365_v54  ;;  %v333_v54 = vpack.c.bf16 %v172_v52, %v165_v51  ;;  %v9516_v51 = vld [vmem:[%s12560_s3 + $0x4c] ss:$16 sps:$4 sm:$0xff]  }
 0x13d   :  { %1996 = vmatprep.mubr.bf16.mxu0 %v373_v55  ;;  %2768 = vmatprep.mubr.bf16.mxu1 %v373_v55  ;;  %v164_v55 = vld [vmem:[%s12557_s0 + $0x3a0] sm:$0xff] }
 0x13e   :  { %v332_v59 = vpack.c.bf16 %v171_v56, %v164_v55  ;;  %v9489_v55 = vld [vmem:[%s12560_s3 + $0x64] ss:$16 sps:$4 sm:$0xff]   ;;  %v9519_v56 = vld [vmem:[%s12560_s3 + $0x6c] ss:$16 sps:$4 sm:$0xff]  }
 0x144   :  { %1997 = vmatmul.mubr.bf16.gmra.mrb[56].mxu0 %v372_v60  ;;  %2769 = vmatmul.mubr.bf16.gmra.mrb[56].mxu1 %v372_v60  ;;  %v340_v60 = vpack.c.bf16 %v186_v58, %v179_v57  ;;  %v82_v57 = vld [vmem:[%s12557_s0 + $0x110] sm:$0xff]  ;;  %v89_v58 = vld [vmem:[%s12557_s0 + $0x148] sm:$0xff] }
 0x145   :  { %2006 = vmatprep.mubr.bf16.mxu0 %v380_v61  ;;  %2778 = vmatprep.mubr.bf16.mxu1 %v380_v61  ;;  %v178_v61 = vld [vmem:[%s12557_s0 + $0x410] sm:$0xff] }
 0x146   :  { %v339_v1 = vpack.c.bf16 %v185_v62, %v178_v61  ;;  %v9492_v61 = vld [vmem:[%s12560_s3 + $0x84] ss:$16 sps:$4 sm:$0xff]   ;;  %v9525_v62 = vld [vmem:[%s12560_s3 + $0x8c] ss:$16 sps:$4 sm:$0xff]  }
 0x14c   :  { %2007 = vmatmul.mubr.bf16.gmra.mrb[60].mxu0 %v379_v2  ;;  %2779 = vmatmul.mubr.bf16.gmra.mrb[60].mxu1 %v379_v2  ;;  %v347_v2 = vpack.c.bf16 %v200_v0, %v193_v63  ;;  %v292_v63 = vpack.c.bf16 %v89_v58, %v82_v57  ;;  %v9490_v0 = vld [vmem:[%s12560_s3 + $0x80] ss:$16 sps:$4 sm:$0xff]   ;;  %v173_v57 = vld [vmem:[%s12557_s0 + $0x3e8] sm:$0xff] }
 0x14d   :  { %2049 = vmatprep.mubr.bf16.mxu0 %v277_v3  ;;  %2821 = vmatprep.mubr.bf16.mxu1 %v277_v3  ;;  %v192_v3 = vld [vmem:[%s12557_s0 + $0x480] sm:$0xff] }
 0x14e   :  { %v346_v7 = vpack.c.bf16 %v199_v4, %v192_v3  ;;  %v9528_v3 = vld [vmem:[%s12560_s3 + $0xac] ss:$16 sps:$4 sm:$0xff]   ;;  %v96_v4 = vld [vmem:[%s12557_s0 + $0x180] sm:$0xff] }
 0x154   :  { %2050 = vmatmul.mubr.bf16.vlgmr.msra.gmra.mrb[0].mxu0 %v276_v9  ;;  %2822 = vmatmul.mubr.bf16.vlgmr.msra.gmra.mrb[0].mxu1 %v276_v9  ;;  %v206_v9 = vld [vmem:[%s12557_s0 + $0x4f0] sm:$0xff] }
 0x155   :  { %2211 = vmatpush1.bf16.msra.mxu0 %v9472_v10  ;;  %2059 = vmatprep.mubr.bf16.mxu0 %v284_v11  ;;  %v213_v10 = vld [vmem:[%s12557_s0 + $0x528] sm:$0xff] }
 0x156   :  { %2831 = vmatprep.mubr.bf16.mxu1 %v284_v11  ;;  %2983 = vmatpush1.bf16.msra.mxu1 %v9475_v12  ;;  %v221_v11 = vld [vmem:[%s12557_s0 + $0x568] sm:$0xff]  ;;  %v228_v12 = vld [vmem:[%s12557_s0 + $0x5a0] sm:$0xff]  ;;  %v353_v13 = vpack.c.bf16 %v213_v10, %v206_v9  ;;  %v299_v10 = vpack.c.bf16 %v103_v5, %v96_v4 }
 0x157   :  { %v361_v14 = vpack.c.bf16 %v228_v12, %v221_v11  ;;  %4029 = vmatprep.subr.bf16.mxu0 %v9480_v15  ;;  %4415 = vmatprep.subr.bf16.mxu1 %v9507_v40  ;;  %v9534_v9 = vld [vmem:[%s12560_s3 + $0xcc] ss:$16 sps:$4 sm:$0xff]   ;;  %v9496_v11 = vld [vmem:[%s12560_s3 + $0xc0] ss:$16 sps:$4 sm:$0xff]   ;;  %v9532_v12 = vld [vmem:[%s12560_s3 + $0xc8] ss:$16 sps:$4 sm:$0xff]  }
 0x158   :  { %v110_v15 = vld [vmem:[%s12557_s0 + $0x1f0] sm:$0xff]  ;;  %v9568_v4 = vld [vmem:[%s12560_s3 + $0x1c8] ss:$16 sps:$4 sm:$0xff]  }
 0x159   :  { %v9529_v40 = vld [vmem:[%s12560_s3 + $0x160] ss:$16 sps:$4 sm:$0xff]  }
 0x15c   :  { %2060 = vmatmul.mubr.bf16.gmra.mrb[4].mxu0 %v283_v17  ;;  %2832 = vmatmul.mubr.bf16.gmra.mrb[4].mxu1 %v283_v17  ;;  %v227_v17 = vld [vmem:[%s12557_s0 + $0x598] sm:$0xff] }
 0x15d   :  { %2069 = vmatprep.mubr.bf16.mxu0 %v291_v18  ;;  %2841 = vmatprep.mubr.bf16.mxu1 %v291_v18  ;;  %v235_v18 = vld [vmem:[%s12557_s0 + $0x5d8] sm:$0xff]  ;;  %v360_v20 = vpack.c.bf16 %v227_v17, %v220_v16  ;;  %v117_v16 = vld [vmem:[%s12557_s0 + $0x228] sm:$0xff]  ;;  %v9499_v17 = vld [vmem:[%s12560_s3 + $0xe0] ss:$16 sps:$4 sm:$0xff]  }
 0x15e   :  { %v368_v21 = vpack.c.bf16 %v242_v19, %v235_v18  ;;  %v9535_v18 = vld [vmem:[%s12560_s3 + $0xe8] ss:$16 sps:$4 sm:$0xff]   ;;  %v9504_v19 = vld [vmem:[%s12560_s3 + $0x104] ss:$16 sps:$4 sm:$0xff]  }
 0x164   :  { %2070 = vmatmul.mubr.bf16.gmra.mrb[8].mxu0 %v290_v23  ;;  %2842 = vmatmul.mubr.bf16.gmra.mrb[8].mxu1 %v290_v23  ;;  %v241_v23 = vld [vmem:[%s12557_s0 + $0x608] sm:$0xff] }
 0x165   :  { %2079 = vmatprep.mubr.bf16.mxu0 %v298_v24  ;;  %2851 = vmatprep.mubr.bf16.mxu1 %v298_v24  ;;  %v249_v24 = vld [vmem:[%s12557_s0 + $0x648] sm:$0xff]  ;;  %v367_v26 = vpack.c.bf16 %v241_v23, %v234_v22  ;;  %v9502_v22 = vld [vmem:[%s12560_s3 + $0x100] ss:$16 sps:$4 sm:$0xff]  }
 0x166   :  { %v375_v27 = vpack.c.bf16 %v256_v25, %v249_v24  ;;  %v9541_v23 = vld [vmem:[%s12560_s3 + $0x108] ss:$16 sps:$4 sm:$0xff]   ;;  %v9513_v24 = vld [vmem:[%s12560_s3 + $0x124] ss:$16 sps:$4 sm:$0xff]   ;;  %v9546_v25 = vld [vmem:[%s12560_s3 + $0x12c] ss:$16 sps:$4 sm:$0xff]  }
 0x16c   :  { %2080 = vmatmul.mubr.bf16.gmra.mrb[12].mxu0 %v297_v29  ;;  %2852 = vmatmul.mubr.bf16.gmra.mrb[12].mxu1 %v297_v29  ;;  %v255_v29 = vld [vmem:[%s12557_s0 + $0x678] sm:$0xff] }
 0x16d   :  { %2089 = vmatprep.mubr.bf16.mxu0 %v305_v30  ;;  %2861 = vmatprep.mubr.bf16.mxu1 %v305_v30  ;;  %v263_v30 = vld [vmem:[%s12557_s0 + $0x6b8] sm:$0xff]  ;;  %v374_v32 = vpack.c.bf16 %v255_v29, %v248_v28  ;;  %v9511_v28 = vld [vmem:[%s12560_s3 + $0x120] ss:$16 sps:$4 sm:$0xff]  }
 0x16e   :  { %v382_v33 = vpack.c.bf16 %v270_v31, %v263_v30  ;;  %v9544_v29 = vld [vmem:[%s12560_s3 + $0x128] ss:$16 sps:$4 sm:$0xff]   ;;  %v9522_v30 = vld [vmem:[%s12560_s3 + $0x144] ss:$16 sps:$4 sm:$0xff]   ;;  %v9552_v31 = vld [vmem:[%s12560_s3 + $0x14c] ss:$16 sps:$4 sm:$0xff]  }
 0x174   :  { %2090 = vmatmul.mubr.bf16.gmra.mrb[16].mxu0 %v304_v35  ;;  %2862 = vmatmul.mubr.bf16.gmra.mrb[16].mxu1 %v304_v35  ;;  %v269_v35 = vld [vmem:[%s12557_s0 + $0x6e8] sm:$0xff] }
 0x175   :  { %2099 = vmatprep.mubr.bf16.mxu0 %v312_v36  ;;  %2871 = vmatprep.mubr.bf16.mxu1 %v312_v36  ;;  %v381_v36 = vpack.c.bf16 %v269_v35, %v262_v34  ;;  %v9550_v34 = vld [vmem:[%s12560_s3 + $0x148] ss:$16 sps:$4 sm:$0xff]   ;;  %v9531_v35 = vld [vmem:[%s12560_s3 + $0x164] ss:$16 sps:$4 sm:$0xff]  }
 0x17c   :  { %2100 = vmatmul.mubr.bf16.gmra.mrb[20].mxu0 %v311_v41  ;;  %2872 = vmatmul.mubr.bf16.gmra.mrb[20].mxu1 %v311_v41  ;;  %v278_v41 = vpack.c.bf16 %v61_v39, %v54_v38  ;;  %v138_v38 = vld [vmem:[%s12557_s0 + $0x2d0] sm:$0xff]  ;;  %v145_v39 = vld [vmem:[%s12557_s0 + $0x308] sm:$0xff] }
 0x17d   :  { %2109 = vmatprep.mubr.bf16.mxu0 %v319_v42  ;;  %2881 = vmatprep.mubr.bf16.mxu1 %v319_v42  ;;  %v9478_v42 = vld [vmem:[%s12560_s3] ss:$16 sps:$4 sm:$0xff]  }
 0x184   :  { %2110 = vmatmul.mubr.bf16.gmra.mrb[24].mxu0 %v318_v47  ;;  %2882 = vmatmul.mubr.bf16.gmra.mrb[24].mxu1 %v318_v47  ;;  %v75_v47 = vld [vmem:[%s12557_s0 + $0xd8] sm:$0xff] }
 0x185   :  { %2119 = vmatprep.mubr.bf16.mxu0 %v326_v48  ;;  %2891 = vmatprep.mubr.bf16.mxu1 %v326_v48  ;;  %v9481_v48 = vld [vmem:[%s12560_s3 + $0x20] ss:$16 sps:$4 sm:$0xff]   ;;  %v285_v52 = vpack.c.bf16 %v75_v47, %v68_v46  ;;  %v9559_v46 = vld [vmem:[%s12560_s3 + $0x188] ss:$16 sps:$4 sm:$0xff]   ;;  %v9549_v47 = vld [vmem:[%s12560_s3 + $0x1a4] ss:$16 sps:$4 sm:$0xff]  }
 0x18c   :  { %2120 = vmatmul.mubr.bf16.gmra.mrb[28].mxu0 %v325_v53  ;;  %2892 = vmatmul.mubr.bf16.gmra.mrb[28].mxu1 %v325_v53  ;;  %v9484_v53 = vld [vmem:[%s12560_s3 + $0x40] ss:$16 sps:$4 sm:$0xff]  }
 0x18d   :  { %2129 = vmatprep.mubr.bf16.mxu0 %v333_v54  ;;  %2901 = vmatprep.mubr.bf16.mxu1 %v333_v54  ;;  %v9514_v54 = vld [vmem:[%s12560_s3 + $0x48] ss:$16 sps:$4 sm:$0xff]  }
 0x194   :  { %2130 = vmatmul.mubr.bf16.gmra.mrb[32].mxu0 %v332_v59  ;;  %2902 = vmatmul.mubr.bf16.gmra.mrb[32].mxu1 %v332_v59  ;;  %v9487_v59 = vld [vmem:[%s12560_s3 + $0x60] ss:$16 sps:$4 sm:$0xff]  }
 0x195   :  { %2139 = vmatprep.mubr.bf16.mxu0 %v340_v60  ;;  %2911 = vmatprep.mubr.bf16.mxu1 %v340_v60  ;;  %v9517_v60 = vld [vmem:[%s12560_s3 + $0x68] ss:$16 sps:$4 sm:$0xff]  }
 0x19c   :  { %2140 = vmatmul.mubr.bf16.gmra.mrb[36].mxu0 %v339_v1  ;;  %2912 = vmatmul.mubr.bf16.gmra.mrb[36].mxu1 %v339_v1  ;;  %v9523_v1 = vld [vmem:[%s12560_s3 + $0x88] ss:$16 sps:$4 sm:$0xff]  }
 0x19d   :  { %2149 = vmatprep.mubr.bf16.mxu0 %v347_v2  ;;  %2921 = vmatprep.mubr.bf16.mxu1 %v347_v2  ;;  %v9495_v2 = vld [vmem:[%s12560_s3 + $0xa4] ss:$16 sps:$4 sm:$0xff]  }
 0x1a4   :  { %2150 = vmatmul.mubr.bf16.gmra.mrb[40].mxu0 %v346_v7  ;;  %2922 = vmatmul.mubr.bf16.gmra.mrb[40].mxu1 %v346_v7  ;;  %v9526_v7 = vld [vmem:[%s12560_s3 + $0xa8] ss:$16 sps:$4 sm:$0xff]  }
 0x1a5   :  { %2159 = vmatprep.mubr.bf16.mxu0 %v354_v8  ;;  %2931 = vmatprep.mubr.bf16.mxu1 %v354_v8  ;;  %v9498_v8 = vld [vmem:[%s12560_s3 + $0xc4] ss:$16 sps:$4 sm:$0xff]  }
 0x1ac   :  { %2160 = vmatmul.mubr.bf16.gmra.mrb[44].mxu0 %v353_v13  ;;  %2932 = vmatmul.mubr.bf16.gmra.mrb[44].mxu1 %v353_v13  ;;  %v9501_v13 = vld [vmem:[%s12560_s3 + $0xe4] ss:$16 sps:$4 sm:$0xff]  }
 0x1ad   :  { %2169 = vmatprep.mubr.bf16.mxu0 %v361_v14  ;;  %2941 = vmatprep.mubr.bf16.mxu1 %v361_v14  ;;  %v9537_v14 = vld [vmem:[%s12560_s3 + $0xec] ss:$16 sps:$4 sm:$0xff]  }
 0x1b4   :  { %2170 = vmatmul.mubr.bf16.gmra.mrb[48].mxu0 %v360_v20  ;;  %2942 = vmatmul.mubr.bf16.gmra.mrb[48].mxu1 %v360_v20  ;;  %v9543_v20 = vld [vmem:[%s12560_s3 + $0x10c] ss:$16 sps:$4 sm:$0xff]  }
 0x1b5   :  { %2179 = vmatprep.mubr.bf16.mxu0 %v368_v21  ;;  %2951 = vmatprep.mubr.bf16.mxu1 %v368_v21  ;;  %v306_v21 = vpack.c.bf16 %v117_v16, %v110_v15  ;;  %v243_v15 = vld [vmem:[%s12557_s0 + $0x618] sm:$0xff] }
 0x1bc   :  { %2180 = vmatmul.mubr.bf16.gmra.mrb[52].mxu0 %v367_v26  ;;  %2952 = vmatmul.mubr.bf16.gmra.mrb[52].mxu1 %v367_v26  ;;  %v124_v26 = vld [vmem:[%s12557_s0 + $0x260] sm:$0xff] }
 0x1bd   :  { %2189 = vmatprep.mubr.bf16.mxu0 %v375_v27  ;;  %2961 = vmatprep.mubr.bf16.mxu1 %v375_v27  ;;  %v131_v27 = vld [vmem:[%s12557_s0 + $0x298] sm:$0xff] }
 0x1c4   :  { %2190 = vmatmul.mubr.bf16.gmra.mrb[56].mxu0 %v374_v32  ;;  %2962 = vmatmul.mubr.bf16.gmra.mrb[56].mxu1 %v374_v32  ;;  %v313_v32 = vpack.c.bf16 %v131_v27, %v124_v26  ;;  %v580_v27 = vld [vmem:[%s12559_s2] sm:$0xf] }
 0x1c5   :  { %2199 = vmatprep.mubr.bf16.mxu0 %v382_v33  ;;  %2971 = vmatprep.mubr.bf16.mxu1 %v382_v33  ;;  %v9520_v33 = vld [vmem:[%s12560_s3 + $0x140] ss:$16 sps:$4 sm:$0xff]  }
 0x1cc   :  { %2200 = vmatmul.mubr.bf16.gmra.mrb[60].mxu0 %v381_v36  ;;  %2972 = vmatmul.mubr.bf16.gmra.mrb[60].mxu1 %v381_v36  ;;  %v9555_v36 = vld [vmem:[%s12560_s3 + $0x16c] ss:$16 sps:$4 sm:$0xff]  }
 0x1cd   :  { %2242 = vmatprep.mubr.bf16.mxu0 %v9945_v37  ;;  %3014 = vmatprep.mubr.bf16.mxu1 %v9945_v37 }
 0x1d4   :  { %7449 = vmatmul.mubr.msk.bf16.vlgmr.msra.gmra.mrb[0].mxu0 %vm1582_vm0, %v278_v41  ;;  %7465 = vmatmul.mubr.msk.bf16.vlgmr.msra.gmra.mrb[0].mxu1 %vm1582_vm0, %v278_v41  ;;  %v9553_v41 = vld [vmem:[%s12560_s3 + $0x168] ss:$16 sps:$4 sm:$0xff]  }
 0x1d5   :  { %2252 = vmatprep.mubr.bf16.mxu0 %v9945_v37  ;;  %3024 = vmatprep.mubr.bf16.mxu1 %v9945_v37 }
 0x1d6   :  { %4030 = vmatpush1.bf16.msra.mxu0 %v9478_v42  ;;  %4416 = vmatpush1.bf16.msra.mxu1 %v9505_v43  ;;  %v9540_v42 = vld [vmem:[%s12560_s3 + $0x184] ss:$16 sps:$4 sm:$0xff]   ;;  %v9561_v43 = vld [vmem:[%s12560_s3 + $0x18c] ss:$16 sps:$4 sm:$0xff]  }
 0x1d7   :  { %4031 = vmatprep.subr.bf16.mxu0 %v9483_v44  ;;  %4417 = vmatprep.subr.bf16.mxu1 %v9510_v45  ;;  %v320_v44 = vpack.c.bf16 %v145_v39, %v138_v38  ;;  %v9538_v45 = vld [vmem:[%s12560_s3 + $0x180] ss:$16 sps:$4 sm:$0xff]  }
 0x1da   :  { %4032 = vmatpush1.bf16.msra.mxu0 %v9481_v48  ;;  %4418 = vmatpush1.bf16.msra.mxu1 %v9508_v49  ;;  %v9564_v48 = vld [vmem:[%s12560_s3 + $0x1ac] ss:$16 sps:$4 sm:$0xff]   ;;  %v152_v49 = vld [vmem:[%s12557_s0 + $0x340] sm:$0xff] }
 0x1db   :  { %4033 = vmatprep.subr.bf16.mxu0 %v9486_v50  ;;  %4419 = vmatprep.subr.bf16.mxu1 %v9516_v51  ;;  %v159_v50 = vld [vmem:[%s12557_s0 + $0x378] sm:$0xff]  ;;  %v9547_v51 = vld [vmem:[%s12560_s3 + $0x1a0] ss:$16 sps:$4 sm:$0xff]  }
 0x1dc   :  { %7450 = vmatmul.mubr.msk.bf16.gmra.mrb[4].mxu0 %vm1582_vm0, %v285_v52  ;;  %7466 = vmatmul.mubr.msk.bf16.gmra.mrb[4].mxu1 %vm1582_vm0, %v285_v52  ;;  %v9562_v52 = vld [vmem:[%s12560_s3 + $0x1a8] ss:$16 sps:$4 sm:$0xff]  }
 0x1dd   :  { %2262 = vmatprep.mubr.bf16.mxu0 %v9945_v37  ;;  %3034 = vmatprep.mubr.bf16.mxu1 %v9945_v37 }
 0x1de   :  { %4034 = vmatpush1.bf16.msra.mxu0 %v9484_v53  ;;  %4420 = vmatpush1.bf16.msra.mxu1 %v9514_v54  ;;  %v9558_v53 = vld [vmem:[%s12560_s3 + $0x1c4] ss:$16 sps:$4 sm:$0xff]   ;;  %v327_v54 = vpack.c.bf16 %v159_v50, %v152_v49 }
 0x1df   :  { %4035 = vmatprep.subr.bf16.mxu0 %v9489_v55  ;;  %4421 = vmatprep.subr.bf16.mxu1 %v9519_v56  ;;  %v9556_v55 = vld [vmem:[%s12560_s3 + $0x1c0] ss:$16 sps:$4 sm:$0xff]  }
 0x1e0   :  { %v166_v56 = vld [vmem:[%s12557_s0 + $0x3b0] sm:$0xff] }
 0x1e1   :  { %v334_v58 = vpack.c.bf16 %v173_v57, %v166_v56  ;;  %v9601_v56 = vld [vmem:[%s12560_s3 + $0x208] ss:$16 sps:$4 sm:$0xff]   ;;  %v9579_v57 = vld [vmem:[%s12560_s3 + $0x224] ss:$16 sps:$4 sm:$0xff]  }
 0x1e2   :  { %4036 = vmatpush1.bf16.msra.mxu0 %v9487_v59  ;;  %4422 = vmatpush1.bf16.msra.mxu1 %v9517_v60  ;;  %v180_v59 = vld [vmem:[%s12557_s0 + $0x420] sm:$0xff]  ;;  %v187_v60 = vld [vmem:[%s12557_s0 + $0x458] sm:$0xff] }
 0x1e3   :  { %4037 = vmatprep.subr.bf16.mxu0 %v9492_v61  ;;  %4423 = vmatprep.subr.bf16.mxu1 %v9525_v62  ;;  %v341_v61 = vpack.c.bf16 %v187_v60, %v180_v59  ;;  %v194_v62 = vld [vmem:[%s12557_s0 + $0x490] sm:$0xff] }
 0x1e4   :  { %7451 = vmatmul.mubr.msk.bf16.gmra.mrb[8].mxu0 %vm1582_vm0, %v292_v63  ;;  %7467 = vmatmul.mubr.msk.bf16.gmra.mrb[8].mxu1 %vm1582_vm0, %v292_v63  ;;  %v201_v63 = vld [vmem:[%s12557_s0 + $0x4c8] sm:$0xff] }
 0x1e5   :  { %2272 = vmatprep.mubr.bf16.mxu0 %v9945_v37  ;;  %3044 = vmatprep.mubr.bf16.mxu1 %v9945_v37 }
 0x1e6   :  { %4038 = vmatpush1.bf16.msra.mxu0 %v9490_v0  ;;  %4424 = vmatpush1.bf16.msra.mxu1 %v9523_v1  ;;  %v348_v0 = vpack.c.bf16 %v201_v63, %v194_v62  ;;  %v208_v1 = vld [vmem:[%s12557_s0 + $0x500] sm:$0xff] }
 0x1e7   :  { %4039 = vmatprep.subr.bf16.mxu0 %v9495_v2  ;;  %4425 = vmatprep.subr.bf16.mxu1 %v9528_v3  ;;  %v215_v2 = vld [vmem:[%s12557_s0 + $0x538] sm:$0xff] }
 0x1e8   :  { %v9570_v3 = vld [vmem:[%s12560_s3 + $0x1cc] ss:$16 sps:$4 sm:$0xff]   ;;  %v355_v5 = vpack.c.bf16 %v215_v2, %v208_v1  ;;  %v9577_v2 = vld [vmem:[%s12560_s3 + $0x220] ss:$16 sps:$4 sm:$0xff]  }
 0x1ea   :  { %4040 = vmatpush1.bf16.msra.mxu0 %v9493_v6  ;;  %4426 = vmatpush1.bf16.msra.mxu1 %v9526_v7  ;;  %v9567_v6 = vld [vmem:[%s12560_s3 + $0x1e4] ss:$16 sps:$4 sm:$0xff]   ;;  %v9565_v7 = vld [vmem:[%s12560_s3 + $0x1e0] ss:$16 sps:$4 sm:$0xff]  }
 0x1eb   :  { %4041 = vmatprep.subr.bf16.mxu0 %v9498_v8  ;;  %4427 = vmatprep.subr.bf16.mxu1 %v9534_v9  ;;  %v9573_v8 = vld [vmem:[%s12560_s3 + $0x1ec] ss:$16 sps:$4 sm:$0xff]   ;;  %v9571_v9 = vld [vmem:[%s12560_s3 + $0x1e8] ss:$16 sps:$4 sm:$0xff]  }
 0x1ec   :  { %7452 = vmatmul.mubr.msk.bf16.gmra.mrb[12].mxu0 %vm1582_vm0, %v299_v10  ;;  %7468 = vmatmul.mubr.msk.bf16.gmra.mrb[12].mxu1 %vm1582_vm0, %v299_v10  ;;  %v222_v10 = vld [vmem:[%s12557_s0 + $0x570] sm:$0xff] }
 0x1ed   :  { %2282 = vmatprep.mubr.bf16.mxu0 %v9945_v37  ;;  %3054 = vmatprep.mubr.bf16.mxu1 %v9945_v37 }
 0x1ee   :  { %4042 = vmatpush1.bf16.msra.mxu0 %v9496_v11  ;;  %4428 = vmatpush1.bf16.msra.mxu1 %v9532_v12  ;;  %v229_v11 = vld [vmem:[%s12557_s0 + $0x5a8] sm:$0xff] }
 0x1ef   :  { %4043 = vmatprep.subr.bf16.mxu0 %v9501_v13  ;;  %4429 = vmatprep.subr.bf16.mxu1 %v9537_v14  ;;  %v362_v12 = vpack.c.bf16 %v229_v11, %v222_v10  ;;  %v9576_v13 = vld [vmem:[%s12560_s3 + $0x204] ss:$16 sps:$4 sm:$0xff]   ;;  %v9612_v10 = vld [vmem:[%s12560_s3 + $0x24c] ss:$16 sps:$4 sm:$0xff]  }
 0x1f0   :  { %v236_v14 = vld [vmem:[%s12557_s0 + $0x5e0] sm:$0xff] }
 0x1f1   :  { %v369_v16 = vpack.c.bf16 %v243_v15, %v236_v14 }
 0x1f2   :  { %4044 = vmatpush1.bf16.msra.mxu0 %v9499_v17  ;;  %4430 = vmatpush1.bf16.msra.mxu1 %v9535_v18  ;;  %v250_v17 = vld [vmem:[%s12557_s0 + $0x650] sm:$0xff]  ;;  %v257_v18 = vld [vmem:[%s12557_s0 + $0x688] sm:$0xff] }
 0x1f3   :  { %4045 = vmatprep.subr.bf16.mxu0 %v9504_v19  ;;  %4431 = vmatprep.subr.bf16.mxu1 %v9543_v20  ;;  %v376_v19 = vpack.c.bf16 %v257_v18, %v250_v17  ;;  %v264_v20 = vld [vmem:[%s12557_s0 + $0x6c0] sm:$0xff] }
 0x1f4   :  { %7453 = vmatmul.mubr.msk.bf16.gmra.mrb[16].mxu0 %vm1582_vm0, %v306_v21  ;;  %7469 = vmatmul.mubr.msk.bf16.gmra.mrb[16].mxu1 %vm1582_vm0, %v306_v21  ;;  %v271_v21 = vld [vmem:[%s12557_s0 + $0x6f8] sm:$0xff] }
 0x1f5   :  { %2292 = vmatprep.mubr.bf16.mxu0 %v9945_v37  ;;  %3064 = vmatprep.mubr.bf16.mxu1 %v9945_v37 }
 0x1f6   :  { %4046 = vmatpush1.bf16.msra.mxu0 %v9502_v22  ;;  %4432 = vmatpush1.bf16.msra.mxu1 %v9541_v23  ;;  %v383_v22 = vpack.c.bf16 %v271_v21, %v264_v20  ;;  %v9603_v23 = vld [vmem:[%s12560_s3 + $0x20c] ss:$16 sps:$4 sm:$0xff]   ;;  %v9610_v20 = vld [vmem:[%s12560_s3 + $0x248] ss:$16 sps:$4 sm:$0xff]   ;;  %v9585_v21 = vld [vmem:[%s12560_s3 + $0x264] ss:$16 sps:$4 sm:$0xff]  }
 0x1f7   :  { %4047 = vmatprep.subr.bf16.mxu0 %v9513_v24  ;;  %4433 = vmatprep.subr.bf16.mxu1 %v9546_v25  ;;  %v582_v24 = vlaneseq }
 0x1fa   :  { %4048 = vmatpush1.bf16.msra.mxu0 %v9511_v28  ;;  %4434 = vmatpush1.bf16.msra.mxu1 %v9544_v29 }
 0x1fb   :  { %4049 = vmatprep.subr.bf16.mxu0 %v9522_v30  ;;  %4435 = vmatprep.subr.bf16.mxu1 %v9552_v31 }
 0x1fc   :  { %7454 = vmatmul.mubr.msk.bf16.gmra.mrb[20].mxu0 %vm1582_vm0, %v313_v32  ;;  %7470 = vmatmul.mubr.msk.bf16.gmra.mrb[20].mxu1 %vm1582_vm0, %v313_v32 }
 0x1fd   :  { %2302 = vmatprep.mubr.bf16.mxu0 %v9945_v37  ;;  %3074 = vmatprep.mubr.bf16.mxu1 %v9945_v37 }
 0x1fe   :  { %4050 = vmatpush1.bf16.msra.mxu0 %v9520_v33  ;;  %4436 = vmatpush1.bf16.msra.mxu1 %v9550_v34 }
 0x1ff   :  { %4051 = vmatprep.subr.bf16.mxu0 %v9531_v35  ;;  %4437 = vmatprep.subr.bf16.mxu1 %v9555_v36 }
 0x202   :  { %4052 = vmatpush1.bf16.msra.mxu0 %v9529_v40  ;;  %4438 = vmatpush1.bf16.msra.mxu1 %v9553_v41 }
 0x203   :  { %4053 = vmatprep.subr.bf16.mxu0 %v9540_v42  ;;  %4439 = vmatprep.subr.bf16.mxu1 %v9561_v43 }
 0x204   :  { %7455 = vmatmul.mubr.msk.bf16.gmra.mrb[24].mxu0 %vm1582_vm0, %v320_v44  ;;  %7471 = vmatmul.mubr.msk.bf16.gmra.mrb[24].mxu1 %vm1582_vm0, %v320_v44 }
 0x205   :  { %2312 = vmatprep.mubr.bf16.mxu0 %v9945_v37  ;;  %3084 = vmatprep.mubr.bf16.mxu1 %v9945_v37 }
 0x206   :  { %4054 = vmatpush1.bf16.msra.mxu0 %v9538_v45  ;;  %4440 = vmatpush1.bf16.msra.mxu1 %v9559_v46 }
 0x207   :  { %4055 = vmatprep.subr.bf16.mxu0 %v9549_v47  ;;  %4441 = vmatprep.subr.bf16.mxu1 %v9564_v48 }
 0x20a   :  { %4056 = vmatpush1.bf16.msra.mxu0 %v9547_v51  ;;  %4442 = vmatpush1.bf16.msra.mxu1 %v9562_v52 }
 0x20b   :  { %4057 = vmatprep.subr.bf16.mxu0 %v9558_v53  ;;  %4443 = vmatprep.subr.bf16.mxu1 %v9570_v3  ;;  %v9604_v3 = vld [vmem:[%s12560_s3 + $0x228] ss:$16 sps:$4 sm:$0xff]  }
 0x20c   :  { %7456 = vmatmul.mubr.msk.bf16.gmra.mrb[28].mxu0 %vm1582_vm0, %v327_v54  ;;  %7472 = vmatmul.mubr.msk.bf16.gmra.mrb[28].mxu1 %vm1582_vm0, %v327_v54 }
 0x20d   :  { %2322 = vmatprep.mubr.bf16.mxu0 %v9945_v37  ;;  %3094 = vmatprep.mubr.bf16.mxu1 %v9945_v37 }
 0x20e   :  { %4058 = vmatpush1.bf16.msra.mxu0 %v9556_v55  ;;  %4444 = vmatpush1.bf16.msra.mxu1 %v9568_v4  ;;  %v9574_v55 = vld [vmem:[%s12560_s3 + $0x200] ss:$16 sps:$4 sm:$0xff]  }
 0x20f   :  { %4059 = vmatprep.subr.bf16.mxu0 %v9567_v6  ;;  %4445 = vmatprep.subr.bf16.mxu1 %v9573_v8 }
 0x212   :  { %4060 = vmatpush1.bf16.msra.mxu0 %v9565_v7  ;;  %4446 = vmatpush1.bf16.msra.mxu1 %v9571_v9  ;;  %v9582_v9 = vld [vmem:[%s12560_s3 + $0x244] ss:$16 sps:$4 sm:$0xff]  }
 0x213   :  { %4222 = vmatprep.subr.bf16.mxu0 %v9576_v13  ;;  %4608 = vmatprep.subr.bf16.mxu1 %v9603_v23 }
 0x214   :  { %7457 = vmatmul.mubr.msk.bf16.gmra.mrb[32].mxu0 %vm1582_vm0, %v334_v58  ;;  %7473 = vmatmul.mubr.msk.bf16.gmra.mrb[32].mxu1 %vm1582_vm0, %v334_v58  ;;  %v9606_v58 = vld [vmem:[%s12560_s3 + $0x22c] ss:$16 sps:$4 sm:$0xff]  }
 0x215   :  { %2332 = vmatprep.mubr.bf16.mxu0 %v9945_v37  ;;  %3104 = vmatprep.mubr.bf16.mxu1 %v9945_v37 }
 0x21c   :  { %7458 = vmatmul.mubr.msk.bf16.gmra.mrb[36].mxu0 %vm1582_vm0, %v341_v61  ;;  %7474 = vmatmul.mubr.msk.bf16.gmra.mrb[36].mxu1 %vm1582_vm0, %v341_v61 }
 0x21d   :  { %2342 = vmatprep.mubr.bf16.mxu0 %v9945_v37  ;;  %3114 = vmatprep.mubr.bf16.mxu1 %v9945_v37 }
 0x224   :  { %7459 = vmatmul.mubr.msk.bf16.gmra.mrb[40].mxu0 %vm1582_vm0, %v348_v0  ;;  %7475 = vmatmul.mubr.msk.bf16.gmra.mrb[40].mxu1 %vm1582_vm0, %v348_v0 }
 0x225   :  { %2352 = vmatprep.mubr.bf16.mxu0 %v9945_v37  ;;  %3124 = vmatprep.mubr.bf16.mxu1 %v9945_v37 }
 0x22c   :  { %7460 = vmatmul.mubr.msk.bf16.gmra.mrb[44].mxu0 %vm1582_vm0, %v355_v5  ;;  %7476 = vmatmul.mubr.msk.bf16.gmra.mrb[44].mxu1 %vm1582_vm0, %v355_v5 }
 0x22d   :  { %2362 = vmatprep.mubr.bf16.mxu0 %v9945_v37  ;;  %3134 = vmatprep.mubr.bf16.mxu1 %v9945_v37 }
 0x234   :  { %7461 = vmatmul.mubr.msk.bf16.gmra.mrb[48].mxu0 %vm1582_vm0, %v362_v12  ;;  %7477 = vmatmul.mubr.msk.bf16.gmra.mrb[48].mxu1 %vm1582_vm0, %v362_v12 }
 0x235   :  { %2372 = vmatprep.mubr.bf16.mxu0 %v9945_v37  ;;  %3144 = vmatprep.mubr.bf16.mxu1 %v9945_v37 }
 0x23c   :  { %7462 = vmatmul.mubr.msk.bf16.gmra.mrb[52].mxu0 %vm1582_vm0, %v369_v16  ;;  %7478 = vmatmul.mubr.msk.bf16.gmra.mrb[52].mxu1 %vm1582_vm0, %v369_v16 }
 0x23d   :  { %2382 = vmatprep.mubr.bf16.mxu0 %v9945_v37  ;;  %3154 = vmatprep.mubr.bf16.mxu1 %v9945_v37 }
 0x244   :  { %7463 = vmatmul.mubr.msk.bf16.gmra.mrb[56].mxu0 %vm1582_vm0, %v376_v19  ;;  %7479 = vmatmul.mubr.msk.bf16.gmra.mrb[56].mxu1 %vm1582_vm0, %v376_v19  ;;  %v9580_v19 = vld [vmem:[%s12560_s3 + $0x240] ss:$16 sps:$4 sm:$0xff]  }
 0x245   :  { %2392 = vmatprep.mubr.bf16.mxu0 %v9945_v37  ;;  %3164 = vmatprep.mubr.bf16.mxu1 %v9945_v37  ;;  %v583_v37 = vshrl.u32 %v582_v24, 7 }
 0x247   :  { %v11533_v25 = vsub.s32 0, %v583_v37  ;;  %v11535_v26 = vsub.s32 2, %v583_v37  ;;  %v11540_v28 = vsub.s32 1, %v583_v37  ;;  %v11542_v29 = vsub.s32 3, %v583_v37 }
 0x249   :  { %v11545_v30 = vrot.slane %v580_v27, %v11533_v25  ;;  %v11548_v31 = vrot.slane %v580_v27, %v11535_v26  ;;  %v11551_v34 = vrot.slane %v580_v27, %v11540_v28  ;;  %v11554_v35 = vrot.slane %v580_v27, %v11542_v29 }
 0x24c   :  { %7464 = vmatmul.mubr.msk.bf16.gmra.mrb[60].mxu0 %vm1582_vm0, %v383_v22  ;;  %7480 = vmatmul.mubr.msk.bf16.gmra.mrb[60].mxu1 %vm1582_vm0, %v383_v22  ;;  %v9615_v22 = vld [vmem:[%s12560_s3 + $0x26c] ss:$16 sps:$4 sm:$0xff]  }
 0x2a7   :  { %v2244_v32 = vpop.f32.mrb[0].mxu0  ;;  %v3016_v33 = vpop.f32.mrb[0].mxu1 }
 0x2a8   :  { %v2246_v36 = vpop.f32.mrb[1].mxu0  ;;  %v3018_v38 = vpop.f32.mrb[1].mxu1  ;;  %v8153_v41 = vadd.f32 %v2244_v32, %v11545_v30  ;;  %v8217_v42 = vadd.f32 %v3016_v33, %v11548_v31 }
 0x2a9   :  { %v2248_v39 = vpop.f32.mrb[2].mxu0  ;;  %v3020_v40 = vpop.f32.mrb[2].mxu1  ;;  %v8154_v47 = vadd.f32 %v2246_v36, %v11551_v34  ;;  %v8218_v48 = vadd.f32 %v3018_v38, %v11554_v35  ;;  %v9583_v38 = vld [vmem:[%s12560_s3 + $0x260] ss:$16 sps:$4 sm:$0xff]  }
 0x2aa   :  { %v8155_v43 = vadd.f32 %v2248_v39, %v11545_v30  ;;  %v8219_v44 = vadd.f32 %v3020_v40, %v11548_v31  ;;  %v2250_v45 = vpop.f32.mrb[3].mxu0  ;;  %v3022_v46 = vpop.f32.mrb[3].mxu1  ;;  %v9613_v39 = vld [vmem:[%s12560_s3 + $0x268] ss:$16 sps:$4 sm:$0xff]  }
 0x2ab   :  { %v8156_v49 = vadd.f32 %v2250_v45, %v11551_v34  ;;  %v8220_v50 = vadd.f32 %v3022_v46, %v11554_v35  ;;  %v9588_v45 = vld [vmem:[%s12560_s3 + $0x284] ss:$16 sps:$4 sm:$0xff]   ;;  %v9621_v46 = vld [vmem:[%s12560_s3 + $0x28c] ss:$16 sps:$4 sm:$0xff]  }
 0x2ac   :  { %v3175_v51 = vpack.c.bf16 %v8155_v43, %v8153_v41  ;;  %v11564_v52 = vpack.c.bf16 %v8219_v44, %v8217_v42 }
 0x2ad   :  { %v3176_v53 = vpack.c.bf16 %v8156_v49, %v8154_v47  ;;  %v11566_v54 = vpack.c.bf16 %v8220_v50, %v8218_v48 }
 0x2af   :  { %v2254_v59 = vpop.f32.mrb[4].mxu0  ;;  %v3026_v60 = vpop.f32.mrb[4].mxu1  ;;  %4061 = vmatprep.mubr.bf16.mxu0 %v3176_v53  ;;  %4447 = vmatprep.mubr.bf16.mxu1 %v3176_v53 }
 0x2b0   :  { %v2256_v61 = vpop.f32.mrb[5].mxu0  ;;  %v3028_v62 = vpop.f32.mrb[5].mxu1  ;;  %4062 = vmatmul.mubr.bf16.vlgmr.msra.gmra.mrb[64].mxu0 %v3175_v51  ;;  %4448 = vmatmul.mubr.bf16.vlgmr.msra.gmra.mrb[64].mxu1 %v3175_v51  ;;  %v8157_v63 = vadd.f32 %v2254_v59, %v11545_v30  ;;  %v8221_v4 = vadd.f32 %v3026_v60, %v11548_v31  ;;  %v9591_v59 = vld [vmem:[%s12560_s3 + $0x2a4] ss:$16 sps:$4 sm:$0xff]   ;;  %v9624_v60 = vld [vmem:[%s12560_s3 + $0x2ac] ss:$16 sps:$4 sm:$0xff]  }
 0x2b1   :  { %v2258_v0 = vpop.f32.mrb[6].mxu0  ;;  %v3030_v1 = vpop.f32.mrb[6].mxu1  ;;  %4223 = vmatpush1.bf16.msra.mxu0 %v9574_v55  ;;  %4609 = vmatpush1.bf16.msra.mxu1 %v9601_v56  ;;  %v8158_v11 = vadd.f32 %v2256_v61, %v11551_v34  ;;  %v8222_v12 = vadd.f32 %v3028_v62, %v11554_v35 }
 0x2b2   :  { %v8159_v5 = vadd.f32 %v2258_v0, %v11545_v30  ;;  %v8223_v6 = vadd.f32 %v3030_v1, %v11548_v31  ;;  %v2260_v7 = vpop.f32.mrb[7].mxu0  ;;  %v3032_v8 = vpop.f32.mrb[7].mxu1  ;;  %4224 = vmatprep.subr.bf16.mxu0 %v9579_v57  ;;  %4610 = vmatprep.subr.bf16.mxu1 %v9606_v58  ;;  %v9586_v57 = vld [vmem:[%s12560_s3 + $0x280] ss:$16 sps:$4 sm:$0xff]   ;;  %v9619_v58 = vld [vmem:[%s12560_s3 + $0x288] ss:$16 sps:$4 sm:$0xff]  }
 0x2b3   :  { %v8160_v13 = vadd.f32 %v2260_v7, %v11551_v34  ;;  %v8224_v14 = vadd.f32 %v3032_v8, %v11554_v35 }
 0x2b4   :  { %v3179_v15 = vpack.c.bf16 %v8159_v5, %v8157_v63  ;;  %v11600_v16 = vpack.c.bf16 %v8223_v6, %v8221_v4  ;;  %v9589_v4 = vld [vmem:[%s12560_s3 + $0x2a0] ss:$16 sps:$4 sm:$0xff]   ;;  %v9622_v5 = vld [vmem:[%s12560_s3 + $0x2a8] ss:$16 sps:$4 sm:$0xff]  }
 0x2b5   :  { %v3180_v17 = vpack.c.bf16 %v8160_v13, %v8158_v11  ;;  %v11602_v18 = vpack.c.bf16 %v8224_v14, %v8222_v12  ;;  %4225 = vmatpush1.bf16.msra.mxu0 %v9577_v2  ;;  %4611 = vmatpush1.bf16.msra.mxu1 %v9604_v3  ;;  %v9594_v11 = vld [vmem:[%s12560_s3 + $0x2c4] ss:$16 sps:$4 sm:$0xff]   ;;  %v9630_v12 = vld [vmem:[%s12560_s3 + $0x2cc] ss:$16 sps:$4 sm:$0xff]  }
 0x2b6   :  { %4226 = vmatprep.subr.bf16.mxu0 %v9582_v9  ;;  %4612 = vmatprep.subr.bf16.mxu1 %v9612_v10 }
 0x2b7   :  { %v2264_v23 = vpop.f32.mrb[8].mxu0  ;;  %v3036_v24 = vpop.f32.mrb[8].mxu1  ;;  %4071 = vmatprep.mubr.bf16.mxu0 %v3180_v17  ;;  %4457 = vmatprep.mubr.bf16.mxu1 %v3180_v17 }
 0x2b8   :  { %v2266_v37 = vpop.f32.mrb[9].mxu0  ;;  %v3038_v27 = vpop.f32.mrb[9].mxu1  ;;  %4072 = vmatmul.mubr.bf16.gmra.mrb[68].mxu0 %v3179_v15  ;;  %4458 = vmatmul.mubr.bf16.gmra.mrb[68].mxu1 %v3179_v15  ;;  %v8161_v32 = vadd.f32 %v2264_v23, %v11545_v30  ;;  %v8225_v40 = vadd.f32 %v3036_v24, %v11548_v31  ;;  %v9592_v23 = vld [vmem:[%s12560_s3 + $0x2c0] ss:$16 sps:$4 sm:$0xff]   ;;  %v9628_v24 = vld [vmem:[%s12560_s3 + $0x2c8] ss:$16 sps:$4 sm:$0xff]  }
 0x2b9   :  { %v2268_v33 = vpop.f32.mrb[10].mxu0  ;;  %v3040_v36 = vpop.f32.mrb[10].mxu1  ;;  %4227 = vmatpush1.bf16.msra.mxu0 %v9580_v19  ;;  %4613 = vmatpush1.bf16.msra.mxu1 %v9610_v20  ;;  %v8162_v47 = vadd.f32 %v2266_v37, %v11551_v34  ;;  %v8226_v48 = vadd.f32 %v3038_v27, %v11554_v35  ;;  %v9597_v37 = vld [vmem:[%s12560_s3 + $0x2e4] ss:$16 sps:$4 sm:$0xff]   ;;  %v9633_v27 = vld [vmem:[%s12560_s3 + $0x2ec] ss:$16 sps:$4 sm:$0xff]  }
 0x2ba   :  { %v8163_v41 = vadd.f32 %v2268_v33, %v11545_v30  ;;  %v8227_v42 = vadd.f32 %v3040_v36, %v11548_v31  ;;  %v2270_v43 = vpop.f32.mrb[11].mxu0  ;;  %v3042_v44 = vpop.f32.mrb[11].mxu1  ;;  %4228 = vmatprep.subr.bf16.mxu0 %v9585_v21  ;;  %4614 = vmatprep.subr.bf16.mxu1 %v9615_v22 }
 0x2bb   :  { %v8164_v49 = vadd.f32 %v2270_v43, %v11551_v34  ;;  %v8228_v50 = vadd.f32 %v3042_v44, %v11554_v35  ;;  %v9631_v43 = vld [vmem:[%s12560_s3 + $0x2e8] ss:$16 sps:$4 sm:$0xff]  }
 0x2bc   :  { %v3183_v51 = vpack.c.bf16 %v8163_v41, %v8161_v32  ;;  %v11636_v53 = vpack.c.bf16 %v8227_v42, %v8225_v40  ;;  %v9595_v42 = vld [vmem:[%s12560_s3 + $0x2e0] ss:$16 sps:$4 sm:$0xff]  }
 0x2bd   :  { %v3184_v55 = vpack.c.bf16 %v8164_v49, %v8162_v47  ;;  %v11638_v56 = vpack.c.bf16 %v8228_v50, %v8226_v48  ;;  %4229 = vmatpush1.bf16.msra.mxu0 %v9583_v38  ;;  %4615 = vmatpush1.bf16.msra.mxu1 %v9613_v39  ;;  %v9600_v49 = vld [vmem:[%s12560_s3 + $0x304] ss:$16 sps:$4 sm:$0xff]   ;;  %v9639_v50 = vld [vmem:[%s12560_s3 + $0x30c] ss:$16 sps:$4 sm:$0xff]  }
 0x2be   :  { %4230 = vmatprep.subr.bf16.mxu0 %v9588_v45  ;;  %4616 = vmatprep.subr.bf16.mxu1 %v9621_v46 }
 0x2bf   :  { %v2274_v61 = vpop.f32.mrb[12].mxu0  ;;  %v3046_v62 = vpop.f32.mrb[12].mxu1  ;;  %4081 = vmatprep.mubr.bf16.mxu0 %v3184_v55  ;;  %4467 = vmatprep.mubr.bf16.mxu1 %v3184_v55 }
 0x2c0   :  { %v2276_v63 = vpop.f32.mrb[13].mxu0  ;;  %v3048_v0 = vpop.f32.mrb[13].mxu1  ;;  %4082 = vmatmul.mubr.bf16.gmra.mrb[72].mxu0 %v3183_v51  ;;  %4468 = vmatmul.mubr.bf16.gmra.mrb[72].mxu1 %v3183_v51  ;;  %v8165_v1 = vadd.f32 %v2274_v61, %v11545_v30  ;;  %v8229_v6 = vadd.f32 %v3046_v62, %v11548_v31 }
 0x2c1   :  { %v2278_v2 = vpop.f32.mrb[14].mxu0  ;;  %v3050_v3 = vpop.f32.mrb[14].mxu1  ;;  %4231 = vmatpush1.bf16.msra.mxu0 %v9586_v57  ;;  %4617 = vmatpush1.bf16.msra.mxu1 %v9619_v58  ;;  %v8166_v13 = vadd.f32 %v2276_v63, %v11551_v34  ;;  %v8230_v14 = vadd.f32 %v3048_v0, %v11554_v35  ;;  %v9598_v63 = vld [vmem:[%s12560_s3 + $0x300] ss:$16 sps:$4 sm:$0xff]   ;;  %v9637_v0 = vld [vmem:[%s12560_s3 + $0x308] ss:$16 sps:$4 sm:$0xff]  }
 0x2c2   :  { %v8167_v7 = vadd.f32 %v2278_v2, %v11545_v30  ;;  %v8231_v8 = vadd.f32 %v3050_v3, %v11548_v31  ;;  %v2280_v9 = vpop.f32.mrb[15].mxu0  ;;  %v3052_v10 = vpop.f32.mrb[15].mxu1  ;;  %4232 = vmatprep.subr.bf16.mxu0 %v9591_v59  ;;  %4618 = vmatprep.subr.bf16.mxu1 %v9624_v60  ;;  %v9642_v2 = vld [vmem:[%s12560_s3 + $0x32c] ss:$16 sps:$4 sm:$0xff]  }
 0x2c3   :  { %v8168_v15 = vadd.f32 %v2280_v9, %v11551_v34  ;;  %v8232_v17 = vadd.f32 %v3052_v10, %v11554_v35  ;;  %v9607_v10 = vld [vmem:[%s12560_s3 + $0x320] ss:$16 sps:$4 sm:$0xff]  }
 0x2c4   :  { %v3187_v19 = vpack.c.bf16 %v8167_v7, %v8165_v1  ;;  %v11672_v20 = vpack.c.bf16 %v8231_v8, %v8229_v6  ;;  %v9609_v1 = vld [vmem:[%s12560_s3 + $0x324] ss:$16 sps:$4 sm:$0xff]  }
 0x2c5   :  { %v3188_v21 = vpack.c.bf16 %v8168_v15, %v8166_v13  ;;  %v11674_v22 = vpack.c.bf16 %v8232_v17, %v8230_v14  ;;  %4233 = vmatpush1.bf16.msra.mxu0 %v9589_v4  ;;  %4619 = vmatpush1.bf16.msra.mxu1 %v9622_v5 }
 0x2c6   :  { %4234 = vmatprep.subr.bf16.mxu0 %v9594_v11  ;;  %4620 = vmatprep.subr.bf16.mxu1 %v9630_v12  ;;  %v9640_v11 = vld [vmem:[%s12560_s3 + $0x328] ss:$16 sps:$4 sm:$0xff]  }
 0x2c7   :  { %v2284_v32 = vpop.f32.mrb[16].mxu0  ;;  %v3056_v33 = vpop.f32.mrb[16].mxu1  ;;  %4091 = vmatprep.mubr.bf16.mxu0 %v3188_v21  ;;  %4477 = vmatprep.mubr.bf16.mxu1 %v3188_v21  ;;  %v9648_v21 = vld [vmem:[%s12560_s3 + $0x34c] ss:$16 sps:$4 sm:$0xff]  }
 0x2c8   :  { %v2286_v36 = vpop.f32.mrb[17].mxu0  ;;  %v3058_v38 = vpop.f32.mrb[17].mxu1  ;;  %4092 = vmatmul.mubr.bf16.gmra.mrb[76].mxu0 %v3187_v19  ;;  %4478 = vmatmul.mubr.bf16.gmra.mrb[76].mxu1 %v3187_v19  ;;  %v8169_v39 = vadd.f32 %v2284_v32, %v11545_v30  ;;  %v8233_v44 = vadd.f32 %v3056_v33, %v11548_v31  ;;  %v9618_v19 = vld [vmem:[%s12560_s3 + $0x344] ss:$16 sps:$4 sm:$0xff]  }
 0x2c9   :  { %v2288_v40 = vpop.f32.mrb[18].mxu0  ;;  %v3060_v41 = vpop.f32.mrb[18].mxu1  ;;  %4235 = vmatpush1.bf16.msra.mxu0 %v9592_v23  ;;  %4621 = vmatpush1.bf16.msra.mxu1 %v9628_v24  ;;  %v8170_v51 = vadd.f32 %v2286_v36, %v11551_v34  ;;  %v8234_v55 = vadd.f32 %v3058_v38, %v11554_v35 }
 0x2ca   :  { %v8171_v45 = vadd.f32 %v2288_v40, %v11545_v30  ;;  %v8235_v46 = vadd.f32 %v3060_v41, %v11548_v31  ;;  %v2290_v47 = vpop.f32.mrb[19].mxu0  ;;  %v3062_v48 = vpop.f32.mrb[19].mxu1  ;;  %4236 = vmatprep.subr.bf16.mxu0 %v9597_v37  ;;  %4622 = vmatprep.subr.bf16.mxu1 %v9633_v27  ;;  %v9646_v40 = vld [vmem:[%s12560_s3 + $0x348] ss:$16 sps:$4 sm:$0xff]   ;;  %v9627_v41 = vld [vmem:[%s12560_s3 + $0x364] ss:$16 sps:$4 sm:$0xff]  }
 0x2cb   :  { %v8172_v57 = vadd.f32 %v2290_v47, %v11551_v34  ;;  %v8236_v58 = vadd.f32 %v3062_v48, %v11554_v35 }
 0x2cc   :  { %v3191_v59 = vpack.c.bf16 %v8171_v45, %v8169_v39  ;;  %v11708_v60 = vpack.c.bf16 %v8235_v46, %v8233_v44  ;;  %v9616_v39 = vld [vmem:[%s12560_s3 + $0x340] ss:$16 sps:$4 sm:$0xff]  }
 0x2cd   :  { %v3192_v61 = vpack.c.bf16 %v8172_v57, %v8170_v51  ;;  %v11710_v62 = vpack.c.bf16 %v8236_v58, %v8234_v55  ;;  %4237 = vmatpush1.bf16.msra.mxu0 %v9595_v42  ;;  %4623 = vmatpush1.bf16.msra.mxu1 %v9631_v43  ;;  %v9651_v42 = vld [vmem:[%s12560_s3 + $0x36c] ss:$16 sps:$4 sm:$0xff]   ;;  %v9649_v51 = vld [vmem:[%s12560_s3 + $0x368] ss:$16 sps:$4 sm:$0xff]  }
 0x2ce   :  { %4238 = vmatprep.subr.bf16.mxu0 %v9600_v49  ;;  %4624 = vmatprep.subr.bf16.mxu1 %v9639_v50  ;;  %v9625_v50 = vld [vmem:[%s12560_s3 + $0x360] ss:$16 sps:$4 sm:$0xff]  }
 0x2cf   :  { %v2294_v3 = vpop.f32.mrb[20].mxu0  ;;  %v3066_v4 = vpop.f32.mrb[20].mxu1  ;;  %4101 = vmatprep.mubr.bf16.mxu0 %v3192_v61  ;;  %4487 = vmatprep.mubr.bf16.mxu1 %v3192_v61 }
 0x2d0   :  { %v2296_v5 = vpop.f32.mrb[21].mxu0  ;;  %v3068_v6 = vpop.f32.mrb[21].mxu1  ;;  %4102 = vmatmul.mubr.bf16.gmra.mrb[80].mxu0 %v3191_v59  ;;  %4488 = vmatmul.mubr.bf16.gmra.mrb[80].mxu1 %v3191_v59  ;;  %v8173_v7 = vadd.f32 %v2294_v3, %v11545_v30  ;;  %v8237_v12 = vadd.f32 %v3066_v4, %v11548_v31 }
 0x2d1   :  { %v2298_v8 = vpop.f32.mrb[22].mxu0  ;;  %v3070_v9 = vpop.f32.mrb[22].mxu1  ;;  %4239 = vmatpush1.bf16.msra.mxu0 %v9598_v63  ;;  %4625 = vmatpush1.bf16.msra.mxu1 %v9637_v0  ;;  %v8174_v23 = vadd.f32 %v2296_v5, %v11551_v34  ;;  %v8238_v24 = vadd.f32 %v3068_v6, %v11554_v35  ;;  %v9636_v63 = vld [vmem:[%s12560_s3 + $0x384] ss:$16 sps:$4 sm:$0xff]   ;;  %v9657_v0 = vld [vmem:[%s12560_s3 + $0x38c] ss:$16 sps:$4 sm:$0xff]  }
 0x2d2   :  { %v8175_v13 = vadd.f32 %v2298_v8, %v11545_v30  ;;  %v8239_v14 = vadd.f32 %v3070_v9, %v11548_v31  ;;  %v2300_v15 = vpop.f32.mrb[23].mxu0  ;;  %v3072_v17 = vpop.f32.mrb[23].mxu1  ;;  %4240 = vmatprep.subr.bf16.mxu0 %v9609_v1  ;;  %4626 = vmatprep.subr.bf16.mxu1 %v9642_v2  ;;  %v9634_v9 = vld [vmem:[%s12560_s3 + $0x380] ss:$16 sps:$4 sm:$0xff]  }
 0x2d3   :  { %v8176_v37 = vadd.f32 %v2300_v15, %v11551_v34  ;;  %v8240_v27 = vadd.f32 %v3072_v17, %v11554_v35 }
 0x2d4   :  { %v3195_v32 = vpack.c.bf16 %v8175_v13, %v8173_v7  ;;  %v11744_v33 = vpack.c.bf16 %v8239_v14, %v8237_v12  ;;  %v9660_v12 = vld [vmem:[%s12560_s3 + $0x3ac] ss:$16 sps:$4 sm:$0xff]  }
 0x2d5   :  { %v3196_v36 = vpack.c.bf16 %v8176_v37, %v8174_v23  ;;  %v11746_v38 = vpack.c.bf16 %v8240_v27, %v8238_v24  ;;  %4241 = vmatpush1.bf16.msra.mxu0 %v9607_v10  ;;  %4627 = vmatpush1.bf16.msra.mxu1 %v9640_v11  ;;  %v9655_v10 = vld [vmem:[%s12560_s3 + $0x388] ss:$16 sps:$4 sm:$0xff]   ;;  %v9645_v11 = vld [vmem:[%s12560_s3 + $0x3a4] ss:$16 sps:$4 sm:$0xff]   ;;  %v9643_v24 = vld [vmem:[%s12560_s3 + $0x3a0] ss:$16 sps:$4 sm:$0xff]  }
 0x2d6   :  { %4242 = vmatprep.subr.bf16.mxu0 %v9618_v19  ;;  %4628 = vmatprep.subr.bf16.mxu1 %v9648_v21  ;;  %v9658_v37 = vld [vmem:[%s12560_s3 + $0x3a8] ss:$16 sps:$4 sm:$0xff]  }
 0x2d7   :  { %v2304_v43 = vpop.f32.mrb[24].mxu0  ;;  %v3076_v44 = vpop.f32.mrb[24].mxu1  ;;  %4111 = vmatprep.mubr.bf16.mxu0 %v3196_v36  ;;  %4497 = vmatprep.mubr.bf16.mxu1 %v3196_v36 }
 0x2d8   :  { %v2306_v45 = vpop.f32.mrb[25].mxu0  ;;  %v3078_v46 = vpop.f32.mrb[25].mxu1  ;;  %4112 = vmatmul.mubr.bf16.gmra.mrb[84].mxu0 %v3195_v32  ;;  %4498 = vmatmul.mubr.bf16.gmra.mrb[84].mxu1 %v3195_v32  ;;  %v8177_v47 = vadd.f32 %v2304_v43, %v11545_v30  ;;  %v8241_v55 = vadd.f32 %v3076_v44, %v11548_v31 }
 0x2d9   :  { %v2308_v48 = vpop.f32.mrb[26].mxu0  ;;  %v3080_v49 = vpop.f32.mrb[26].mxu1  ;;  %4243 = vmatpush1.bf16.msra.mxu0 %v9616_v39  ;;  %4629 = vmatpush1.bf16.msra.mxu1 %v9646_v40  ;;  %v8178_v1 = vadd.f32 %v2306_v45, %v11551_v34  ;;  %v8242_v2 = vadd.f32 %v3078_v46, %v11554_v35 }
 0x2da   :  { %v8179_v57 = vadd.f32 %v2308_v48, %v11545_v30  ;;  %v8243_v58 = vadd.f32 %v3080_v49, %v11548_v31  ;;  %v2310_v59 = vpop.f32.mrb[27].mxu0  ;;  %v3082_v61 = vpop.f32.mrb[27].mxu1  ;;  %4244 = vmatprep.subr.bf16.mxu0 %v9627_v41  ;;  %4630 = vmatprep.subr.bf16.mxu1 %v9651_v42  ;;  %v9654_v41 = vld [vmem:[%s12560_s3 + $0x3c4] ss:$16 sps:$4 sm:$0xff]   ;;  %v9666_v42 = vld [vmem:[%s12560_s3 + $0x3cc] ss:$16 sps:$4 sm:$0xff]  }
 0x2db   :  { %v8180_v3 = vadd.f32 %v2310_v59, %v11551_v34  ;;  %v8244_v4 = vadd.f32 %v3082_v61, %v11554_v35 }
 0x2dc   :  { %v3199_v5 = vpack.c.bf16 %v8179_v57, %v8177_v47  ;;  %v11780_v6 = vpack.c.bf16 %v8243_v58, %v8241_v55  ;;  %v9664_v55 = vld [vmem:[%s12560_s3 + $0x3c8] ss:$16 sps:$4 sm:$0xff]   ;;  %v9663_v57 = vld [vmem:[%s12560_s3 + $0x3e4] ss:$16 sps:$4 sm:$0xff]   ;;  %v9669_v58 = vld [vmem:[%s12560_s3 + $0x3ec] ss:$16 sps:$4 sm:$0xff]  }
 0x2dd   :  { %v3200_v7 = vpack.c.bf16 %v8180_v3, %v8178_v1  ;;  %v11782_v8 = vpack.c.bf16 %v8244_v4, %v8242_v2  ;;  %4245 = vmatpush1.bf16.msra.mxu0 %v9625_v50  ;;  %4631 = vmatpush1.bf16.msra.mxu1 %v9649_v51  ;;  %v9652_v51 = vld [vmem:[%s12560_s3 + $0x3c0] ss:$16 sps:$4 sm:$0xff]  }
 0x2de   :  { %4246 = vmatprep.subr.bf16.mxu0 %v9636_v63  ;;  %4632 = vmatprep.subr.bf16.mxu1 %v9657_v0  ;;  %v9661_v4 = vld [vmem:[%s12560_s3 + $0x3e0] ss:$16 sps:$4 sm:$0xff]  }
 0x2df   :  { %v2314_v13 = vpop.f32.mrb[28].mxu0  ;;  %v3086_v14 = vpop.f32.mrb[28].mxu1  ;;  %4121 = vmatprep.mubr.bf16.mxu0 %v3200_v7  ;;  %4507 = vmatprep.mubr.bf16.mxu1 %v3200_v7 }
 0x2e0   :  { %v2316_v15 = vpop.f32.mrb[29].mxu0  ;;  %v3088_v17 = vpop.f32.mrb[29].mxu1  ;;  %4122 = vmatmul.mubr.bf16.gmra.mrb[88].mxu0 %v3199_v5  ;;  %4508 = vmatmul.mubr.bf16.gmra.mrb[88].mxu1 %v3199_v5  ;;  %v8181_v19 = vadd.f32 %v2314_v13, %v11545_v30  ;;  %v8245_v27 = vadd.f32 %v3086_v14, %v11548_v31  ;;  %v9667_v5 = vld [vmem:[%s12560_s3 + $0x3e8] ss:$16 sps:$4 sm:$0xff]  }
 0x2e1   :  { %v2318_v21 = vpop.f32.mrb[30].mxu0  ;;  %v3090_v23 = vpop.f32.mrb[30].mxu1  ;;  %4247 = vmatpush1.bf16.msra.mxu0 %v9634_v9  ;;  %4633 = vmatpush1.bf16.msra.mxu1 %v9655_v10  ;;  %v8182_v43 = vadd.f32 %v2316_v15, %v11551_v34  ;;  %v8246_v44 = vadd.f32 %v3088_v17, %v11554_v35 }
 0x2e2   :  { %v8183_v32 = vadd.f32 %v2318_v21, %v11545_v30  ;;  %v8247_v36 = vadd.f32 %v3090_v23, %v11548_v31  ;;  %v2320_v39 = vpop.f32.mrb[31].mxu0  ;;  %v3092_v40 = vpop.f32.mrb[31].mxu1  ;;  %4248 = vmatprep.subr.bf16.mxu0 %v9645_v11  ;;  %4634 = vmatprep.subr.bf16.mxu1 %v9660_v12 }
 0x2e3   :  { %v8184_v45 = vadd.f32 %v2320_v39, %v11551_v34  ;;  %v8248_v46 = vadd.f32 %v3092_v40, %v11554_v35 }
 0x2e4   :  { %v3203_v47 = vpack.c.bf16 %v8183_v32, %v8181_v19  ;;  %v11816_v48 = vpack.c.bf16 %v8247_v36, %v8245_v27 }
 0x2e5   :  { %v3204_v49 = vpack.c.bf16 %v8184_v45, %v8182_v43  ;;  %v11818_v50 = vpack.c.bf16 %v8248_v46, %v8246_v44  ;;  %4249 = vmatpush1.bf16.msra.mxu0 %v9643_v24  ;;  %4635 = vmatpush1.bf16.msra.mxu1 %v9658_v37 }
 0x2e6   :  { %4250 = vmatprep.subr.bf16.mxu0 %v9654_v41  ;;  %4636 = vmatprep.subr.bf16.mxu1 %v9666_v42 }
 0x2e7   :  { %v2324_v59 = vpop.f32.mrb[32].mxu0  ;;  %v3096_v61 = vpop.f32.mrb[32].mxu1  ;;  %4131 = vmatprep.mubr.bf16.mxu0 %v3204_v49  ;;  %4517 = vmatprep.mubr.bf16.mxu1 %v3204_v49 }
 0x2e8   :  { %v2326_v63 = vpop.f32.mrb[33].mxu0  ;;  %v3098_v0 = vpop.f32.mrb[33].mxu1  ;;  %4132 = vmatmul.mubr.bf16.gmra.mrb[92].mxu0 %v3203_v47  ;;  %4518 = vmatmul.mubr.bf16.gmra.mrb[92].mxu1 %v3203_v47  ;;  %v8185_v1 = vadd.f32 %v2324_v59, %v11545_v30  ;;  %v8249_v7 = vadd.f32 %v3096_v61, %v11548_v31 }
 0x2e9   :  { %v2328_v2 = vpop.f32.mrb[34].mxu0  ;;  %v3100_v3 = vpop.f32.mrb[34].mxu1  ;;  %4251 = vmatpush1.bf16.msra.mxu0 %v9652_v51  ;;  %4637 = vmatpush1.bf16.msra.mxu1 %v9664_v55  ;;  %v8186_v13 = vadd.f32 %v2326_v63, %v11551_v34  ;;  %v8250_v14 = vadd.f32 %v3098_v0, %v11554_v35 }
 0x2ea   :  { %v8187_v9 = vadd.f32 %v2328_v2, %v11545_v30  ;;  %v8251_v10 = vadd.f32 %v3100_v3, %v11548_v31  ;;  %v2330_v11 = vpop.f32.mrb[35].mxu0  ;;  %v3102_v12 = vpop.f32.mrb[35].mxu1  ;;  %4252 = vmatprep.subr.bf16.mxu0 %v9663_v57  ;;  %4638 = vmatprep.subr.bf16.mxu1 %v9669_v58 }
 0x2eb   :  { %v8188_v15 = vadd.f32 %v2330_v11, %v11551_v34  ;;  %v8252_v17 = vadd.f32 %v3102_v12, %v11554_v35 }
 0x2ec   :  { %v3207_v19 = vpack.c.bf16 %v8187_v9, %v8185_v1  ;;  %v11846_v21 = vpack.c.bf16 %v8251_v10, %v8249_v7 }
 0x2ed   :  { %v3208_v23 = vpack.c.bf16 %v8188_v15, %v8186_v13  ;;  %v11848_v24 = vpack.c.bf16 %v8252_v17, %v8250_v14  ;;  %4253 = vmatpush1.bf16.msra.mxu0 %v9661_v4  ;;  %4639 = vmatpush1.bf16.msra.mxu1 %v9667_v5 }
 0x2ef   :  { %v2334_v37 = vpop.f32.mrb[36].mxu0  ;;  %v3106_v27 = vpop.f32.mrb[36].mxu1  ;;  %4141 = vmatprep.mubr.bf16.mxu0 %v3208_v23  ;;  %4527 = vmatprep.mubr.bf16.mxu1 %v3208_v23 }
 0x2f0   :  { %v2336_v32 = vpop.f32.mrb[37].mxu0  ;;  %v3108_v36 = vpop.f32.mrb[37].mxu1  ;;  %4142 = vmatmul.mubr.bf16.gmra.mrb[96].mxu0 %v3207_v19  ;;  %4528 = vmatmul.mubr.bf16.gmra.mrb[96].mxu1 %v3207_v19  ;;  %v8189_v41 = vadd.f32 %v2334_v37, %v11545_v30  ;;  %v8253_v42 = vadd.f32 %v3106_v27, %v11548_v31 }
 0x2f1   :  { %v2338_v39 = vpop.f32.mrb[38].mxu0  ;;  %v3110_v40 = vpop.f32.mrb[38].mxu1  ;;  %v8190_v47 = vadd.f32 %v2336_v32, %v11551_v34  ;;  %v8254_v49 = vadd.f32 %v3108_v36, %v11554_v35 }
 0x2f2   :  { %v8191_v43 = vadd.f32 %v2338_v39, %v11545_v30  ;;  %v8255_v44 = vadd.f32 %v3110_v40, %v11548_v31  ;;  %v2340_v45 = vpop.f32.mrb[39].mxu0  ;;  %v3112_v46 = vpop.f32.mrb[39].mxu1 }
 0x2f3   :  { %v8192_v51 = vadd.f32 %v2340_v45, %v11551_v34  ;;  %v8256_v55 = vadd.f32 %v3112_v46, %v11554_v35 }
 0x2f4   :  { %v3211_v57 = vpack.c.bf16 %v8191_v43, %v8189_v41  ;;  %v11858_v58 = vpack.c.bf16 %v8255_v44, %v8253_v42 }
 0x2f5   :  { %v3212_v59 = vpack.c.bf16 %v8192_v51, %v8190_v47  ;;  %v11860_v61 = vpack.c.bf16 %v8256_v55, %v8254_v49 }
 0x2f7   :  { %v2344_v63 = vpop.f32.mrb[40].mxu0  ;;  %v3116_v0 = vpop.f32.mrb[40].mxu1  ;;  %4151 = vmatprep.mubr.bf16.mxu0 %v3212_v59  ;;  %4537 = vmatprep.mubr.bf16.mxu1 %v3212_v59 }
 0x2f8   :  { %v2346_v1 = vpop.f32.mrb[41].mxu0  ;;  %v3118_v2 = vpop.f32.mrb[41].mxu1  ;;  %4152 = vmatmul.mubr.bf16.gmra.mrb[100].mxu0 %v3211_v57  ;;  %4538 = vmatmul.mubr.bf16.gmra.mrb[100].mxu1 %v3211_v57  ;;  %v8193_v5 = vadd.f32 %v2344_v63, %v11545_v30  ;;  %v8257_v7 = vadd.f32 %v3116_v0, %v11548_v31 }
 0x2f9   :  { %v2348_v3 = vpop.f32.mrb[42].mxu0  ;;  %v3120_v4 = vpop.f32.mrb[42].mxu1  ;;  %v8194_v13 = vadd.f32 %v2346_v1, %v11551_v34  ;;  %v8258_v14 = vadd.f32 %v3118_v2, %v11554_v35 }
 0x2fa   :  { %v8195_v9 = vadd.f32 %v2348_v3, %v11545_v30  ;;  %v8259_v10 = vadd.f32 %v3120_v4, %v11548_v31  ;;  %v2350_v11 = vpop.f32.mrb[43].mxu0  ;;  %v3122_v12 = vpop.f32.mrb[43].mxu1 }
 0x2fb   :  { %v8196_v15 = vadd.f32 %v2350_v11, %v11551_v34  ;;  %v8260_v17 = vadd.f32 %v3122_v12, %v11554_v35  ;;  %v9672_v11 = vld [vmem:[#allocation2 + $0x4] ss:$16 sps:$4 sm:$0xff]  }
 0x2fc   :  { %v3215_v19 = vpack.c.bf16 %v8195_v9, %v8193_v5  ;;  %v11870_v23 = vpack.c.bf16 %v8259_v10, %v8257_v7  ;;  %5655 = vmatprep.subr.bf16.mxu0 %v9672_v11 }
 0x2fd   :  { %v3216_v37 = vpack.c.bf16 %v8196_v15, %v8194_v13  ;;  %v11872_v27 = vpack.c.bf16 %v8260_v17, %v8258_v14 }
 0x2ff   :  { %v2354_v32 = vpop.f32.mrb[44].mxu0  ;;  %v3126_v36 = vpop.f32.mrb[44].mxu1  ;;  %4161 = vmatprep.mubr.bf16.mxu0 %v3216_v37  ;;  %4547 = vmatprep.mubr.bf16.mxu1 %v3216_v37  ;;  %v9675_v37 = vld [vmem:[#allocation2 + $0xc] ss:$16 sps:$4 sm:$0xff]  }
 0x300   :  { %v2356_v39 = vpop.f32.mrb[45].mxu0  ;;  %v3128_v40 = vpop.f32.mrb[45].mxu1  ;;  %4162 = vmatmul.mubr.bf16.gmra.mrb[104].mxu0 %v3215_v19  ;;  %4548 = vmatmul.mubr.bf16.gmra.mrb[104].mxu1 %v3215_v19  ;;  %v8197_v43 = vadd.f32 %v2354_v32, %v11545_v30  ;;  %v8261_v44 = vadd.f32 %v3126_v36, %v11548_v31 }
 0x301   :  { %v2358_v41 = vpop.f32.mrb[46].mxu0  ;;  %v3130_v42 = vpop.f32.mrb[46].mxu1  ;;  %v8198_v51 = vadd.f32 %v2356_v39, %v11551_v34  ;;  %v8262_v55 = vadd.f32 %v3128_v40, %v11554_v35  ;;  %6041 = vmatprep.subr.bf16.mxu1 %v9675_v37 }
 0x302   :  { %v8199_v45 = vadd.f32 %v2358_v41, %v11545_v30  ;;  %v8263_v46 = vadd.f32 %v3130_v42, %v11548_v31  ;;  %v2360_v47 = vpop.f32.mrb[47].mxu0  ;;  %v3132_v49 = vpop.f32.mrb[47].mxu1 }
 0x303   :  { %v8200_v57 = vadd.f32 %v2360_v47, %v11551_v34  ;;  %v8264_v59 = vadd.f32 %v3132_v49, %v11554_v35 }
 0x304   :  { %v3219_v63 = vpack.c.bf16 %v8199_v45, %v8197_v43  ;;  %v11882_v0 = vpack.c.bf16 %v8263_v46, %v8261_v44 }
 0x305   :  { %v3220_v1 = vpack.c.bf16 %v8200_v57, %v8198_v51  ;;  %v11884_v2 = vpack.c.bf16 %v8264_v59, %v8262_v55 }
 0x307   :  { %v2364_v3 = vpop.f32.mrb[48].mxu0  ;;  %v3136_v4 = vpop.f32.mrb[48].mxu1  ;;  %4171 = vmatprep.mubr.bf16.mxu0 %v3220_v1  ;;  %4557 = vmatprep.mubr.bf16.mxu1 %v3220_v1 }
 0x308   :  { %v2366_v5 = vpop.f32.mrb[49].mxu0  ;;  %v3138_v7 = vpop.f32.mrb[49].mxu1  ;;  %4172 = vmatmul.mubr.bf16.gmra.mrb[108].mxu0 %v3219_v63  ;;  %4558 = vmatmul.mubr.bf16.gmra.mrb[108].mxu1 %v3219_v63  ;;  %v8201_v12 = vadd.f32 %v2364_v3, %v11545_v30  ;;  %v8265_v13 = vadd.f32 %v3136_v4, %v11548_v31 }
 0x309   :  { %v2368_v9 = vpop.f32.mrb[50].mxu0  ;;  %v3140_v10 = vpop.f32.mrb[50].mxu1  ;;  %v8202_v32 = vadd.f32 %v2366_v5, %v11551_v34  ;;  %v8266_v36 = vadd.f32 %v3138_v7, %v11554_v35 }
 0x30a   :  { %v8203_v14 = vadd.f32 %v2368_v9, %v11545_v30  ;;  %v8267_v15 = vadd.f32 %v3140_v10, %v11548_v31  ;;  %v2370_v17 = vpop.f32.mrb[51].mxu0  ;;  %v3142_v19 = vpop.f32.mrb[51].mxu1 }
 0x30b   :  { %v8204_v39 = vadd.f32 %v2370_v17, %v11551_v34  ;;  %v8268_v40 = vadd.f32 %v3142_v19, %v11554_v35 }
 0x30c   :  { %v3223_v41 = vpack.c.bf16 %v8203_v14, %v8201_v12  ;;  %v11894_v42 = vpack.c.bf16 %v8267_v15, %v8265_v13 }
 0x30d   :  { %v3224_v43 = vpack.c.bf16 %v8204_v39, %v8202_v32  ;;  %v11896_v44 = vpack.c.bf16 %v8268_v40, %v8266_v36 }
 0x30f   :  { %v2374_v45 = vpop.f32.mrb[52].mxu0  ;;  %v3146_v46 = vpop.f32.mrb[52].mxu1  ;;  %4181 = vmatprep.mubr.bf16.mxu0 %v3224_v43  ;;  %4567 = vmatprep.mubr.bf16.mxu1 %v3224_v43 }
 0x310   :  { %v2376_v47 = vpop.f32.mrb[53].mxu0  ;;  %v3148_v49 = vpop.f32.mrb[53].mxu1  ;;  %4182 = vmatmul.mubr.bf16.gmra.mrb[112].mxu0 %v3223_v41  ;;  %4568 = vmatmul.mubr.bf16.gmra.mrb[112].mxu1 %v3223_v41  ;;  %v8205_v57 = vadd.f32 %v2374_v45, %v11545_v30  ;;  %v8269_v59 = vadd.f32 %v3146_v46, %v11548_v31 }
 0x311   :  { %v2378_v51 = vpop.f32.mrb[54].mxu0  ;;  %v3150_v55 = vpop.f32.mrb[54].mxu1  ;;  %v8206_v5 = vadd.f32 %v2376_v47, %v11551_v34  ;;  %v8270_v7 = vadd.f32 %v3148_v49, %v11554_v35 }
 0x312   :  { %v8207_v63 = vadd.f32 %v2378_v51, %v11545_v30  ;;  %v8271_v1 = vadd.f32 %v3150_v55, %v11548_v31  ;;  %v2380_v3 = vpop.f32.mrb[55].mxu0  ;;  %v3152_v4 = vpop.f32.mrb[55].mxu1 }
 0x313   :  { %v8208_v9 = vadd.f32 %v2380_v3, %v11551_v34  ;;  %v8272_v10 = vadd.f32 %v3152_v4, %v11554_v35 }
 0x314   :  { %v3227_v11 = vpack.c.bf16 %v8207_v63, %v8205_v57  ;;  %v11906_v12 = vpack.c.bf16 %v8271_v1, %v8269_v59 }
 0x315   :  { %v3228_v13 = vpack.c.bf16 %v8208_v9, %v8206_v5  ;;  %v11908_v14 = vpack.c.bf16 %v8272_v10, %v8270_v7 }
 0x317   :  { %v2384_v15 = vpop.f32.mrb[56].mxu0  ;;  %v3156_v17 = vpop.f32.mrb[56].mxu1  ;;  %4191 = vmatprep.mubr.bf16.mxu0 %v3228_v13  ;;  %4577 = vmatprep.mubr.bf16.mxu1 %v3228_v13 }
 0x318   :  { %v2386_v19 = vpop.f32.mrb[57].mxu0  ;;  %v3158_v37 = vpop.f32.mrb[57].mxu1  ;;  %4192 = vmatmul.mubr.bf16.gmra.mrb[116].mxu0 %v3227_v11  ;;  %4578 = vmatmul.mubr.bf16.gmra.mrb[116].mxu1 %v3227_v11  ;;  %v8209_v39 = vadd.f32 %v2384_v15, %v11545_v30  ;;  %v8273_v40 = vadd.f32 %v3156_v17, %v11548_v31 }
 0x319   :  { %v2388_v32 = vpop.f32.mrb[58].mxu0  ;;  %v3160_v36 = vpop.f32.mrb[58].mxu1  ;;  %v8210_v47 = vadd.f32 %v2386_v19, %v11551_v34  ;;  %v8274_v49 = vadd.f32 %v3158_v37, %v11554_v35 }
 0x31a   :  { %v8211_v41 = vadd.f32 %v2388_v32, %v11545_v30  ;;  %v8275_v43 = vadd.f32 %v3160_v36, %v11548_v31  ;;  %v2390_v45 = vpop.f32.mrb[59].mxu0  ;;  %v3162_v46 = vpop.f32.mrb[59].mxu1 }
 0x31b   :  { %v8212_v51 = vadd.f32 %v2390_v45, %v11551_v34  ;;  %v8276_v55 = vadd.f32 %v3162_v46, %v11554_v35 }
 0x31c   :  { %v3231_v57 = vpack.c.bf16 %v8211_v41, %v8209_v39  ;;  %v11918_v59 = vpack.c.bf16 %v8275_v43, %v8273_v40 }
 0x31d   :  { %v3232_v63 = vpack.c.bf16 %v8212_v51, %v8210_v47  ;;  %v11920_v1 = vpack.c.bf16 %v8276_v55, %v8274_v49  ;;  %v9678_v47 = vld [vmem:[#allocation2 + $0x24] ss:$16 sps:$4 sm:$0xff]   ;;  %v9679_v49 = vld [vmem:[#allocation2 + $0x28] ss:$16 sps:$4 sm:$0xff]   ;;  %v9682_v55 = vld [vmem:[#allocation2 + $0x40] ss:$16 sps:$4 sm:$0xff]  }
 0x31e   :  { %v9684_v51 = vld [vmem:[#allocation2 + $0x44] ss:$16 sps:$4 sm:$0xff]  }
 0x31f   :  { %v2394_v3 = vpop.f32.mrb[60].mxu0  ;;  %v3166_v4 = vpop.f32.mrb[60].mxu1  ;;  %4201 = vmatprep.mubr.bf16.mxu0 %v3232_v63  ;;  %4587 = vmatprep.mubr.bf16.mxu1 %v3232_v63  ;;  %v9690_v63 = vld [vmem:[#allocation2 + $0x64] ss:$16 sps:$4 sm:$0xff]  }
 0x320   :  { %v2396_v5 = vpop.f32.mrb[61].mxu0  ;;  %v3168_v7 = vpop.f32.mrb[61].mxu1  ;;  %4202 = vmatmul.mubr.bf16.gmra.mrb[120].mxu0 %v3231_v57  ;;  %4588 = vmatmul.mubr.bf16.gmra.mrb[120].mxu1 %v3231_v57  ;;  %v8213_v11 = vadd.f32 %v2394_v3, %v11545_v30  ;;  %v8277_v13 = vadd.f32 %v3166_v4, %v11548_v31  ;;  %v9685_v57 = vld [vmem:[#allocation2 + $0x48] ss:$16 sps:$4 sm:$0xff]   ;;  %v9696_v4 = vld [vmem:[#allocation2 + $0x84] ss:$16 sps:$4 sm:$0xff]  }
 0x321   :  { %v2398_v9 = vpop.f32.mrb[62].mxu0  ;;  %v3170_v10 = vpop.f32.mrb[62].mxu1  ;;  %v8214_v32 = vadd.f32 %v2396_v5, %v11551_v34  ;;  %v8278_v36 = vadd.f32 %v3168_v7, %v11554_v35  ;;  %v9691_v3 = vld [vmem:[#allocation2 + $0x68] ss:$16 sps:$4 sm:$0xff]   ;;  %v9699_v5 = vld [vmem:[#allocation2 + $0x8c] ss:$16 sps:$4 sm:$0xff]  }
 0x322   :  { %v8215_v15 = vadd.f32 %v2398_v9, %v11545_v30  ;;  %v8279_v17 = vadd.f32 %v3170_v10, %v11548_v31  ;;  %v2400_v19 = vpop.f32.mrb[63].mxu0  ;;  %v3172_v37 = vpop.f32.mrb[63].mxu1  ;;  %v9670_v30 = vld [vmem:[#allocation2] ss:$16 sps:$4 sm:$0xff]   ;;  %v9673_v31 = vld [vmem:[#allocation2 + $0x8] ss:$16 sps:$4 sm:$0xff]  }
 0x323   :  { %v8216_v39 = vadd.f32 %v2400_v19, %v11551_v34  ;;  %v8280_v40 = vadd.f32 %v3172_v37, %v11554_v35  ;;  %v9681_v34 = vld [vmem:[#allocation2 + $0x2c] ss:$16 sps:$4 sm:$0xff]   ;;  %v9676_v35 = vld [vmem:[#allocation2 + $0x20] ss:$16 sps:$4 sm:$0xff]   ;;  %v9697_v9 = vld [vmem:[#allocation2 + $0x88] ss:$16 sps:$4 sm:$0xff]  }
 0x324   :  { %v3235_v41 = vpack.c.bf16 %v8215_v15, %v8213_v11  ;;  %v11930_v43 = vpack.c.bf16 %v8279_v17, %v8277_v13  ;;  %v9694_v7 = vld [vmem:[#allocation2 + $0x80] ss:$16 sps:$4 sm:$0xff]   ;;  %v9702_v10 = vld [vmem:[#allocation2 + $0xa4] ss:$16 sps:$4 sm:$0xff]   ;;  %v9703_v11 = vld [vmem:[#allocation2 + $0xa8] ss:$16 sps:$4 sm:$0xff]  }
 0x325   :  { %v3236_v45 = vpack.c.bf16 %v8216_v39, %v8214_v32  ;;  %v11932_v46 = vpack.c.bf16 %v8280_v40, %v8278_v36  ;;  %v9708_v13 = vld [vmem:[#allocation2 + $0xc4] ss:$16 sps:$4 sm:$0xff]   ;;  %v9711_v15 = vld [vmem:[#allocation2 + $0xcc] ss:$16 sps:$4 sm:$0xff]   ;;  %v9706_v17 = vld [vmem:[#allocation2 + $0xc0] ss:$16 sps:$4 sm:$0xff]  }
 0x326   :  { %v9709_v19 = vld [vmem:[#allocation2 + $0xc8] ss:$16 sps:$4 sm:$0xff]   ;;  %v9714_v37 = vld [vmem:[#allocation2 + $0xe4] ss:$16 sps:$4 sm:$0xff]   ;;  %v9723_v39 = vld [vmem:[#allocation2 + $0x10c] ss:$16 sps:$4 sm:$0xff]  }
 0x327   :  { %4211 = vmatprep.mubr.bf16.mxu0 %v3236_v45  ;;  %4597 = vmatprep.mubr.bf16.mxu1 %v3236_v45  ;;  %v9715_v32 = vld [vmem:[#allocation2 + $0xe8] ss:$16 sps:$4 sm:$0xff]   ;;  %v9720_v36 = vld [vmem:[#allocation2 + $0x104] ss:$16 sps:$4 sm:$0xff]   ;;  %v9718_v40 = vld [vmem:[#allocation2 + $0x100] ss:$16 sps:$4 sm:$0xff]  }
 0x328   :  { %4212 = vmatmul.mubr.bf16.gmra.mrb[124].mxu0 %v3235_v41  ;;  %4598 = vmatmul.mubr.bf16.gmra.mrb[124].mxu1 %v3235_v41  ;;  %v9721_v41 = vld [vmem:[#allocation2 + $0x108] ss:$16 sps:$4 sm:$0xff]   ;;  %v9726_v45 = vld [vmem:[#allocation2 + $0x124] ss:$16 sps:$4 sm:$0xff]  }
 0x329   :  { %4254 = vmatprep.mubr.bf16.mxu0 %v11566_v54  ;;  %4640 = vmatprep.mubr.bf16.mxu1 %v11566_v54  ;;  %v9687_v54 = vld [vmem:[#allocation2 + $0x4c] ss:$16 sps:$4 sm:$0xff]  }
 0x330   :  { %4255 = vmatmul.mubr.bf16.vlgmr.msra.gmra.mrb[64].mxu0 %v11564_v52  ;;  %4641 = vmatmul.mubr.bf16.vlgmr.msra.gmra.mrb[64].mxu1 %v11564_v52  ;;  %v9693_v52 = vld [vmem:[#allocation2 + $0x6c] ss:$16 sps:$4 sm:$0xff]  }
 0x331   :  { %4264 = vmatprep.mubr.bf16.mxu0 %v11602_v18  ;;  %4650 = vmatprep.mubr.bf16.mxu1 %v11602_v18  ;;  %v9688_v18 = vld [vmem:[#allocation2 + $0x60] ss:$16 sps:$4 sm:$0xff]  }
 0x332   :  { %5656 = vmatpush1.bf16.msra.mxu0 %v9670_v30  ;;  %6042 = vmatpush1.bf16.msra.mxu1 %v9673_v31  ;;  %v9727_v30 = vld [vmem:[#allocation2 + $0x128] ss:$16 sps:$4 sm:$0xff]   ;;  %v9732_v31 = vld [vmem:[#allocation2 + $0x144] ss:$16 sps:$4 sm:$0xff]  }
 0x333   :  { %5657 = vmatprep.subr.bf16.mxu0 %v9678_v47  ;;  %6043 = vmatprep.subr.bf16.mxu1 %v9681_v34  ;;  %v9735_v47 = vld [vmem:[#allocation2 + $0x14c] ss:$16 sps:$4 sm:$0xff]   ;;  %v9730_v34 = vld [vmem:[#allocation2 + $0x140] ss:$16 sps:$4 sm:$0xff]  }
 0x336   :  { %5658 = vmatpush1.bf16.msra.mxu0 %v9676_v35  ;;  %6044 = vmatpush1.bf16.msra.mxu1 %v9679_v49  ;;  %v9733_v35 = vld [vmem:[#allocation2 + $0x148] ss:$16 sps:$4 sm:$0xff]   ;;  %v9738_v49 = vld [vmem:[#allocation2 + $0x164] ss:$16 sps:$4 sm:$0xff]  }
 0x337   :  { %5659 = vmatprep.subr.bf16.mxu0 %v9684_v51  ;;  %6045 = vmatprep.subr.bf16.mxu1 %v9687_v54  ;;  %v9739_v51 = vld [vmem:[#allocation2 + $0x168] ss:$16 sps:$4 sm:$0xff]   ;;  %v9744_v54 = vld [vmem:[#allocation2 + $0x184] ss:$16 sps:$4 sm:$0xff]  }
 0x338   :  { %4265 = vmatmul.mubr.bf16.gmra.mrb[68].mxu0 %v11600_v16  ;;  %4651 = vmatmul.mubr.bf16.gmra.mrb[68].mxu1 %v11600_v16  ;;  %v9705_v16 = vld [vmem:[#allocation2 + $0xac] ss:$16 sps:$4 sm:$0xff]  }
 0x339   :  { %4274 = vmatprep.mubr.bf16.mxu0 %v11638_v56  ;;  %4660 = vmatprep.mubr.bf16.mxu1 %v11638_v56  ;;  %v9700_v56 = vld [vmem:[#allocation2 + $0xa0] ss:$16 sps:$4 sm:$0xff]  }
 0x33a   :  { %5660 = vmatpush1.bf16.msra.mxu0 %v9682_v55  ;;  %6046 = vmatpush1.bf16.msra.mxu1 %v9685_v57  ;;  %v9747_v55 = vld [vmem:[#allocation2 + $0x18c] ss:$16 sps:$4 sm:$0xff]   ;;  %v9742_v57 = vld [vmem:[#allocation2 + $0x180] ss:$16 sps:$4 sm:$0xff]  }
 0x33b   :  { %5661 = vmatprep.subr.bf16.mxu0 %v9690_v63  ;;  %6047 = vmatprep.subr.bf16.mxu1 %v9693_v52  ;;  %v9745_v63 = vld [vmem:[#allocation2 + $0x188] ss:$16 sps:$4 sm:$0xff]   ;;  %v9750_v52 = vld [vmem:[#allocation2 + $0x1a4] ss:$16 sps:$4 sm:$0xff]  }
 0x33e   :  { %5662 = vmatpush1.bf16.msra.mxu0 %v9688_v18  ;;  %6048 = vmatpush1.bf16.msra.mxu1 %v9691_v3  ;;  %v9751_v18 = vld [vmem:[#allocation2 + $0x1a8] ss:$16 sps:$4 sm:$0xff]   ;;  %v9756_v3 = vld [vmem:[#allocation2 + $0x1c4] ss:$16 sps:$4 sm:$0xff]  }
 0x33f   :  { %5663 = vmatprep.subr.bf16.mxu0 %v9696_v4  ;;  %6049 = vmatprep.subr.bf16.mxu1 %v9699_v5  ;;  %v9759_v4 = vld [vmem:[#allocation2 + $0x1cc] ss:$16 sps:$4 sm:$0xff]   ;;  %v9754_v5 = vld [vmem:[#allocation2 + $0x1c0] ss:$16 sps:$4 sm:$0xff]  }
 0x340   :  { %4275 = vmatmul.mubr.bf16.gmra.mrb[72].mxu0 %v11636_v53  ;;  %4661 = vmatmul.mubr.bf16.gmra.mrb[72].mxu1 %v11636_v53  ;;  %v9717_v53 = vld [vmem:[#allocation2 + $0xec] ss:$16 sps:$4 sm:$0xff]  }
 0x341   :  { %4284 = vmatprep.mubr.bf16.mxu0 %v11674_v22  ;;  %4670 = vmatprep.mubr.bf16.mxu1 %v11674_v22  ;;  %v9712_v22 = vld [vmem:[#allocation2 + $0xe0] ss:$16 sps:$4 sm:$0xff]  }
 0x342   :  { %5664 = vmatpush1.bf16.msra.mxu0 %v9694_v7  ;;  %6050 = vmatpush1.bf16.msra.mxu1 %v9697_v9  ;;  %v9757_v7 = vld [vmem:[#allocation2 + $0x1c8] ss:$16 sps:$4 sm:$0xff]  }
 0x343   :  { %5665 = vmatprep.subr.bf16.mxu0 %v9702_v10  ;;  %6051 = vmatprep.subr.bf16.mxu1 %v9705_v16 }
 0x346   :  { %5666 = vmatpush1.bf16.msra.mxu0 %v9700_v56  ;;  %6052 = vmatpush1.bf16.msra.mxu1 %v9703_v11 }
 0x347   :  { %5667 = vmatprep.subr.bf16.mxu0 %v9708_v13  ;;  %6053 = vmatprep.subr.bf16.mxu1 %v9711_v15 }
 0x348   :  { %4285 = vmatmul.mubr.bf16.gmra.mrb[76].mxu0 %v11672_v20  ;;  %4671 = vmatmul.mubr.bf16.gmra.mrb[76].mxu1 %v11672_v20  ;;  %v9729_v20 = vld [vmem:[#allocation2 + $0x12c] ss:$16 sps:$4 sm:$0xff]  }
 0x349   :  { %4294 = vmatprep.mubr.bf16.mxu0 %v11710_v62  ;;  %4680 = vmatprep.mubr.bf16.mxu1 %v11710_v62  ;;  %v9724_v62 = vld [vmem:[#allocation2 + $0x120] ss:$16 sps:$4 sm:$0xff]  }
 0x34a   :  { %5668 = vmatpush1.bf16.msra.mxu0 %v9706_v17  ;;  %6054 = vmatpush1.bf16.msra.mxu1 %v9709_v19 }
 0x34b   :  { %5669 = vmatprep.subr.bf16.mxu0 %v9714_v37  ;;  %6055 = vmatprep.subr.bf16.mxu1 %v9717_v53 }
 0x34e   :  { %5670 = vmatpush1.bf16.msra.mxu0 %v9712_v22  ;;  %6056 = vmatpush1.bf16.msra.mxu1 %v9715_v32  ;;  %v9766_v32 = vld [vmem:[#allocation2 + $0x200] ss:$16 sps:$4 sm:$0xff]  }
 0x34f   :  { %5671 = vmatprep.subr.bf16.mxu0 %v9720_v36  ;;  %6057 = vmatprep.subr.bf16.mxu1 %v9723_v39  ;;  %v9769_v36 = vld [vmem:[#allocation2 + $0x208] ss:$16 sps:$4 sm:$0xff]   ;;  %v9774_v39 = vld [vmem:[#allocation2 + $0x224] ss:$16 sps:$4 sm:$0xff]  }
 0x350   :  { %4295 = vmatmul.mubr.bf16.gmra.mrb[80].mxu0 %v11708_v60  ;;  %4681 = vmatmul.mubr.bf16.gmra.mrb[80].mxu1 %v11708_v60  ;;  %v9741_v60 = vld [vmem:[#allocation2 + $0x16c] ss:$16 sps:$4 sm:$0xff]  }
 0x351   :  { %4304 = vmatprep.mubr.bf16.mxu0 %v11746_v38  ;;  %4690 = vmatprep.mubr.bf16.mxu1 %v11746_v38  ;;  %v9736_v38 = vld [vmem:[#allocation2 + $0x160] ss:$16 sps:$4 sm:$0xff]  }
 0x352   :  { %5672 = vmatpush1.bf16.msra.mxu0 %v9718_v40  ;;  %6058 = vmatpush1.bf16.msra.mxu1 %v9721_v41  ;;  %v9777_v40 = vld [vmem:[#allocation2 + $0x22c] ss:$16 sps:$4 sm:$0xff]  }
 0x353   :  { %5673 = vmatprep.subr.bf16.mxu0 %v9726_v45  ;;  %6059 = vmatprep.subr.bf16.mxu1 %v9729_v20 }
 0x356   :  { %5674 = vmatpush1.bf16.msra.mxu0 %v9724_v62  ;;  %6060 = vmatpush1.bf16.msra.mxu1 %v9727_v30 }
 0x357   :  { %5675 = vmatprep.subr.bf16.mxu0 %v9732_v31  ;;  %6061 = vmatprep.subr.bf16.mxu1 %v9735_v47 }
 0x358   :  { %4305 = vmatmul.mubr.bf16.gmra.mrb[84].mxu0 %v11744_v33  ;;  %4691 = vmatmul.mubr.bf16.gmra.mrb[84].mxu1 %v11744_v33  ;;  %v9753_v33 = vld [vmem:[#allocation2 + $0x1ac] ss:$16 sps:$4 sm:$0xff]  }
 0x359   :  { %4314 = vmatprep.mubr.bf16.mxu0 %v11782_v8  ;;  %4700 = vmatprep.mubr.bf16.mxu1 %v11782_v8  ;;  %v9748_v8 = vld [vmem:[#allocation2 + $0x1a0] ss:$16 sps:$4 sm:$0xff]  }
 0x35a   :  { %5676 = vmatpush1.bf16.msra.mxu0 %v9730_v34  ;;  %6062 = vmatpush1.bf16.msra.mxu1 %v9733_v35  ;;  %v9772_v34 = vld [vmem:[#allocation2 + $0x220] ss:$16 sps:$4 sm:$0xff]   ;;  %v9775_v35 = vld [vmem:[#allocation2 + $0x228] ss:$16 sps:$4 sm:$0xff]  }
 0x35b   :  { %5677 = vmatprep.subr.bf16.mxu0 %v9738_v49  ;;  %6063 = vmatprep.subr.bf16.mxu1 %v9741_v60 }
 0x35e   :  { %5678 = vmatpush1.bf16.msra.mxu0 %v9736_v38  ;;  %6064 = vmatpush1.bf16.msra.mxu1 %v9739_v51 }
 0x35f   :  { %5679 = vmatprep.subr.bf16.mxu0 %v9744_v54  ;;  %6065 = vmatprep.subr.bf16.mxu1 %v9747_v55  ;;  %v9780_v55 = vld [vmem:[#allocation2 + $0x244] ss:$16 sps:$4 sm:$0xff]  }
 0x360   :  { %4315 = vmatmul.mubr.bf16.gmra.mrb[88].mxu0 %v11780_v6  ;;  %4701 = vmatmul.mubr.bf16.gmra.mrb[88].mxu1 %v11780_v6  ;;  %v9762_v6 = vld [vmem:[#allocation2 + $0x1e4] ss:$16 sps:$4 sm:$0xff]  }
 0x361   :  { %4324 = vmatprep.mubr.bf16.mxu0 %v11818_v50  ;;  %4710 = vmatprep.mubr.bf16.mxu1 %v11818_v50  ;;  %v9765_v50 = vld [vmem:[#allocation2 + $0x1ec] ss:$16 sps:$4 sm:$0xff]  }
 0x362   :  { %5680 = vmatpush1.bf16.msra.mxu0 %v9742_v57  ;;  %6066 = vmatpush1.bf16.msra.mxu1 %v9745_v63  ;;  %v9783_v57 = vld [vmem:[#allocation2 + $0x24c] ss:$16 sps:$4 sm:$0xff]  }
 0x363   :  { %5681 = vmatprep.subr.bf16.mxu0 %v9750_v52  ;;  %6067 = vmatprep.subr.bf16.mxu1 %v9753_v33 }
 0x366   :  { %5682 = vmatpush1.bf16.msra.mxu0 %v9748_v8  ;;  %6068 = vmatpush1.bf16.msra.mxu1 %v9751_v18 }
 0x367   :  { %5683 = vmatprep.subr.bf16.mxu0 %v9756_v3  ;;  %6069 = vmatprep.subr.bf16.mxu1 %v9759_v4 }
 0x368   :  { %4325 = vmatmul.mubr.bf16.gmra.mrb[92].mxu0 %v11816_v48  ;;  %4711 = vmatmul.mubr.bf16.gmra.mrb[92].mxu1 %v11816_v48  ;;  %v9760_v48 = vld [vmem:[#allocation2 + $0x1e0] ss:$16 sps:$4 sm:$0xff]  }
 0x369   :  { %4334 = vmatprep.mubr.bf16.mxu0 %v11848_v24  ;;  %4720 = vmatprep.mubr.bf16.mxu1 %v11848_v24  ;;  %v9768_v24 = vld [vmem:[#allocation2 + $0x204] ss:$16 sps:$4 sm:$0xff]  }
 0x36a   :  { %5684 = vmatpush1.bf16.msra.mxu0 %v9754_v5  ;;  %6070 = vmatpush1.bf16.msra.mxu1 %v9757_v7  ;;  %v9778_v7 = vld [vmem:[#allocation2 + $0x240] ss:$16 sps:$4 sm:$0xff]  }
 0x36b   :  { %5685 = vmatprep.subr.bf16.mxu0 %v9762_v6  ;;  %6071 = vmatprep.subr.bf16.mxu1 %v9765_v50  ;;  %v9781_v6 = vld [vmem:[#allocation2 + $0x248] ss:$16 sps:$4 sm:$0xff]   ;;  %v9789_v50 = vld [vmem:[#allocation2 + $0x26c] ss:$16 sps:$4 sm:$0xff]  }
 0x36e   :  { %5686 = vmatpush1.bf16.msra.mxu0 %v9760_v48  ;;  %v9786_v48 = vld [vmem:[#allocation2 + $0x264] ss:$16 sps:$4 sm:$0xff]  }
 0x36f   :  { %5848 = vmatprep.subr.bf16.mxu0 %v9768_v24 }
 0x370   :  { %4335 = vmatmul.mubr.bf16.gmra.mrb[96].mxu0 %v11846_v21  ;;  %4721 = vmatmul.mubr.bf16.gmra.mrb[96].mxu1 %v11846_v21  ;;  %v9763_v21 = vld [vmem:[#allocation2 + $0x1e8] ss:$16 sps:$4 sm:$0xff]  }
 0x371   :  { %4344 = vmatprep.mubr.bf16.mxu0 %v11860_v61  ;;  %4730 = vmatprep.mubr.bf16.mxu1 %v11860_v61  ;;  %v3367_v61 = vld [vmem:[%s12561_s4] sm:$0xf] }
 0x372   :  { %6072 = vmatpush1.bf16.msra.mxu1 %v9763_v21 }
 0x378   :  { %4345 = vmatmul.mubr.bf16.gmra.mrb[100].mxu0 %v11858_v58  ;;  %4731 = vmatmul.mubr.bf16.gmra.mrb[100].mxu1 %v11858_v58  ;;  %v9771_v58 = vld [vmem:[#allocation2 + $0x20c] ss:$16 sps:$4 sm:$0xff]  }
 0x379   :  { %4354 = vmatprep.mubr.bf16.mxu0 %v11872_v27  ;;  %4740 = vmatprep.mubr.bf16.mxu1 %v11872_v27  ;;  %v12005_v27 = vrot.slane %v3367_v61, %v11535_v26 }
 0x37a   :  { %6234 = vmatprep.subr.bf16.mxu1 %v9771_v58 }
 0x380   :  { %4355 = vmatmul.mubr.bf16.gmra.mrb[104].mxu0 %v11870_v23  ;;  %4741 = vmatmul.mubr.bf16.gmra.mrb[104].mxu1 %v11870_v23  ;;  %v12002_v23 = vrot.slane %v3367_v61, %v11533_v25 }
 0x381   :  { %4364 = vmatprep.mubr.bf16.mxu0 %v11884_v2  ;;  %4750 = vmatprep.mubr.bf16.mxu1 %v11884_v2 }
 0x388   :  { %4365 = vmatmul.mubr.bf16.gmra.mrb[108].mxu0 %v11882_v0  ;;  %4751 = vmatmul.mubr.bf16.gmra.mrb[108].mxu1 %v11882_v0 }
 0x389   :  { %4374 = vmatprep.mubr.bf16.mxu0 %v11896_v44  ;;  %4760 = vmatprep.mubr.bf16.mxu1 %v11896_v44  ;;  %v12011_v44 = vrot.slane %v3367_v61, %v11542_v29 }
 0x390   :  { %4375 = vmatmul.mubr.bf16.gmra.mrb[112].mxu0 %v11894_v42  ;;  %4761 = vmatmul.mubr.bf16.gmra.mrb[112].mxu1 %v11894_v42  ;;  %v12008_v42 = vrot.slane %v3367_v61, %v11540_v28 }
 0x391   :  { %4384 = vmatprep.mubr.bf16.mxu0 %v11908_v14  ;;  %4770 = vmatprep.mubr.bf16.mxu1 %v11908_v14 }
 0x398   :  { %4385 = vmatmul.mubr.bf16.gmra.mrb[116].mxu0 %v11906_v12  ;;  %4771 = vmatmul.mubr.bf16.gmra.mrb[116].mxu1 %v11906_v12 }
 0x399   :  { %4394 = vmatprep.mubr.bf16.mxu0 %v11920_v1  ;;  %4780 = vmatprep.mubr.bf16.mxu1 %v11920_v1 }
 0x3a0   :  { %4395 = vmatmul.mubr.bf16.gmra.mrb[120].mxu0 %v11918_v59  ;;  %4781 = vmatmul.mubr.bf16.gmra.mrb[120].mxu1 %v11918_v59 }
 0x3a1   :  { %4404 = vmatprep.mubr.bf16.mxu0 %v11932_v46  ;;  %4790 = vmatprep.mubr.bf16.mxu1 %v11932_v46 }
 0x3a8   :  { %4405 = vmatmul.mubr.bf16.gmra.mrb[124].mxu0 %v11930_v43  ;;  %4791 = vmatmul.mubr.bf16.gmra.mrb[124].mxu1 %v11930_v43 }
 0x403   :  { %v4256_v0 = vpop.f32.mrb[64].mxu0  ;;  %v4642_v2 = vpop.f32.mrb[64].mxu1 }
 0x404   :  { %v4258_v12 = vpop.f32.mrb[65].mxu0  ;;  %v4644_v14 = vpop.f32.mrb[65].mxu1  ;;  %v8281_v43 = vadd.f32 %v4256_v0, %v12002_v23  ;;  %v8345_v46 = vadd.f32 %v4642_v2, %v12005_v27 }
 0x405   :  { %v4260_v59 = vpop.f32.mrb[66].mxu0  ;;  %v4646_v1 = vpop.f32.mrb[66].mxu1  ;;  %v8282_v11 = vadd.f32 %v4258_v12, %v12008_v42  ;;  %v8346_v13 = vadd.f32 %v4644_v14, %v12011_v44  ;;  %v9784_v14 = vld [vmem:[#allocation2 + $0x260] ss:$16 sps:$4 sm:$0xff]  }
 0x406   :  { %v8283_v9 = vadd.f32 %v4260_v59, %v12002_v23  ;;  %v8347_v10 = vadd.f32 %v4646_v1, %v12005_v27  ;;  %v4262_v16 = vpop.f32.mrb[67].mxu0  ;;  %v4648_v56 = vpop.f32.mrb[67].mxu1  ;;  %v9787_v59 = vld [vmem:[#allocation2 + $0x268] ss:$16 sps:$4 sm:$0xff]  }
 0x407   :  { %v8284_v15 = vadd.f32 %v4262_v16, %v12008_v42  ;;  %v8348_v17 = vadd.f32 %v4648_v56, %v12011_v44  ;;  %v9792_v16 = vld [vmem:[#allocation2 + $0x284] ss:$16 sps:$4 sm:$0xff]   ;;  %v9795_v56 = vld [vmem:[#allocation2 + $0x28c] ss:$16 sps:$4 sm:$0xff]  }
 0x408   :  { %v4801_v19 = vpack.c.bf16 %v8283_v9, %v8281_v43  ;;  %v12021_v37 = vpack.c.bf16 %v8347_v10, %v8345_v46 }
 0x409   :  { %v4802_v53 = vpack.c.bf16 %v8284_v15, %v8282_v11  ;;  %v12023_v22 = vpack.c.bf16 %v8348_v17, %v8346_v13 }
 0x40b   :  { %v4266_v41 = vpop.f32.mrb[68].mxu0  ;;  %v4652_v45 = vpop.f32.mrb[68].mxu1  ;;  %5687 = vmatprep.mubr.bf16.mxu0 %v4802_v53  ;;  %6073 = vmatprep.mubr.bf16.mxu1 %v4802_v53 }
 0x40c   :  { %v4268_v20 = vpop.f32.mrb[69].mxu0  ;;  %v4654_v62 = vpop.f32.mrb[69].mxu1  ;;  %5688 = vmatmul.mubr.bf16.vlgmr.msra.gmra.mrb[128].mxu0 %v4801_v19  ;;  %6074 = vmatmul.mubr.bf16.vlgmr.msra.gmra.mrb[128].mxu1 %v4801_v19  ;;  %v8285_v30 = vadd.f32 %v4266_v41, %v12002_v23  ;;  %v8349_v49 = vadd.f32 %v4652_v45, %v12005_v27  ;;  %v9798_v41 = vld [vmem:[#allocation2 + $0x2a4] ss:$16 sps:$4 sm:$0xff]   ;;  %v9801_v45 = vld [vmem:[#allocation2 + $0x2ac] ss:$16 sps:$4 sm:$0xff]  }
 0x40d   :  { %v4270_v31 = vpop.f32.mrb[70].mxu0  ;;  %v4656_v47 = vpop.f32.mrb[70].mxu1  ;;  %5849 = vmatpush1.bf16.msra.mxu0 %v9766_v32  ;;  %6235 = vmatpush1.bf16.msra.mxu1 %v9769_v36  ;;  %v8286_v63 = vadd.f32 %v4268_v20, %v12008_v42  ;;  %v8350_v52 = vadd.f32 %v4654_v62, %v12011_v44 }
 0x40e   :  { %v8287_v60 = vadd.f32 %v4270_v31, %v12002_v23  ;;  %v8351_v38 = vadd.f32 %v4656_v47, %v12005_v27  ;;  %v4272_v51 = vpop.f32.mrb[71].mxu0  ;;  %v4658_v54 = vpop.f32.mrb[71].mxu1  ;;  %5850 = vmatprep.subr.bf16.mxu0 %v9774_v39  ;;  %6236 = vmatprep.subr.bf16.mxu1 %v9777_v40  ;;  %v9790_v39 = vld [vmem:[#allocation2 + $0x280] ss:$16 sps:$4 sm:$0xff]   ;;  %v9793_v40 = vld [vmem:[#allocation2 + $0x288] ss:$16 sps:$4 sm:$0xff]  }
 0x40f   :  { %v8288_v33 = vadd.f32 %v4272_v51, %v12008_v42  ;;  %v8352_v8 = vadd.f32 %v4658_v54, %v12011_v44 }
 0x410   :  { %v4805_v18 = vpack.c.bf16 %v8287_v60, %v8285_v30  ;;  %v12033_v3 = vpack.c.bf16 %v8351_v38, %v8349_v49  ;;  %v9796_v49 = vld [vmem:[#allocation2 + $0x2a0] ss:$16 sps:$4 sm:$0xff]   ;;  %v9799_v60 = vld [vmem:[#allocation2 + $0x2a8] ss:$16 sps:$4 sm:$0xff]  }
 0x411   :  { %v4806_v4 = vpack.c.bf16 %v8288_v33, %v8286_v63  ;;  %v12035_v5 = vpack.c.bf16 %v8352_v8, %v8350_v52  ;;  %5851 = vmatpush1.bf16.msra.mxu0 %v9772_v34  ;;  %6237 = vmatpush1.bf16.msra.mxu1 %v9775_v35  ;;  %v9804_v63 = vld [vmem:[#allocation2 + $0x2c4] ss:$16 sps:$4 sm:$0xff]   ;;  %v9807_v52 = vld [vmem:[#allocation2 + $0x2cc] ss:$16 sps:$4 sm:$0xff]  }
 0x412   :  { %5852 = vmatprep.subr.bf16.mxu0 %v9780_v55  ;;  %6238 = vmatprep.subr.bf16.mxu1 %v9783_v57 }
 0x413   :  { %v4276_v21 = vpop.f32.mrb[72].mxu0  ;;  %v4662_v24 = vpop.f32.mrb[72].mxu1  ;;  %5697 = vmatprep.mubr.bf16.mxu0 %v4806_v4  ;;  %6083 = vmatprep.mubr.bf16.mxu1 %v4806_v4 }
 0x414   :  { %v4278_v58 = vpop.f32.mrb[73].mxu0  ;;  %v4664_v61 = vpop.f32.mrb[73].mxu1  ;;  %5698 = vmatmul.mubr.bf16.gmra.mrb[132].mxu0 %v4805_v18  ;;  %6084 = vmatmul.mubr.bf16.gmra.mrb[132].mxu1 %v4805_v18  ;;  %v8289_v0 = vadd.f32 %v4276_v21, %v12002_v23  ;;  %v8353_v1 = vadd.f32 %v4662_v24, %v12005_v27  ;;  %v9802_v21 = vld [vmem:[#allocation2 + $0x2c0] ss:$16 sps:$4 sm:$0xff]   ;;  %v9805_v24 = vld [vmem:[#allocation2 + $0x2c8] ss:$16 sps:$4 sm:$0xff]  }
 0x415   :  { %v4280_v2 = vpop.f32.mrb[74].mxu0  ;;  %v4666_v12 = vpop.f32.mrb[74].mxu1  ;;  %5853 = vmatpush1.bf16.msra.mxu0 %v9778_v7  ;;  %6239 = vmatpush1.bf16.msra.mxu1 %v9781_v6  ;;  %v8290_v11 = vadd.f32 %v4278_v58, %v12008_v42  ;;  %v8354_v13 = vadd.f32 %v4664_v61, %v12011_v44  ;;  %v9810_v58 = vld [vmem:[#allocation2 + $0x2e4] ss:$16 sps:$4 sm:$0xff]   ;;  %v9813_v61 = vld [vmem:[#allocation2 + $0x2ec] ss:$16 sps:$4 sm:$0xff]  }
 0x416   :  { %v8291_v43 = vadd.f32 %v4280_v2, %v12002_v23  ;;  %v8355_v46 = vadd.f32 %v4666_v12, %v12005_v27  ;;  %v4282_v9 = vpop.f32.mrb[75].mxu0  ;;  %v4668_v10 = vpop.f32.mrb[75].mxu1  ;;  %5854 = vmatprep.subr.bf16.mxu0 %v9786_v48  ;;  %6240 = vmatprep.subr.bf16.mxu1 %v9789_v50 }
 0x417   :  { %v8292_v15 = vadd.f32 %v4282_v9, %v12008_v42  ;;  %v8356_v17 = vadd.f32 %v4668_v10, %v12011_v44  ;;  %v9811_v9 = vld [vmem:[#allocation2 + $0x2e8] ss:$16 sps:$4 sm:$0xff]  }
 0x418   :  { %v4809_v19 = vpack.c.bf16 %v8291_v43, %v8289_v0  ;;  %v12045_v53 = vpack.c.bf16 %v8355_v46, %v8353_v1  ;;  %v9808_v46 = vld [vmem:[#allocation2 + $0x2e0] ss:$16 sps:$4 sm:$0xff]  }
 0x419   :  { %v4810_v32 = vpack.c.bf16 %v8292_v15, %v8290_v11  ;;  %v12047_v36 = vpack.c.bf16 %v8356_v17, %v8354_v13  ;;  %5855 = vmatpush1.bf16.msra.mxu0 %v9784_v14  ;;  %6241 = vmatpush1.bf16.msra.mxu1 %v9787_v59  ;;  %v9816_v15 = vld [vmem:[#allocation2 + $0x304] ss:$16 sps:$4 sm:$0xff]   ;;  %v9819_v17 = vld [vmem:[#allocation2 + $0x30c] ss:$16 sps:$4 sm:$0xff]  }
 0x41a   :  { %5856 = vmatprep.subr.bf16.mxu0 %v9792_v16  ;;  %6242 = vmatprep.subr.bf16.mxu1 %v9795_v56 }
 0x41b   :  { %v4286_v20 = vpop.f32.mrb[76].mxu0  ;;  %v4672_v62 = vpop.f32.mrb[76].mxu1  ;;  %5707 = vmatprep.mubr.bf16.mxu0 %v4810_v32  ;;  %6093 = vmatprep.mubr.bf16.mxu1 %v4810_v32 }
 0x41c   :  { %v4288_v30 = vpop.f32.mrb[77].mxu0  ;;  %v4674_v31 = vpop.f32.mrb[77].mxu1  ;;  %5708 = vmatmul.mubr.bf16.gmra.mrb[136].mxu0 %v4809_v19  ;;  %6094 = vmatmul.mubr.bf16.gmra.mrb[136].mxu1 %v4809_v19  ;;  %v8293_v47 = vadd.f32 %v4286_v20, %v12002_v23  ;;  %v8357_v38 = vadd.f32 %v4672_v62, %v12005_v27 }
 0x41d   :  { %v4290_v34 = vpop.f32.mrb[78].mxu0  ;;  %v4676_v35 = vpop.f32.mrb[78].mxu1  ;;  %5857 = vmatpush1.bf16.msra.mxu0 %v9790_v39  ;;  %6243 = vmatpush1.bf16.msra.mxu1 %v9793_v40  ;;  %v8294_v33 = vadd.f32 %v4288_v30, %v12008_v42  ;;  %v8358_v8 = vadd.f32 %v4674_v31, %v12011_v44  ;;  %v9814_v30 = vld [vmem:[#allocation2 + $0x300] ss:$16 sps:$4 sm:$0xff]   ;;  %v9817_v31 = vld [vmem:[#allocation2 + $0x308] ss:$16 sps:$4 sm:$0xff]  }
 0x41e   :  { %v8295_v51 = vadd.f32 %v4290_v34, %v12002_v23  ;;  %v8359_v54 = vadd.f32 %v4676_v35, %v12005_v27  ;;  %v4292_v55 = vpop.f32.mrb[79].mxu0  ;;  %v4678_v57 = vpop.f32.mrb[79].mxu1  ;;  %5858 = vmatprep.subr.bf16.mxu0 %v9798_v41  ;;  %6244 = vmatprep.subr.bf16.mxu1 %v9801_v45  ;;  %v9825_v34 = vld [vmem:[#allocation2 + $0x32c] ss:$16 sps:$4 sm:$0xff]  }
 0x41f   :  { %v8296_v18 = vadd.f32 %v4292_v55, %v12008_v42  ;;  %v8360_v4 = vadd.f32 %v4678_v57, %v12011_v44  ;;  %v9820_v57 = vld [vmem:[#allocation2 + $0x320] ss:$16 sps:$4 sm:$0xff]  }
 0x420   :  { %v4813_v7 = vpack.c.bf16 %v8295_v51, %v8293_v47  ;;  %v12057_v6 = vpack.c.bf16 %v8359_v54, %v8357_v38  ;;  %v9822_v47 = vld [vmem:[#allocation2 + $0x324] ss:$16 sps:$4 sm:$0xff]  }
 0x421   :  { %v4814_v48 = vpack.c.bf16 %v8296_v18, %v8294_v33  ;;  %v12059_v50 = vpack.c.bf16 %v8360_v4, %v8358_v8  ;;  %5859 = vmatpush1.bf16.msra.mxu0 %v9796_v49  ;;  %6245 = vmatpush1.bf16.msra.mxu1 %v9799_v60 }
 0x422   :  { %5860 = vmatprep.subr.bf16.mxu0 %v9804_v63  ;;  %6246 = vmatprep.subr.bf16.mxu1 %v9807_v52  ;;  %v9823_v63 = vld [vmem:[#allocation2 + $0x328] ss:$16 sps:$4 sm:$0xff]  }
 0x423   :  { %v4296_v0 = vpop.f32.mrb[80].mxu0  ;;  %v4682_v2 = vpop.f32.mrb[80].mxu1  ;;  %5717 = vmatprep.mubr.bf16.mxu0 %v4814_v48  ;;  %6103 = vmatprep.mubr.bf16.mxu1 %v4814_v48  ;;  %v9831_v48 = vld [vmem:[#allocation2 + $0x34c] ss:$16 sps:$4 sm:$0xff]  }
 0x424   :  { %v4298_v12 = vpop.f32.mrb[81].mxu0  ;;  %v4684_v14 = vpop.f32.mrb[81].mxu1  ;;  %5718 = vmatmul.mubr.bf16.gmra.mrb[140].mxu0 %v4813_v7  ;;  %6104 = vmatmul.mubr.bf16.gmra.mrb[140].mxu1 %v4813_v7  ;;  %v8297_v59 = vadd.f32 %v4296_v0, %v12002_v23  ;;  %v8361_v10 = vadd.f32 %v4682_v2, %v12005_v27  ;;  %v9828_v7 = vld [vmem:[#allocation2 + $0x344] ss:$16 sps:$4 sm:$0xff]  }
 0x425   :  { %v4300_v1 = vpop.f32.mrb[82].mxu0  ;;  %v4686_v43 = vpop.f32.mrb[82].mxu1  ;;  %5861 = vmatpush1.bf16.msra.mxu0 %v9802_v21  ;;  %6247 = vmatpush1.bf16.msra.mxu1 %v9805_v24  ;;  %v8298_v19 = vadd.f32 %v4298_v12, %v12008_v42  ;;  %v8362_v32 = vadd.f32 %v4684_v14, %v12011_v44 }
 0x426   :  { %v8299_v16 = vadd.f32 %v4300_v1, %v12002_v23  ;;  %v8363_v56 = vadd.f32 %v4686_v43, %v12005_v27  ;;  %v4302_v11 = vpop.f32.mrb[83].mxu0  ;;  %v4688_v13 = vpop.f32.mrb[83].mxu1  ;;  %5862 = vmatprep.subr.bf16.mxu0 %v9810_v58  ;;  %6248 = vmatprep.subr.bf16.mxu1 %v9813_v61  ;;  %v9829_v1 = vld [vmem:[#allocation2 + $0x348] ss:$16 sps:$4 sm:$0xff]   ;;  %v9834_v43 = vld [vmem:[#allocation2 + $0x364] ss:$16 sps:$4 sm:$0xff]  }
 0x427   :  { %v8300_v39 = vadd.f32 %v4302_v11, %v12008_v42  ;;  %v8364_v40 = vadd.f32 %v4688_v13, %v12011_v44 }
 0x428   :  { %v4817_v41 = vpack.c.bf16 %v8299_v16, %v8297_v59  ;;  %v12069_v45 = vpack.c.bf16 %v8363_v56, %v8361_v10  ;;  %v9826_v59 = vld [vmem:[#allocation2 + $0x340] ss:$16 sps:$4 sm:$0xff]  }
 0x429   :  { %v4818_v20 = vpack.c.bf16 %v8300_v39, %v8298_v19  ;;  %v12071_v62 = vpack.c.bf16 %v8364_v40, %v8362_v32  ;;  %5863 = vmatpush1.bf16.msra.mxu0 %v9808_v46  ;;  %6249 = vmatpush1.bf16.msra.mxu1 %v9811_v9  ;;  %v9837_v46 = vld [vmem:[#allocation2 + $0x36c] ss:$16 sps:$4 sm:$0xff]   ;;  %v9835_v19 = vld [vmem:[#allocation2 + $0x368] ss:$16 sps:$4 sm:$0xff]  }
 0x42a   :  { %5864 = vmatprep.subr.bf16.mxu0 %v9816_v15  ;;  %6250 = vmatprep.subr.bf16.mxu1 %v9819_v17  ;;  %v9832_v17 = vld [vmem:[#allocation2 + $0x360] ss:$16 sps:$4 sm:$0xff]  }
 0x42b   :  { %v4306_v35 = vpop.f32.mrb[84].mxu0  ;;  %v4692_v49 = vpop.f32.mrb[84].mxu1  ;;  %5727 = vmatprep.mubr.bf16.mxu0 %v4818_v20  ;;  %6113 = vmatprep.mubr.bf16.mxu1 %v4818_v20 }
 0x42c   :  { %v4308_v60 = vpop.f32.mrb[85].mxu0  ;;  %v4694_v38 = vpop.f32.mrb[85].mxu1  ;;  %5728 = vmatmul.mubr.bf16.gmra.mrb[144].mxu0 %v4817_v41  ;;  %6114 = vmatmul.mubr.bf16.gmra.mrb[144].mxu1 %v4817_v41  ;;  %v8301_v51 = vadd.f32 %v4306_v35, %v12002_v23  ;;  %v8365_v52 = vadd.f32 %v4692_v49, %v12005_v27 }
 0x42d   :  { %v4310_v54 = vpop.f32.mrb[86].mxu0  ;;  %v4696_v55 = vpop.f32.mrb[86].mxu1  ;;  %5865 = vmatpush1.bf16.msra.mxu0 %v9814_v30  ;;  %6251 = vmatpush1.bf16.msra.mxu1 %v9817_v31  ;;  %v8302_v21 = vadd.f32 %v4308_v60, %v12008_v42  ;;  %v8366_v24 = vadd.f32 %v4694_v38, %v12011_v44  ;;  %v9840_v30 = vld [vmem:[#allocation2 + $0x384] ss:$16 sps:$4 sm:$0xff]   ;;  %v9843_v31 = vld [vmem:[#allocation2 + $0x38c] ss:$16 sps:$4 sm:$0xff]  }
 0x42e   :  { %v8303_v33 = vadd.f32 %v4310_v54, %v12002_v23  ;;  %v8367_v8 = vadd.f32 %v4696_v55, %v12005_v27  ;;  %v4312_v18 = vpop.f32.mrb[87].mxu0  ;;  %v4698_v4 = vpop.f32.mrb[87].mxu1  ;;  %5866 = vmatprep.subr.bf16.mxu0 %v9822_v47  ;;  %6252 = vmatprep.subr.bf16.mxu1 %v9825_v34  ;;  %v9838_v55 = vld [vmem:[#allocation2 + $0x380] ss:$16 sps:$4 sm:$0xff]  }
 0x42f   :  { %v8304_v58 = vadd.f32 %v4312_v18, %v12008_v42  ;;  %v8368_v61 = vadd.f32 %v4698_v4, %v12011_v44 }
 0x430   :  { %v4821_v0 = vpack.c.bf16 %v8303_v33, %v8301_v51  ;;  %v12081_v2 = vpack.c.bf16 %v8367_v8, %v8365_v52  ;;  %v9849_v52 = vld [vmem:[#allocation2 + $0x3ac] ss:$16 sps:$4 sm:$0xff]  }
 0x431   :  { %v4822_v12 = vpack.c.bf16 %v8304_v58, %v8302_v21  ;;  %v12083_v14 = vpack.c.bf16 %v8368_v61, %v8366_v24  ;;  %5867 = vmatpush1.bf16.msra.mxu0 %v9820_v57  ;;  %6253 = vmatpush1.bf16.msra.mxu1 %v9823_v63  ;;  %v9841_v57 = vld [vmem:[#allocation2 + $0x388] ss:$16 sps:$4 sm:$0xff]   ;;  %v9846_v63 = vld [vmem:[#allocation2 + $0x3a4] ss:$16 sps:$4 sm:$0xff]   ;;  %v9844_v24 = vld [vmem:[#allocation2 + $0x3a0] ss:$16 sps:$4 sm:$0xff]  }
 0x432   :  { %5868 = vmatprep.subr.bf16.mxu0 %v9828_v7  ;;  %6254 = vmatprep.subr.bf16.mxu1 %v9831_v48  ;;  %v9847_v58 = vld [vmem:[#allocation2 + $0x3a8] ss:$16 sps:$4 sm:$0xff]  }
 0x433   :  { %v4316_v9 = vpop.f32.mrb[88].mxu0  ;;  %v4702_v10 = vpop.f32.mrb[88].mxu1  ;;  %5737 = vmatprep.mubr.bf16.mxu0 %v4822_v12  ;;  %6123 = vmatprep.mubr.bf16.mxu1 %v4822_v12 }
 0x434   :  { %v4318_v16 = vpop.f32.mrb[89].mxu0  ;;  %v4704_v56 = vpop.f32.mrb[89].mxu1  ;;  %5738 = vmatmul.mubr.bf16.gmra.mrb[148].mxu0 %v4821_v0  ;;  %6124 = vmatmul.mubr.bf16.gmra.mrb[148].mxu1 %v4821_v0  ;;  %v8305_v11 = vadd.f32 %v4316_v9, %v12002_v23  ;;  %v8369_v32 = vadd.f32 %v4702_v10, %v12005_v27 }
 0x435   :  { %v4320_v13 = vpop.f32.mrb[90].mxu0  ;;  %v4706_v15 = vpop.f32.mrb[90].mxu1  ;;  %5869 = vmatpush1.bf16.msra.mxu0 %v9826_v59  ;;  %6255 = vmatpush1.bf16.msra.mxu1 %v9829_v1  ;;  %v8306_v47 = vadd.f32 %v4318_v16, %v12008_v42  ;;  %v8370_v34 = vadd.f32 %v4704_v56, %v12011_v44 }
 0x436   :  { %v8307_v39 = vadd.f32 %v4320_v13, %v12002_v23  ;;  %v8371_v40 = vadd.f32 %v4706_v15, %v12005_v27  ;;  %v4322_v41 = vpop.f32.mrb[91].mxu0  ;;  %v4708_v20 = vpop.f32.mrb[91].mxu1  ;;  %5870 = vmatprep.subr.bf16.mxu0 %v9834_v43  ;;  %6256 = vmatprep.subr.bf16.mxu1 %v9837_v46  ;;  %v9852_v43 = vld [vmem:[#allocation2 + $0x3c4] ss:$16 sps:$4 sm:$0xff]   ;;  %v9855_v46 = vld [vmem:[#allocation2 + $0x3cc] ss:$16 sps:$4 sm:$0xff]  }
 0x437   :  { %v8308_v35 = vadd.f32 %v4322_v41, %v12008_v42  ;;  %v8372_v49 = vadd.f32 %v4708_v20, %v12011_v44 }
 0x438   :  { %v4825_v60 = vpack.c.bf16 %v8307_v39, %v8305_v11  ;;  %v12093_v38 = vpack.c.bf16 %v8371_v40, %v8369_v32  ;;  %v9853_v32 = vld [vmem:[#allocation2 + $0x3c8] ss:$16 sps:$4 sm:$0xff]   ;;  %v9858_v39 = vld [vmem:[#allocation2 + $0x3e4] ss:$16 sps:$4 sm:$0xff]   ;;  %v9861_v40 = vld [vmem:[#allocation2 + $0x3ec] ss:$16 sps:$4 sm:$0xff]  }
 0x439   :  { %v4826_v51 = vpack.c.bf16 %v8308_v35, %v8306_v47  ;;  %v12095_v54 = vpack.c.bf16 %v8372_v49, %v8370_v34  ;;  %5871 = vmatpush1.bf16.msra.mxu0 %v9832_v17  ;;  %6257 = vmatpush1.bf16.msra.mxu1 %v9835_v19  ;;  %v9850_v19 = vld [vmem:[#allocation2 + $0x3c0] ss:$16 sps:$4 sm:$0xff]  }
 0x43a   :  { %5872 = vmatprep.subr.bf16.mxu0 %v9840_v30  ;;  %6258 = vmatprep.subr.bf16.mxu1 %v9843_v31  ;;  %v9856_v49 = vld [vmem:[#allocation2 + $0x3e0] ss:$16 sps:$4 sm:$0xff]  }
 0x43b   :  { %v4326_v33 = vpop.f32.mrb[92].mxu0  ;;  %v4712_v8 = vpop.f32.mrb[92].mxu1  ;;  %5747 = vmatprep.mubr.bf16.mxu0 %v4826_v51  ;;  %6133 = vmatprep.mubr.bf16.mxu1 %v4826_v51 }
 0x43c   :  { %v4328_v18 = vpop.f32.mrb[93].mxu0  ;;  %v4714_v4 = vpop.f32.mrb[93].mxu1  ;;  %5748 = vmatmul.mubr.bf16.gmra.mrb[152].mxu0 %v4825_v60  ;;  %6134 = vmatmul.mubr.bf16.gmra.mrb[152].mxu1 %v4825_v60  ;;  %v8309_v7 = vadd.f32 %v4326_v33, %v12002_v23  ;;  %v8373_v61 = vadd.f32 %v4712_v8, %v12005_v27  ;;  %v9859_v60 = vld [vmem:[#allocation2 + $0x3e8] ss:$16 sps:$4 sm:$0xff]  }
 0x43d   :  { %v4330_v48 = vpop.f32.mrb[94].mxu0  ;;  %v4716_v21 = vpop.f32.mrb[94].mxu1  ;;  %5873 = vmatpush1.bf16.msra.mxu0 %v9838_v55  ;;  %6259 = vmatpush1.bf16.msra.mxu1 %v9841_v57  ;;  %v8310_v9 = vadd.f32 %v4328_v18, %v12008_v42  ;;  %v8374_v10 = vadd.f32 %v4714_v4, %v12011_v44 }
 0x43e   :  { %v8311_v0 = vadd.f32 %v4330_v48, %v12002_v23  ;;  %v8375_v12 = vadd.f32 %v4716_v21, %v12005_v27  ;;  %v4332_v59 = vpop.f32.mrb[95].mxu0  ;;  %v4718_v1 = vpop.f32.mrb[95].mxu1  ;;  %5874 = vmatprep.subr.bf16.mxu0 %v9846_v63  ;;  %6260 = vmatprep.subr.bf16.mxu1 %v9849_v52 }
 0x43f   :  { %v8312_v16 = vadd.f32 %v4332_v59, %v12008_v42  ;;  %v8376_v56 = vadd.f32 %v4718_v1, %v12011_v44 }
 0x440   :  { %v4829_v11 = vpack.c.bf16 %v8311_v0, %v8309_v7  ;;  %v12105_v13 = vpack.c.bf16 %v8375_v12, %v8373_v61 }
 0x441   :  { %v4830_v15 = vpack.c.bf16 %v8312_v16, %v8310_v9  ;;  %v12107_v17 = vpack.c.bf16 %v8376_v56, %v8374_v10  ;;  %5875 = vmatpush1.bf16.msra.mxu0 %v9844_v24  ;;  %6261 = vmatpush1.bf16.msra.mxu1 %v9847_v58 }
 0x442   :  { %5876 = vmatprep.subr.bf16.mxu0 %v9852_v43  ;;  %6262 = vmatprep.subr.bf16.mxu1 %v9855_v46 }
 0x443   :  { %v4336_v41 = vpop.f32.mrb[96].mxu0  ;;  %v4722_v20 = vpop.f32.mrb[96].mxu1  ;;  %5757 = vmatprep.mubr.bf16.mxu0 %v4830_v15  ;;  %6143 = vmatprep.mubr.bf16.mxu1 %v4830_v15 }
 0x444   :  { %v4338_v30 = vpop.f32.mrb[97].mxu0  ;;  %v4724_v31 = vpop.f32.mrb[97].mxu1  ;;  %5758 = vmatmul.mubr.bf16.gmra.mrb[156].mxu0 %v4829_v11  ;;  %6144 = vmatmul.mubr.bf16.gmra.mrb[156].mxu1 %v4829_v11  ;;  %v8313_v47 = vadd.f32 %v4336_v41, %v12002_v23  ;;  %v8377_v51 = vadd.f32 %v4722_v20, %v12005_v27 }
 0x445   :  { %v4340_v34 = vpop.f32.mrb[98].mxu0  ;;  %v4726_v35 = vpop.f32.mrb[98].mxu1  ;;  %5877 = vmatpush1.bf16.msra.mxu0 %v9850_v19  ;;  %6263 = vmatpush1.bf16.msra.mxu1 %v9853_v32  ;;  %v8314_v33 = vadd.f32 %v4338_v30, %v12008_v42  ;;  %v8378_v8 = vadd.f32 %v4724_v31, %v12011_v44 }
 0x446   :  { %v8315_v55 = vadd.f32 %v4340_v34, %v12002_v23  ;;  %v8379_v57 = vadd.f32 %v4726_v35, %v12005_v27  ;;  %v4342_v63 = vpop.f32.mrb[99].mxu0  ;;  %v4728_v52 = vpop.f32.mrb[99].mxu1  ;;  %5878 = vmatprep.subr.bf16.mxu0 %v9858_v39  ;;  %6264 = vmatprep.subr.bf16.mxu1 %v9861_v40 }
 0x447   :  { %v8316_v18 = vadd.f32 %v4342_v63, %v12008_v42  ;;  %v8380_v4 = vadd.f32 %v4728_v52, %v12011_v44 }
 0x448   :  { %v4833_v7 = vpack.c.bf16 %v8315_v55, %v8313_v47  ;;  %v12117_v48 = vpack.c.bf16 %v8379_v57, %v8377_v51 }
 0x449   :  { %v4834_v21 = vpack.c.bf16 %v8316_v18, %v8314_v33  ;;  %v12119_v24 = vpack.c.bf16 %v8380_v4, %v8378_v8  ;;  %5879 = vmatpush1.bf16.msra.mxu0 %v9856_v49  ;;  %6265 = vmatpush1.bf16.msra.mxu1 %v9859_v60 }
 0x44b   :  { %v4346_v58 = vpop.f32.mrb[100].mxu0  ;;  %v4732_v61 = vpop.f32.mrb[100].mxu1  ;;  %5767 = vmatprep.mubr.bf16.mxu0 %v4834_v21  ;;  %6153 = vmatprep.mubr.bf16.mxu1 %v4834_v21 }
 0x44c   :  { %v4348_v0 = vpop.f32.mrb[101].mxu0  ;;  %v4734_v12 = vpop.f32.mrb[101].mxu1  ;;  %5768 = vmatmul.mubr.bf16.gmra.mrb[160].mxu0 %v4833_v7  ;;  %6154 = vmatmul.mubr.bf16.gmra.mrb[160].mxu1 %v4833_v7  ;;  %v8317_v43 = vadd.f32 %v4346_v58, %v12002_v23  ;;  %v8381_v46 = vadd.f32 %v4732_v61, %v12005_v27 }
 0x44d   :  { %v4350_v59 = vpop.f32.mrb[102].mxu0  ;;  %v4736_v1 = vpop.f32.mrb[102].mxu1  ;;  %v8318_v11 = vadd.f32 %v4348_v0, %v12008_v42  ;;  %v8382_v15 = vadd.f32 %v4734_v12, %v12011_v44 }
 0x44e   :  { %v8319_v9 = vadd.f32 %v4350_v59, %v12002_v23  ;;  %v8383_v10 = vadd.f32 %v4736_v1, %v12005_v27  ;;  %v4352_v16 = vpop.f32.mrb[103].mxu0  ;;  %v4738_v56 = vpop.f32.mrb[103].mxu1 }
 0x44f   :  { %v8320_v19 = vadd.f32 %v4352_v16, %v12008_v42  ;;  %v8384_v32 = vadd.f32 %v4738_v56, %v12011_v44 }
 0x450   :  { %v4837_v39 = vpack.c.bf16 %v8319_v9, %v8317_v43  ;;  %v12129_v40 = vpack.c.bf16 %v8383_v10, %v8381_v46 }
 0x451   :  { %v4838_v41 = vpack.c.bf16 %v8320_v19, %v8318_v11  ;;  %v12131_v20 = vpack.c.bf16 %v8384_v32, %v8382_v15 }
 0x453   :  { %v4356_v30 = vpop.f32.mrb[104].mxu0  ;;  %v4742_v31 = vpop.f32.mrb[104].mxu1  ;;  %5777 = vmatprep.mubr.bf16.mxu0 %v4838_v41  ;;  %6163 = vmatprep.mubr.bf16.mxu1 %v4838_v41 }
 0x454   :  { %v4358_v47 = vpop.f32.mrb[105].mxu0  ;;  %v4744_v34 = vpop.f32.mrb[105].mxu1  ;;  %5778 = vmatmul.mubr.bf16.gmra.mrb[164].mxu0 %v4837_v39  ;;  %6164 = vmatmul.mubr.bf16.gmra.mrb[164].mxu1 %v4837_v39  ;;  %v8321_v60 = vadd.f32 %v4356_v30, %v12002_v23  ;;  %v8385_v51 = vadd.f32 %v4742_v31, %v12005_v27 }
 0x455   :  { %v4360_v35 = vpop.f32.mrb[106].mxu0  ;;  %v4746_v49 = vpop.f32.mrb[106].mxu1  ;;  %v8322_v33 = vadd.f32 %v4358_v47, %v12008_v42  ;;  %v8386_v8 = vadd.f32 %v4744_v34, %v12011_v44 }
 0x456   :  { %v8323_v55 = vadd.f32 %v4360_v35, %v12002_v23  ;;  %v8387_v57 = vadd.f32 %v4746_v49, %v12005_v27  ;;  %v4362_v63 = vpop.f32.mrb[107].mxu0  ;;  %v4748_v52 = vpop.f32.mrb[107].mxu1 }
 0x457   :  { %v8324_v18 = vadd.f32 %v4362_v63, %v12008_v42  ;;  %v8388_v4 = vadd.f32 %v4748_v52, %v12011_v44  ;;  %v9862_v52 = vld [vmem:[%s12564_s7 + $0x40] sm:$0xff]  }
 0x458   :  { %v4841_v7 = vpack.c.bf16 %v8323_v55, %v8321_v60  ;;  %v12141_v21 = vpack.c.bf16 %v8387_v57, %v8385_v51  ;;  %7929 = vmatprep.subr.bf16.mxu0 %v9862_v52 }
 0x459   :  { %v4842_v58 = vpack.c.bf16 %v8324_v18, %v8322_v33  ;;  %v12143_v61 = vpack.c.bf16 %v8388_v4, %v8386_v8  ;;  %v9864_v33 = vld [vmem:[%s12564_s7 + $0xc0] sm:$0xff]  }
 0x45a   :  { %8041 = vmatprep.subr.bf16.mxu1 %v9864_v33 }
 0x45b   :  { %v4366_v0 = vpop.f32.mrb[108].mxu0  ;;  %v4752_v12 = vpop.f32.mrb[108].mxu1  ;;  %5787 = vmatprep.mubr.bf16.mxu0 %v4842_v58  ;;  %6173 = vmatprep.mubr.bf16.mxu1 %v4842_v58 }
 0x45c   :  { %v4368_v59 = vpop.f32.mrb[109].mxu0  ;;  %v4754_v1 = vpop.f32.mrb[109].mxu1  ;;  %5788 = vmatmul.mubr.bf16.gmra.mrb[168].mxu0 %v4841_v7  ;;  %6174 = vmatmul.mubr.bf16.gmra.mrb[168].mxu1 %v4841_v7  ;;  %v8325_v9 = vadd.f32 %v4366_v0, %v12002_v23  ;;  %v8389_v10 = vadd.f32 %v4752_v12, %v12005_v27 }
 0x45d   :  { %v4370_v43 = vpop.f32.mrb[110].mxu0  ;;  %v4756_v46 = vpop.f32.mrb[110].mxu1  ;;  %v8326_v19 = vadd.f32 %v4368_v59, %v12008_v42  ;;  %v8390_v32 = vadd.f32 %v4754_v1, %v12011_v44 }
 0x45e   :  { %v8327_v16 = vadd.f32 %v4370_v43, %v12002_v23  ;;  %v8391_v56 = vadd.f32 %v4756_v46, %v12005_v27  ;;  %v4372_v11 = vpop.f32.mrb[111].mxu0  ;;  %v4758_v15 = vpop.f32.mrb[111].mxu1 }
 0x45f   :  { %v8328_v39 = vadd.f32 %v4372_v11, %v12008_v42  ;;  %v8392_v41 = vadd.f32 %v4758_v15, %v12011_v44 }
 0x460   :  { %v4845_v30 = vpack.c.bf16 %v8327_v16, %v8325_v9  ;;  %v12153_v31 = vpack.c.bf16 %v8391_v56, %v8389_v10 }
 0x461   :  { %v4846_v47 = vpack.c.bf16 %v8328_v39, %v8326_v19  ;;  %v12155_v34 = vpack.c.bf16 %v8392_v41, %v8390_v32 }
 0x463   :  { %v4376_v35 = vpop.f32.mrb[112].mxu0  ;;  %v4762_v49 = vpop.f32.mrb[112].mxu1  ;;  %5797 = vmatprep.mubr.bf16.mxu0 %v4846_v47  ;;  %6183 = vmatprep.mubr.bf16.mxu1 %v4846_v47 }
 0x464   :  { %v4378_v60 = vpop.f32.mrb[113].mxu0  ;;  %v4764_v51 = vpop.f32.mrb[113].mxu1  ;;  %5798 = vmatmul.mubr.bf16.gmra.mrb[172].mxu0 %v4845_v30  ;;  %6184 = vmatmul.mubr.bf16.gmra.mrb[172].mxu1 %v4845_v30  ;;  %v8329_v55 = vadd.f32 %v4376_v35, %v12002_v23  ;;  %v8393_v8 = vadd.f32 %v4762_v49, %v12005_v27 }
 0x465   :  { %v4380_v57 = vpop.f32.mrb[114].mxu0  ;;  %v4766_v63 = vpop.f32.mrb[114].mxu1  ;;  %v8330_v18 = vadd.f32 %v4378_v60, %v12008_v42  ;;  %v8394_v12 = vadd.f32 %v4764_v51, %v12011_v44 }
 0x466   :  { %v8331_v4 = vadd.f32 %v4380_v57, %v12002_v23  ;;  %v8395_v7 = vadd.f32 %v4766_v63, %v12005_v27  ;;  %v4382_v58 = vpop.f32.mrb[115].mxu0  ;;  %v4768_v0 = vpop.f32.mrb[115].mxu1 }
 0x467   :  { %v8332_v59 = vadd.f32 %v4382_v58, %v12008_v42  ;;  %v8396_v1 = vadd.f32 %v4768_v0, %v12011_v44 }
 0x468   :  { %v4849_v43 = vpack.c.bf16 %v8331_v4, %v8329_v55  ;;  %v12171_v46 = vpack.c.bf16 %v8395_v7, %v8393_v8 }
 0x469   :  { %v4850_v9 = vpack.c.bf16 %v8332_v59, %v8330_v18  ;;  %v12173_v10 = vpack.c.bf16 %v8396_v1, %v8394_v12 }
 0x46b   :  { %v4386_v16 = vpop.f32.mrb[116].mxu0  ;;  %v4772_v56 = vpop.f32.mrb[116].mxu1  ;;  %5807 = vmatprep.mubr.bf16.mxu0 %v4850_v9  ;;  %6193 = vmatprep.mubr.bf16.mxu1 %v4850_v9 }
 0x46c   :  { %v4388_v11 = vpop.f32.mrb[117].mxu0  ;;  %v4774_v15 = vpop.f32.mrb[117].mxu1  ;;  %5808 = vmatmul.mubr.bf16.gmra.mrb[176].mxu0 %v4849_v43  ;;  %6194 = vmatmul.mubr.bf16.gmra.mrb[176].mxu1 %v4849_v43  ;;  %v8333_v39 = vadd.f32 %v4386_v16, %v12002_v23  ;;  %v8397_v41 = vadd.f32 %v4772_v56, %v12005_v27 }
 0x46d   :  { %v4390_v19 = vpop.f32.mrb[118].mxu0  ;;  %v4776_v32 = vpop.f32.mrb[118].mxu1  ;;  %v8334_v60 = vadd.f32 %v4388_v11, %v12008_v42  ;;  %v8398_v51 = vadd.f32 %v4774_v15, %v12011_v44 }
 0x46e   :  { %v8335_v30 = vadd.f32 %v4390_v19, %v12002_v23  ;;  %v8399_v47 = vadd.f32 %v4776_v32, %v12005_v27  ;;  %v4392_v35 = vpop.f32.mrb[119].mxu0  ;;  %v4778_v49 = vpop.f32.mrb[119].mxu1 }
 0x46f   :  { %v8336_v55 = vadd.f32 %v4392_v35, %v12008_v42  ;;  %v8400_v57 = vadd.f32 %v4778_v49, %v12011_v44 }
 0x470   :  { %v4853_v63 = vpack.c.bf16 %v8335_v30, %v8333_v39  ;;  %v12183_v52 = vpack.c.bf16 %v8399_v47, %v8397_v41 }
 0x471   :  { %v4854_v33 = vpack.c.bf16 %v8336_v55, %v8334_v60  ;;  %v12185_v8 = vpack.c.bf16 %v8400_v57, %v8398_v51 }
 0x473   :  { %v4396_v18 = vpop.f32.mrb[120].mxu0  ;;  %v4782_v4 = vpop.f32.mrb[120].mxu1  ;;  %5817 = vmatprep.mubr.bf16.mxu0 %v4854_v33  ;;  %6203 = vmatprep.mubr.bf16.mxu1 %v4854_v33 }
 0x474   :  { %v4398_v7 = vpop.f32.mrb[121].mxu0  ;;  %v4784_v58 = vpop.f32.mrb[121].mxu1  ;;  %5818 = vmatmul.mubr.bf16.gmra.mrb[180].mxu0 %v4853_v63  ;;  %6204 = vmatmul.mubr.bf16.gmra.mrb[180].mxu1 %v4853_v63  ;;  %v8337_v59 = vadd.f32 %v4396_v18, %v12002_v23  ;;  %v8401_v1 = vadd.f32 %v4782_v4, %v12005_v27 }
 0x475   :  { %v4400_v0 = vpop.f32.mrb[122].mxu0  ;;  %v4786_v12 = vpop.f32.mrb[122].mxu1  ;;  %v8338_v11 = vadd.f32 %v4398_v7, %v12008_v42  ;;  %v8402_v15 = vadd.f32 %v4784_v58, %v12011_v44 }
 0x476   :  { %v8339_v43 = vadd.f32 %v4400_v0, %v12002_v23  ;;  %v8403_v9 = vadd.f32 %v4786_v12, %v12005_v27  ;;  %v4402_v16 = vpop.f32.mrb[123].mxu0  ;;  %v4788_v56 = vpop.f32.mrb[123].mxu1 }
 0x477   :  { %v8340_v19 = vadd.f32 %v4402_v16, %v12008_v42  ;;  %v8404_v32 = vadd.f32 %v4788_v56, %v12011_v44 }
 0x478   :  { %v4857_v39 = vpack.c.bf16 %v8339_v43, %v8337_v59  ;;  %v12195_v41 = vpack.c.bf16 %v8403_v9, %v8401_v1 }
 0x479   :  { %v4858_v30 = vpack.c.bf16 %v8340_v19, %v8338_v11  ;;  %v12197_v47 = vpack.c.bf16 %v8404_v32, %v8402_v15  ;;  %v9869_v11 = vld [vmem:[%s12564_s7 + $0x88] sm:$0xff]   ;;  %v9871_v15 = vld [vmem:[%s12564_s7 + $0x10] sm:$0xff]   ;;  %v9874_v32 = vld [vmem:[%s12564_s7 + $0x58] sm:$0xff]  }
 0x47a   :  { %v9873_v19 = vld [vmem:[%s12564_s7 + $0x90] sm:$0xff]  }
 0x47b   :  { %v4406_v35 = vpop.f32.mrb[124].mxu0  ;;  %v4792_v49 = vpop.f32.mrb[124].mxu1  ;;  %5827 = vmatprep.mubr.bf16.mxu0 %v4858_v30  ;;  %6213 = vmatprep.mubr.bf16.mxu1 %v4858_v30  ;;  %v9875_v30 = vld [vmem:[%s12564_s7 + $0x18] sm:$0xff]  }
 0x47c   :  { %v4408_v60 = vpop.f32.mrb[125].mxu0  ;;  %v4794_v51 = vpop.f32.mrb[125].mxu1  ;;  %5828 = vmatmul.mubr.bf16.gmra.mrb[184].mxu0 %v4857_v39  ;;  %6214 = vmatmul.mubr.bf16.gmra.mrb[184].mxu1 %v4857_v39  ;;  %v8341_v63 = vadd.f32 %v4406_v35, %v12002_v23  ;;  %v8405_v33 = vadd.f32 %v4792_v49, %v12005_v27  ;;  %v9876_v39 = vld [vmem:[%s12564_s7 + $0xd8] sm:$0xff]   ;;  %v9879_v49 = vld [vmem:[%s12564_s7 + $0x20] sm:$0xff]  }
 0x47d   :  { %v4410_v55 = vpop.f32.mrb[126].mxu0  ;;  %v4796_v57 = vpop.f32.mrb[126].mxu1  ;;  %v8342_v0 = vadd.f32 %v4408_v60, %v12008_v42  ;;  %v8406_v12 = vadd.f32 %v4794_v51, %v12011_v44  ;;  %v9877_v35 = vld [vmem:[%s12564_s7 + $0x98] sm:$0xff]   ;;  %v9881_v60 = vld [vmem:[%s12564_s7 + $0xa0] sm:$0xff]   ;;  %v9882_v51 = vld [vmem:[%s12564_s7 + $0x68] sm:$0xff]  }
 0x47e   :  { %v8343_v18 = vadd.f32 %v4410_v55, %v12002_v23  ;;  %v8407_v4 = vadd.f32 %v4796_v57, %v12005_v27  ;;  %v4412_v7 = vpop.f32.mrb[127].mxu0  ;;  %v4798_v58 = vpop.f32.mrb[127].mxu1  ;;  %v9863_v23 = vld [vmem:[%s12564_s7] sm:$0xff]   ;;  %v9884_v55 = vld [vmem:[%s12564_s7 + $0xe8] sm:$0xff]  }
 0x47f   :  { %v8344_v59 = vadd.f32 %v4412_v7, %v12008_v42  ;;  %v8408_v1 = vadd.f32 %v4798_v58, %v12011_v44  ;;  %v9865_v27 = vld [vmem:[%s12564_s7 + $0x80] sm:$0xff]   ;;  %v9866_v42 = vld [vmem:[%s12564_s7 + $0x48] sm:$0xff]   ;;  %v9892_v7 = vld [vmem:[%s12564_s7 + $0xf8] sm:$0xff]  }
 0x480   :  { %v4861_v43 = vpack.c.bf16 %v8343_v18, %v8341_v63  ;;  %v12207_v9 = vpack.c.bf16 %v8407_v4, %v8405_v33  ;;  %v9868_v44 = vld [vmem:[%s12564_s7 + $0xc8] sm:$0xff]   ;;  %v9887_v33 = vld [vmem:[%s12564_s7 + $0x30] sm:$0xff]   ;;  %v9890_v4 = vld [vmem:[%s12564_s7 + $0x78] sm:$0xff]  }
 0x481   :  { %v4862_v16 = vpack.c.bf16 %v8344_v59, %v8342_v0  ;;  %v12209_v56 = vpack.c.bf16 %v8408_v1, %v8406_v12  ;;  %v9883_v57 = vld [vmem:[%s12564_s7 + $0x28] sm:$0xff]   ;;  %v9889_v18 = vld [vmem:[%s12564_s7 + $0xb0] sm:$0xff]   ;;  %v9891_v58 = vld [vmem:[%s12564_s7 + $0x38] sm:$0xff]  }
 0x482   :  { %v9885_v63 = vld [vmem:[%s12564_s7 + $0xa8] sm:$0xff]   ;;  %v9893_v0 = vld [vmem:[%s12564_s7 + $0xb8] sm:$0xff]  }
 0x483   :  { %5837 = vmatprep.mubr.bf16.mxu0 %v4862_v16  ;;  %6223 = vmatprep.mubr.bf16.mxu1 %v4862_v16 }
 0x484   :  { %5838 = vmatmul.mubr.bf16.gmra.mrb[188].mxu0 %v4861_v43  ;;  %6224 = vmatmul.mubr.bf16.gmra.mrb[188].mxu1 %v4861_v43 }
 0x485   :  { %5880 = vmatprep.mubr.bf16.mxu0 %v12023_v22  ;;  %6266 = vmatprep.mubr.bf16.mxu1 %v12023_v22  ;;  %v9867_v22 = vld [vmem:[%s12564_s7 + $0x8] sm:$0xff]  }
 0x48c   :  { %5881 = vmatmul.mubr.bf16.vlgmr.msra.gmra.mrb[128].mxu0 %v12021_v37  ;;  %6267 = vmatmul.mubr.bf16.vlgmr.msra.gmra.mrb[128].mxu1 %v12021_v37  ;;  %v9870_v37 = vld [vmem:[%s12564_s7 + $0x50] sm:$0xff]  }
 0x48d   :  { %5890 = vmatprep.mubr.bf16.mxu0 %v12035_v5  ;;  %6276 = vmatprep.mubr.bf16.mxu1 %v12035_v5  ;;  %v9872_v5 = vld [vmem:[%s12564_s7 + $0xd0] sm:$0xff]  }
 0x48e   :  { %7930 = vmatpush3.bf16.msra.mxu0 %v9863_v23  ;;  %8042 = vmatpush3.bf16.msra.mxu1 %v9865_v27 }
 0x48f   :  { %7931 = vmatprep.subr.bf16.mxu0 %v9866_v42  ;;  %8043 = vmatprep.subr.bf16.mxu1 %v9868_v44 }
 0x492   :  { %7932 = vmatpush3.bf16.msra.mxu0 %v9867_v22  ;;  %8044 = vmatpush3.bf16.msra.mxu1 %v9869_v11 }
 0x493   :  { %7933 = vmatprep.subr.bf16.mxu0 %v9870_v37  ;;  %8045 = vmatprep.subr.bf16.mxu1 %v9872_v5 }
 0x494   :  { %5891 = vmatmul.mubr.bf16.gmra.mrb[132].mxu0 %v12033_v3  ;;  %6277 = vmatmul.mubr.bf16.gmra.mrb[132].mxu1 %v12033_v3  ;;  %v9878_v3 = vld [vmem:[%s12564_s7 + $0x60] sm:$0xff]  }
 0x495   :  { %5900 = vmatprep.mubr.bf16.mxu0 %v12047_v36  ;;  %6286 = vmatprep.mubr.bf16.mxu1 %v12047_v36  ;;  %v9880_v36 = vld [vmem:[%s12564_s7 + $0xe0] sm:$0xff]  }
 0x496   :  { %7934 = vmatpush3.bf16.msra.mxu0 %v9871_v15  ;;  %8046 = vmatpush3.bf16.msra.mxu1 %v9873_v19 }
 0x497   :  { %7935 = vmatprep.subr.bf16.mxu0 %v9874_v32  ;;  %8047 = vmatprep.subr.bf16.mxu1 %v9876_v39 }
 0x49a   :  { %7936 = vmatpush3.bf16.msra.mxu0 %v9875_v30  ;;  %8048 = vmatpush3.bf16.msra.mxu1 %v9877_v35 }
 0x49b   :  { %7937 = vmatprep.subr.bf16.mxu0 %v9878_v3  ;;  %8049 = vmatprep.subr.bf16.mxu1 %v9880_v36 }
 0x49c   :  { %5901 = vmatmul.mubr.bf16.gmra.mrb[136].mxu0 %v12045_v53  ;;  %6287 = vmatmul.mubr.bf16.gmra.mrb[136].mxu1 %v12045_v53  ;;  %v9886_v53 = vld [vmem:[%s12564_s7 + $0x70] sm:$0xff]  }
 0x49d   :  { %5910 = vmatprep.mubr.bf16.mxu0 %v12059_v50  ;;  %6296 = vmatprep.mubr.bf16.mxu1 %v12059_v50  ;;  %v9888_v50 = vld [vmem:[%s12564_s7 + $0xf0] sm:$0xff]  }
 0x49e   :  { %7938 = vmatpush3.bf16.msra.mxu0 %v9879_v49  ;;  %8050 = vmatpush3.bf16.msra.mxu1 %v9881_v60 }
 0x49f   :  { %7939 = vmatprep.subr.bf16.mxu0 %v9882_v51  ;;  %8051 = vmatprep.subr.bf16.mxu1 %v9884_v55 }
 0x4a2   :  { %7940 = vmatpush3.bf16.msra.mxu0 %v9883_v57  ;;  %8052 = vmatpush3.bf16.msra.mxu1 %v9885_v63 }
 0x4a3   :  { %7941 = vmatprep.subr.bf16.mxu0 %v9886_v53  ;;  %8053 = vmatprep.subr.bf16.mxu1 %v9888_v50 }
 0x4a4   :  { %5911 = vmatmul.mubr.bf16.gmra.mrb[140].mxu0 %v12057_v6  ;;  %6297 = vmatmul.mubr.bf16.gmra.mrb[140].mxu1 %v12057_v6  ;;  %v4993_v6 = vld [vmem:[%s12563_s6] sm:$0xf] }
 0x4a5   :  { %5920 = vmatprep.mubr.bf16.mxu0 %v12071_v62  ;;  %6306 = vmatprep.mubr.bf16.mxu1 %v12071_v62  ;;  %v12372_v62 = vrot.slane %v4993_v6, %v11535_v26 }
 0x4a6   :  { %7942 = vmatpush3.bf16.msra.mxu0 %v9887_v33  ;;  %8054 = vmatpush3.bf16.msra.mxu1 %v9889_v18 }
 0x4a7   :  { %7943 = vmatprep.subr.bf16.mxu0 %v9890_v4  ;;  %8055 = vmatprep.subr.bf16.mxu1 %v9892_v7 }
 0x4aa   :  { %7944 = vmatpush3.bf16.msra.mxu0 %v9891_v58  ;;  %8056 = vmatpush3.bf16.msra.mxu1 %v9893_v0 }
 0x4ac   :  { %5921 = vmatmul.mubr.bf16.gmra.mrb[144].mxu0 %v12069_v45  ;;  %6307 = vmatmul.mubr.bf16.gmra.mrb[144].mxu1 %v12069_v45  ;;  %v12369_v45 = vrot.slane %v4993_v6, %v11533_v25 }
 0x4ad   :  { %5930 = vmatprep.mubr.bf16.mxu0 %v12083_v14  ;;  %6316 = vmatprep.mubr.bf16.mxu1 %v12083_v14 }
 0x4b4   :  { %5931 = vmatmul.mubr.bf16.gmra.mrb[148].mxu0 %v12081_v2  ;;  %6317 = vmatmul.mubr.bf16.gmra.mrb[148].mxu1 %v12081_v2 }
 0x4b5   :  { %5940 = vmatprep.mubr.bf16.mxu0 %v12095_v54  ;;  %6326 = vmatprep.mubr.bf16.mxu1 %v12095_v54  ;;  %v12378_v54 = vrot.slane %v4993_v6, %v11542_v29 }
 0x4bc   :  { %5941 = vmatmul.mubr.bf16.gmra.mrb[152].mxu0 %v12093_v38  ;;  %6327 = vmatmul.mubr.bf16.gmra.mrb[152].mxu1 %v12093_v38  ;;  %v12375_v38 = vrot.slane %v4993_v6, %v11540_v28 }
 0x4bd   :  { %5950 = vmatprep.mubr.bf16.mxu0 %v12107_v17  ;;  %6336 = vmatprep.mubr.bf16.mxu1 %v12107_v17 }
 0x4c4   :  { %5951 = vmatmul.mubr.bf16.gmra.mrb[156].mxu0 %v12105_v13  ;;  %6337 = vmatmul.mubr.bf16.gmra.mrb[156].mxu1 %v12105_v13 }
 0x4c5   :  { %5960 = vmatprep.mubr.bf16.mxu0 %v12119_v24  ;;  %6346 = vmatprep.mubr.bf16.mxu1 %v12119_v24 }
 0x4cc   :  { %5961 = vmatmul.mubr.bf16.gmra.mrb[160].mxu0 %v12117_v48  ;;  %6347 = vmatmul.mubr.bf16.gmra.mrb[160].mxu1 %v12117_v48 }
 0x4cd   :  { %5970 = vmatprep.mubr.bf16.mxu0 %v12131_v20  ;;  %6356 = vmatprep.mubr.bf16.mxu1 %v12131_v20 }
 0x4d4   :  { %5971 = vmatmul.mubr.bf16.gmra.mrb[164].mxu0 %v12129_v40  ;;  %6357 = vmatmul.mubr.bf16.gmra.mrb[164].mxu1 %v12129_v40 }
 0x4d5   :  { %5980 = vmatprep.mubr.bf16.mxu0 %v12143_v61  ;;  %6366 = vmatprep.mubr.bf16.mxu1 %v12143_v61 }
 0x4dc   :  { %5981 = vmatmul.mubr.bf16.gmra.mrb[168].mxu0 %v12141_v21  ;;  %6367 = vmatmul.mubr.bf16.gmra.mrb[168].mxu1 %v12141_v21 }
 0x4dd   :  { %5990 = vmatprep.mubr.bf16.mxu0 %v12155_v34  ;;  %6376 = vmatprep.mubr.bf16.mxu1 %v12155_v34 }
 0x4e4   :  { %5991 = vmatmul.mubr.bf16.gmra.mrb[172].mxu0 %v12153_v31  ;;  %6377 = vmatmul.mubr.bf16.gmra.mrb[172].mxu1 %v12153_v31 }
 0x4e5   :  { %6000 = vmatprep.mubr.bf16.mxu0 %v12173_v10  ;;  %6386 = vmatprep.mubr.bf16.mxu1 %v12173_v10 }
 0x4ec   :  { %6001 = vmatmul.mubr.bf16.gmra.mrb[176].mxu0 %v12171_v46  ;;  %6387 = vmatmul.mubr.bf16.gmra.mrb[176].mxu1 %v12171_v46 }
 0x4ed   :  { %6010 = vmatprep.mubr.bf16.mxu0 %v12185_v8  ;;  %6396 = vmatprep.mubr.bf16.mxu1 %v12185_v8 }
 0x4f4   :  { %6011 = vmatmul.mubr.bf16.gmra.mrb[180].mxu0 %v12183_v52  ;;  %6397 = vmatmul.mubr.bf16.gmra.mrb[180].mxu1 %v12183_v52 }
 0x4f5   :  { %6020 = vmatprep.mubr.bf16.mxu0 %v12197_v47  ;;  %6406 = vmatprep.mubr.bf16.mxu1 %v12197_v47 }
 0x4fc   :  { %6021 = vmatmul.mubr.bf16.gmra.mrb[184].mxu0 %v12195_v41  ;;  %6407 = vmatmul.mubr.bf16.gmra.mrb[184].mxu1 %v12195_v41 }
 0x4fd   :  { %6030 = vmatprep.mubr.bf16.mxu0 %v12209_v56  ;;  %6416 = vmatprep.mubr.bf16.mxu1 %v12209_v56 }
 0x504   :  { %6031 = vmatmul.mubr.bf16.gmra.mrb[188].mxu0 %v12207_v9  ;;  %6417 = vmatmul.mubr.bf16.gmra.mrb[188].mxu1 %v12207_v9 }
 0x55f   :  { %v5882_v2 = vpop.f32.mrb[128].mxu0  ;;  %v6268_v14 = vpop.f32.mrb[128].mxu1 }
 0x560   :  { %v5884_v13 = vpop.f32.mrb[129].mxu0  ;;  %v6270_v17 = vpop.f32.mrb[129].mxu1  ;;  %v8409_v40 = vadd.f32 %v5882_v2, %v12369_v45  ;;  %v8473_v25 = vadd.f32 %v6268_v14, %v12372_v62 }
 0x561   :  { %v5886_v48 = vpop.f32.mrb[130].mxu0  ;;  %v6272_v24 = vpop.f32.mrb[130].mxu1  ;;  %v8410_v28 = vadd.f32 %v5884_v13, %v12375_v38  ;;  %v8474_v31 = vadd.f32 %v6270_v17, %v12378_v54 }
 0x562   :  { %v8411_v20 = vadd.f32 %v5886_v48, %v12369_v45  ;;  %v8475_v26 = vadd.f32 %v6272_v24, %v12372_v62  ;;  %v5888_v21 = vpop.f32.mrb[131].mxu0  ;;  %v6274_v61 = vpop.f32.mrb[131].mxu1 }
 0x563   :  { %v8412_v29 = vadd.f32 %v5888_v21, %v12375_v38  ;;  %v8476_v34 = vadd.f32 %v6274_v61, %v12378_v54 }
 0x564   :  { %v6427_v46 = vpack.c.bf16 %v8411_v20, %v8409_v40  ;;  %v6429_v10 = vpack.c.bf16 %v8475_v26, %v8473_v25 }
 0x565   :  { %v6428_v52 = vpack.c.bf16 %v8412_v29, %v8410_v28  ;;  %v6430_v8 = vpack.c.bf16 %v8476_v34, %v8474_v31 }
 0x567   :  { %v5892_v41 = vpop.f32.mrb[132].mxu0  ;;  %v6278_v47 = vpop.f32.mrb[132].mxu1  ;;  %6786 = vmatprep.mubr.bf16.mxu0 %v6428_v52  ;;  %6947 = vmatprep.mubr.bf16.mxu1 %v6430_v8 }
 0x568   :  { %v5894_v12 = vpop.f32.mrb[133].mxu0  ;;  %v6280_v59 = vpop.f32.mrb[133].mxu1  ;;  %6787 = vmatmul.mubr.bf16.vlgmr.msra.gmra.mrb[192].mxu0 %v6427_v46  ;;  %6948 = vmatmul.mubr.bf16.vlgmr.msra.gmra.mrb[192].mxu1 %v6429_v10  ;;  %v8413_v9 = vadd.f32 %v5892_v41, %v12369_v45  ;;  %v8477_v16 = vadd.f32 %v6278_v47, %v12372_v62 }
 0x569   :  { %v5896_v1 = vpop.f32.mrb[134].mxu0  ;;  %v6282_v43 = vpop.f32.mrb[134].mxu1  ;;  %v8414_v44 = vadd.f32 %v5894_v12, %v12375_v38  ;;  %v8478_v22 = vadd.f32 %v6280_v59, %v12378_v54 }
 0x56a   :  { %v8415_v56 = vadd.f32 %v5896_v1, %v12369_v45  ;;  %v8479_v23 = vadd.f32 %v6282_v43, %v12372_v62  ;;  %v5898_v27 = vpop.f32.mrb[135].mxu0  ;;  %v6284_v42 = vpop.f32.mrb[135].mxu1 }
 0x56b   :  { %v8416_v11 = vadd.f32 %v5898_v27, %v12375_v38  ;;  %v8480_v37 = vadd.f32 %v6284_v42, %v12378_v54 }
 0x56c   :  { %v6431_v5 = vpack.c.bf16 %v8415_v56, %v8413_v9  ;;  %v6433_v15 = vpack.c.bf16 %v8479_v23, %v8477_v16 }
 0x56d   :  { %v6432_v19 = vpack.c.bf16 %v8416_v11, %v8414_v44  ;;  %v6434_v32 = vpack.c.bf16 %v8480_v37, %v8478_v22 }
 0x56f   :  { %v5902_v39 = vpop.f32.mrb[136].mxu0  ;;  %v6288_v30 = vpop.f32.mrb[136].mxu1  ;;  %6794 = vmatprep.mubr.bf16.mxu0 %v6432_v19  ;;  %6955 = vmatprep.mubr.bf16.mxu1 %v6434_v32 }
 0x570   :  { %v5904_v35 = vpop.f32.mrb[137].mxu0  ;;  %v6290_v3 = vpop.f32.mrb[137].mxu1  ;;  %6795 = vmatmul.mubr.bf16.gmra.mrb[196].mxu0 %v6431_v5  ;;  %6956 = vmatmul.mubr.bf16.gmra.mrb[196].mxu1 %v6433_v15  ;;  %v8417_v60 = vadd.f32 %v5902_v39, %v12369_v45  ;;  %v8481_v51 = vadd.f32 %v6288_v30, %v12372_v62 }
 0x571   :  { %v5906_v36 = vpop.f32.mrb[138].mxu0  ;;  %v6292_v49 = vpop.f32.mrb[138].mxu1  ;;  %v8418_v50 = vadd.f32 %v5904_v35, %v12375_v38  ;;  %v8482_v33 = vadd.f32 %v6290_v3, %v12378_v54 }
 0x572   :  { %v8419_v55 = vadd.f32 %v5906_v36, %v12369_v45  ;;  %v8483_v57 = vadd.f32 %v6292_v49, %v12372_v62  ;;  %v5908_v63 = vpop.f32.mrb[139].mxu0  ;;  %v6294_v53 = vpop.f32.mrb[139].mxu1 }
 0x573   :  { %v8420_v18 = vadd.f32 %v5908_v63, %v12375_v38  ;;  %v8484_v4 = vadd.f32 %v6294_v53, %v12378_v54 }
 0x574   :  { %v6435_v7 = vpack.c.bf16 %v8419_v55, %v8417_v60  ;;  %v6437_v58 = vpack.c.bf16 %v8483_v57, %v8481_v51 }
 0x575   :  { %v6436_v0 = vpack.c.bf16 %v8420_v18, %v8418_v50  ;;  %v6438_v6 = vpack.c.bf16 %v8484_v4, %v8482_v33 }
 0x577   :  { %v5912_v2 = vpop.f32.mrb[140].mxu0  ;;  %v6298_v14 = vpop.f32.mrb[140].mxu1  ;;  %6802 = vmatprep.mubr.bf16.mxu0 %v6436_v0  ;;  %6963 = vmatprep.mubr.bf16.mxu1 %v6438_v6 }
 0x578   :  { %v5914_v13 = vpop.f32.mrb[141].mxu0  ;;  %v6300_v17 = vpop.f32.mrb[141].mxu1  ;;  %6803 = vmatmul.mubr.bf16.gmra.mrb[200].mxu0 %v6435_v7  ;;  %6964 = vmatmul.mubr.bf16.gmra.mrb[200].mxu1 %v6437_v58  ;;  %v8421_v40 = vadd.f32 %v5912_v2, %v12369_v45  ;;  %v8485_v25 = vadd.f32 %v6298_v14, %v12372_v62 }
 0x579   :  { %v5916_v48 = vpop.f32.mrb[142].mxu0  ;;  %v6302_v24 = vpop.f32.mrb[142].mxu1  ;;  %v8422_v28 = vadd.f32 %v5914_v13, %v12375_v38  ;;  %v8486_v31 = vadd.f32 %v6300_v17, %v12378_v54 }
 0x57a   :  { %v8423_v20 = vadd.f32 %v5916_v48, %v12369_v45  ;;  %v8487_v26 = vadd.f32 %v6302_v24, %v12372_v62  ;;  %v5918_v21 = vpop.f32.mrb[143].mxu0  ;;  %v6304_v61 = vpop.f32.mrb[143].mxu1 }
 0x57b   :  { %v8424_v29 = vadd.f32 %v5918_v21, %v12375_v38  ;;  %v8488_v34 = vadd.f32 %v6304_v61, %v12378_v54 }
 0x57c   :  { %v6439_v46 = vpack.c.bf16 %v8423_v20, %v8421_v40  ;;  %v6441_v10 = vpack.c.bf16 %v8487_v26, %v8485_v25 }
 0x57d   :  { %v6440_v52 = vpack.c.bf16 %v8424_v29, %v8422_v28  ;;  %v6442_v8 = vpack.c.bf16 %v8488_v34, %v8486_v31 }
 0x57f   :  { %v5922_v41 = vpop.f32.mrb[144].mxu0  ;;  %v6308_v47 = vpop.f32.mrb[144].mxu1  ;;  %6810 = vmatprep.mubr.bf16.mxu0 %v6440_v52  ;;  %6971 = vmatprep.mubr.bf16.mxu1 %v6442_v8 }
 0x580   :  { %v5924_v12 = vpop.f32.mrb[145].mxu0  ;;  %v6310_v59 = vpop.f32.mrb[145].mxu1  ;;  %6811 = vmatmul.mubr.bf16.gmra.mrb[204].mxu0 %v6439_v46  ;;  %6972 = vmatmul.mubr.bf16.gmra.mrb[204].mxu1 %v6441_v10  ;;  %v8425_v9 = vadd.f32 %v5922_v41, %v12369_v45  ;;  %v8489_v16 = vadd.f32 %v6308_v47, %v12372_v62 }
 0x581   :  { %v5926_v1 = vpop.f32.mrb[146].mxu0  ;;  %v6312_v43 = vpop.f32.mrb[146].mxu1  ;;  %v8426_v44 = vadd.f32 %v5924_v12, %v12375_v38  ;;  %v8490_v22 = vadd.f32 %v6310_v59, %v12378_v54 }
 0x582   :  { %v8427_v56 = vadd.f32 %v5926_v1, %v12369_v45  ;;  %v8491_v23 = vadd.f32 %v6312_v43, %v12372_v62  ;;  %v5928_v27 = vpop.f32.mrb[147].mxu0  ;;  %v6314_v42 = vpop.f32.mrb[147].mxu1 }
 0x583   :  { %v8428_v11 = vadd.f32 %v5928_v27, %v12375_v38  ;;  %v8492_v37 = vadd.f32 %v6314_v42, %v12378_v54 }
 0x584   :  { %v6443_v5 = vpack.c.bf16 %v8427_v56, %v8425_v9  ;;  %v6445_v15 = vpack.c.bf16 %v8491_v23, %v8489_v16 }
 0x585   :  { %v6444_v19 = vpack.c.bf16 %v8428_v11, %v8426_v44  ;;  %v6446_v32 = vpack.c.bf16 %v8492_v37, %v8490_v22 }
 0x587   :  { %v5932_v39 = vpop.f32.mrb[148].mxu0  ;;  %v6318_v30 = vpop.f32.mrb[148].mxu1  ;;  %6818 = vmatprep.mubr.bf16.mxu0 %v6444_v19  ;;  %6979 = vmatprep.mubr.bf16.mxu1 %v6446_v32 }
 0x588   :  { %v5934_v35 = vpop.f32.mrb[149].mxu0  ;;  %v6320_v3 = vpop.f32.mrb[149].mxu1  ;;  %6819 = vmatmul.mubr.bf16.gmra.mrb[208].mxu0 %v6443_v5  ;;  %6980 = vmatmul.mubr.bf16.gmra.mrb[208].mxu1 %v6445_v15  ;;  %v8429_v60 = vadd.f32 %v5932_v39, %v12369_v45  ;;  %v8493_v51 = vadd.f32 %v6318_v30, %v12372_v62 }
 0x589   :  { %v5936_v36 = vpop.f32.mrb[150].mxu0  ;;  %v6322_v49 = vpop.f32.mrb[150].mxu1  ;;  %v8430_v50 = vadd.f32 %v5934_v35, %v12375_v38  ;;  %v8494_v33 = vadd.f32 %v6320_v3, %v12378_v54 }
 0x58a   :  { %v8431_v55 = vadd.f32 %v5936_v36, %v12369_v45  ;;  %v8495_v57 = vadd.f32 %v6322_v49, %v12372_v62  ;;  %v5938_v63 = vpop.f32.mrb[151].mxu0  ;;  %v6324_v53 = vpop.f32.mrb[151].mxu1 }
 0x58b   :  { %v8432_v18 = vadd.f32 %v5938_v63, %v12375_v38  ;;  %v8496_v4 = vadd.f32 %v6324_v53, %v12378_v54 }
 0x58c   :  { %v6447_v7 = vpack.c.bf16 %v8431_v55, %v8429_v60  ;;  %v6449_v58 = vpack.c.bf16 %v8495_v57, %v8493_v51 }
 0x58d   :  { %v6448_v0 = vpack.c.bf16 %v8432_v18, %v8430_v50  ;;  %v6450_v6 = vpack.c.bf16 %v8496_v4, %v8494_v33 }
 0x58f   :  { %v5942_v2 = vpop.f32.mrb[152].mxu0  ;;  %v6328_v14 = vpop.f32.mrb[152].mxu1  ;;  %6826 = vmatprep.mubr.bf16.mxu0 %v6448_v0  ;;  %6987 = vmatprep.mubr.bf16.mxu1 %v6450_v6 }
 0x590   :  { %v5944_v13 = vpop.f32.mrb[153].mxu0  ;;  %v6330_v17 = vpop.f32.mrb[153].mxu1  ;;  %6827 = vmatmul.mubr.bf16.gmra.mrb[212].mxu0 %v6447_v7  ;;  %6988 = vmatmul.mubr.bf16.gmra.mrb[212].mxu1 %v6449_v58  ;;  %v8433_v40 = vadd.f32 %v5942_v2, %v12369_v45  ;;  %v8497_v25 = vadd.f32 %v6328_v14, %v12372_v62 }
 0x591   :  { %v5946_v48 = vpop.f32.mrb[154].mxu0  ;;  %v6332_v24 = vpop.f32.mrb[154].mxu1  ;;  %v8434_v28 = vadd.f32 %v5944_v13, %v12375_v38  ;;  %v8498_v31 = vadd.f32 %v6330_v17, %v12378_v54 }
 0x592   :  { %v8435_v20 = vadd.f32 %v5946_v48, %v12369_v45  ;;  %v8499_v26 = vadd.f32 %v6332_v24, %v12372_v62  ;;  %v5948_v21 = vpop.f32.mrb[155].mxu0  ;;  %v6334_v61 = vpop.f32.mrb[155].mxu1 }
 0x593   :  { %v8436_v29 = vadd.f32 %v5948_v21, %v12375_v38  ;;  %v8500_v34 = vadd.f32 %v6334_v61, %v12378_v54 }
 0x594   :  { %v6451_v46 = vpack.c.bf16 %v8435_v20, %v8433_v40  ;;  %v6453_v10 = vpack.c.bf16 %v8499_v26, %v8497_v25 }
 0x595   :  { %v6452_v52 = vpack.c.bf16 %v8436_v29, %v8434_v28  ;;  %v6454_v8 = vpack.c.bf16 %v8500_v34, %v8498_v31 }
 0x597   :  { %v5952_v41 = vpop.f32.mrb[156].mxu0  ;;  %v6338_v47 = vpop.f32.mrb[156].mxu1  ;;  %6834 = vmatprep.mubr.bf16.mxu0 %v6452_v52  ;;  %6995 = vmatprep.mubr.bf16.mxu1 %v6454_v8 }
 0x598   :  { %v5954_v12 = vpop.f32.mrb[157].mxu0  ;;  %v6340_v59 = vpop.f32.mrb[157].mxu1  ;;  %6835 = vmatmul.mubr.bf16.gmra.mrb[216].mxu0 %v6451_v46  ;;  %6996 = vmatmul.mubr.bf16.gmra.mrb[216].mxu1 %v6453_v10  ;;  %v8437_v9 = vadd.f32 %v5952_v41, %v12369_v45  ;;  %v8501_v16 = vadd.f32 %v6338_v47, %v12372_v62 }
 0x599   :  { %v5956_v1 = vpop.f32.mrb[158].mxu0  ;;  %v6342_v43 = vpop.f32.mrb[158].mxu1  ;;  %v8438_v44 = vadd.f32 %v5954_v12, %v12375_v38  ;;  %v8502_v22 = vadd.f32 %v6340_v59, %v12378_v54 }
 0x59a   :  { %v8439_v56 = vadd.f32 %v5956_v1, %v12369_v45  ;;  %v8503_v23 = vadd.f32 %v6342_v43, %v12372_v62  ;;  %v5958_v27 = vpop.f32.mrb[159].mxu0  ;;  %v6344_v42 = vpop.f32.mrb[159].mxu1 }
 0x59b   :  { %v8440_v11 = vadd.f32 %v5958_v27, %v12375_v38  ;;  %v8504_v37 = vadd.f32 %v6344_v42, %v12378_v54 }
 0x59c   :  { %v6455_v5 = vpack.c.bf16 %v8439_v56, %v8437_v9  ;;  %v6457_v15 = vpack.c.bf16 %v8503_v23, %v8501_v16 }
 0x59d   :  { %v6456_v19 = vpack.c.bf16 %v8440_v11, %v8438_v44  ;;  %v6458_v32 = vpack.c.bf16 %v8504_v37, %v8502_v22 }
 0x59f   :  { %v5962_v39 = vpop.f32.mrb[160].mxu0  ;;  %v6348_v30 = vpop.f32.mrb[160].mxu1  ;;  %6842 = vmatprep.mubr.bf16.mxu0 %v6456_v19  ;;  %7003 = vmatprep.mubr.bf16.mxu1 %v6458_v32 }
 0x5a0   :  { %v5964_v35 = vpop.f32.mrb[161].mxu0  ;;  %v6350_v3 = vpop.f32.mrb[161].mxu1  ;;  %6843 = vmatmul.mubr.bf16.gmra.mrb[220].mxu0 %v6455_v5  ;;  %7004 = vmatmul.mubr.bf16.gmra.mrb[220].mxu1 %v6457_v15  ;;  %v8441_v60 = vadd.f32 %v5962_v39, %v12369_v45  ;;  %v8505_v51 = vadd.f32 %v6348_v30, %v12372_v62 }
 0x5a1   :  { %v5966_v36 = vpop.f32.mrb[162].mxu0  ;;  %v6352_v49 = vpop.f32.mrb[162].mxu1  ;;  %v8442_v50 = vadd.f32 %v5964_v35, %v12375_v38  ;;  %v8506_v33 = vadd.f32 %v6350_v3, %v12378_v54 }
 0x5a2   :  { %v8443_v55 = vadd.f32 %v5966_v36, %v12369_v45  ;;  %v8507_v57 = vadd.f32 %v6352_v49, %v12372_v62  ;;  %v5968_v63 = vpop.f32.mrb[163].mxu0  ;;  %v6354_v53 = vpop.f32.mrb[163].mxu1 }
 0x5a3   :  { %v8444_v18 = vadd.f32 %v5968_v63, %v12375_v38  ;;  %v8508_v4 = vadd.f32 %v6354_v53, %v12378_v54 }
 0x5a4   :  { %v6459_v7 = vpack.c.bf16 %v8443_v55, %v8441_v60  ;;  %v6461_v58 = vpack.c.bf16 %v8507_v57, %v8505_v51 }
 0x5a5   :  { %v6460_v0 = vpack.c.bf16 %v8444_v18, %v8442_v50  ;;  %v6462_v6 = vpack.c.bf16 %v8508_v4, %v8506_v33 }
 0x5a7   :  { %v5972_v2 = vpop.f32.mrb[164].mxu0  ;;  %v6358_v14 = vpop.f32.mrb[164].mxu1  ;;  %6850 = vmatprep.mubr.bf16.mxu0 %v6460_v0  ;;  %7011 = vmatprep.mubr.bf16.mxu1 %v6462_v6 }
 0x5a8   :  { %v5974_v13 = vpop.f32.mrb[165].mxu0  ;;  %v6360_v17 = vpop.f32.mrb[165].mxu1  ;;  %6851 = vmatmul.mubr.bf16.gmra.mrb[224].mxu0 %v6459_v7  ;;  %7012 = vmatmul.mubr.bf16.gmra.mrb[224].mxu1 %v6461_v58  ;;  %v8445_v40 = vadd.f32 %v5972_v2, %v12369_v45  ;;  %v8509_v25 = vadd.f32 %v6358_v14, %v12372_v62 }
 0x5a9   :  { %v5976_v48 = vpop.f32.mrb[166].mxu0  ;;  %v6362_v24 = vpop.f32.mrb[166].mxu1  ;;  %v8446_v28 = vadd.f32 %v5974_v13, %v12375_v38  ;;  %v8510_v31 = vadd.f32 %v6360_v17, %v12378_v54 }
 0x5aa   :  { %v8447_v20 = vadd.f32 %v5976_v48, %v12369_v45  ;;  %v8511_v26 = vadd.f32 %v6362_v24, %v12372_v62  ;;  %v5978_v21 = vpop.f32.mrb[167].mxu0  ;;  %v6364_v61 = vpop.f32.mrb[167].mxu1 }
 0x5ab   :  { %v8448_v29 = vadd.f32 %v5978_v21, %v12375_v38  ;;  %v8512_v34 = vadd.f32 %v6364_v61, %v12378_v54 }
 0x5ac   :  { %v6463_v46 = vpack.c.bf16 %v8447_v20, %v8445_v40  ;;  %v6465_v10 = vpack.c.bf16 %v8511_v26, %v8509_v25 }
 0x5ad   :  { %v6464_v52 = vpack.c.bf16 %v8448_v29, %v8446_v28  ;;  %v6466_v8 = vpack.c.bf16 %v8512_v34, %v8510_v31 }
 0x5af   :  { %v5982_v41 = vpop.f32.mrb[168].mxu0  ;;  %v6368_v47 = vpop.f32.mrb[168].mxu1  ;;  %6858 = vmatprep.mubr.bf16.mxu0 %v6464_v52  ;;  %7019 = vmatprep.mubr.bf16.mxu1 %v6466_v8 }
 0x5b0   :  { %v5984_v12 = vpop.f32.mrb[169].mxu0  ;;  %v6370_v59 = vpop.f32.mrb[169].mxu1  ;;  %6859 = vmatmul.mubr.bf16.gmra.mrb[228].mxu0 %v6463_v46  ;;  %7020 = vmatmul.mubr.bf16.gmra.mrb[228].mxu1 %v6465_v10  ;;  %v8449_v9 = vadd.f32 %v5982_v41, %v12369_v45  ;;  %v8513_v16 = vadd.f32 %v6368_v47, %v12372_v62 }
 0x5b1   :  { %v5986_v1 = vpop.f32.mrb[170].mxu0  ;;  %v6372_v43 = vpop.f32.mrb[170].mxu1  ;;  %v8450_v44 = vadd.f32 %v5984_v12, %v12375_v38  ;;  %v8514_v22 = vadd.f32 %v6370_v59, %v12378_v54 }
 0x5b2   :  { %v8451_v56 = vadd.f32 %v5986_v1, %v12369_v45  ;;  %v8515_v23 = vadd.f32 %v6372_v43, %v12372_v62  ;;  %v5988_v27 = vpop.f32.mrb[171].mxu0  ;;  %v6374_v42 = vpop.f32.mrb[171].mxu1 }
 0x5b3   :  { %v8452_v11 = vadd.f32 %v5988_v27, %v12375_v38  ;;  %v8516_v37 = vadd.f32 %v6374_v42, %v12378_v54 }
 0x5b4   :  { %v6467_v5 = vpack.c.bf16 %v8451_v56, %v8449_v9  ;;  %v6469_v15 = vpack.c.bf16 %v8515_v23, %v8513_v16 }
 0x5b5   :  { %v6468_v19 = vpack.c.bf16 %v8452_v11, %v8450_v44  ;;  %v6470_v32 = vpack.c.bf16 %v8516_v37, %v8514_v22 }
 0x5b7   :  { %v5992_v39 = vpop.f32.mrb[172].mxu0  ;;  %v6378_v30 = vpop.f32.mrb[172].mxu1  ;;  %6866 = vmatprep.mubr.bf16.mxu0 %v6468_v19  ;;  %7027 = vmatprep.mubr.bf16.mxu1 %v6470_v32 }
 0x5b8   :  { %v5994_v35 = vpop.f32.mrb[173].mxu0  ;;  %v6380_v3 = vpop.f32.mrb[173].mxu1  ;;  %6867 = vmatmul.mubr.bf16.gmra.mrb[232].mxu0 %v6467_v5  ;;  %7028 = vmatmul.mubr.bf16.gmra.mrb[232].mxu1 %v6469_v15  ;;  %v8453_v60 = vadd.f32 %v5992_v39, %v12369_v45  ;;  %v8517_v51 = vadd.f32 %v6378_v30, %v12372_v62 }
 0x5b9   :  { %v5996_v36 = vpop.f32.mrb[174].mxu0  ;;  %v6382_v49 = vpop.f32.mrb[174].mxu1  ;;  %v8454_v50 = vadd.f32 %v5994_v35, %v12375_v38  ;;  %v8518_v33 = vadd.f32 %v6380_v3, %v12378_v54 }
 0x5ba   :  { %v8455_v55 = vadd.f32 %v5996_v36, %v12369_v45  ;;  %v8519_v57 = vadd.f32 %v6382_v49, %v12372_v62  ;;  %v5998_v63 = vpop.f32.mrb[175].mxu0  ;;  %v6384_v53 = vpop.f32.mrb[175].mxu1 }
 0x5bb   :  { %v8456_v18 = vadd.f32 %v5998_v63, %v12375_v38  ;;  %v8520_v4 = vadd.f32 %v6384_v53, %v12378_v54 }
 0x5bc   :  { %v6471_v7 = vpack.c.bf16 %v8455_v55, %v8453_v60  ;;  %v6473_v58 = vpack.c.bf16 %v8519_v57, %v8517_v51 }
 0x5bd   :  { %v6472_v0 = vpack.c.bf16 %v8456_v18, %v8454_v50  ;;  %v6474_v6 = vpack.c.bf16 %v8520_v4, %v8518_v33 }
 0x5bf   :  { %v6002_v2 = vpop.f32.mrb[176].mxu0  ;;  %v6388_v14 = vpop.f32.mrb[176].mxu1  ;;  %6874 = vmatprep.mubr.bf16.mxu0 %v6472_v0  ;;  %7035 = vmatprep.mubr.bf16.mxu1 %v6474_v6 }
 0x5c0   :  { %v6004_v13 = vpop.f32.mrb[177].mxu0  ;;  %v6390_v17 = vpop.f32.mrb[177].mxu1  ;;  %6875 = vmatmul.mubr.bf16.gmra.mrb[236].mxu0 %v6471_v7  ;;  %7036 = vmatmul.mubr.bf16.gmra.mrb[236].mxu1 %v6473_v58  ;;  %v8457_v40 = vadd.f32 %v6002_v2, %v12369_v45  ;;  %v8521_v25 = vadd.f32 %v6388_v14, %v12372_v62 }
 0x5c1   :  { %v6006_v48 = vpop.f32.mrb[178].mxu0  ;;  %v6392_v24 = vpop.f32.mrb[178].mxu1  ;;  %v8458_v28 = vadd.f32 %v6004_v13, %v12375_v38  ;;  %v8522_v31 = vadd.f32 %v6390_v17, %v12378_v54 }
 0x5c2   :  { %v8459_v20 = vadd.f32 %v6006_v48, %v12369_v45  ;;  %v8523_v26 = vadd.f32 %v6392_v24, %v12372_v62  ;;  %v6008_v21 = vpop.f32.mrb[179].mxu0  ;;  %v6394_v61 = vpop.f32.mrb[179].mxu1 }
 0x5c3   :  { %v8460_v29 = vadd.f32 %v6008_v21, %v12375_v38  ;;  %v8524_v34 = vadd.f32 %v6394_v61, %v12378_v54 }
 0x5c4   :  { %v6475_v46 = vpack.c.bf16 %v8459_v20, %v8457_v40  ;;  %v6477_v10 = vpack.c.bf16 %v8523_v26, %v8521_v25 }
 0x5c5   :  { %v6476_v52 = vpack.c.bf16 %v8460_v29, %v8458_v28  ;;  %v6478_v8 = vpack.c.bf16 %v8524_v34, %v8522_v31 }
 0x5c7   :  { %v6012_v41 = vpop.f32.mrb[180].mxu0  ;;  %v6398_v47 = vpop.f32.mrb[180].mxu1  ;;  %6882 = vmatprep.mubr.bf16.mxu0 %v6476_v52  ;;  %7043 = vmatprep.mubr.bf16.mxu1 %v6478_v8 }
 0x5c8   :  { %v6014_v12 = vpop.f32.mrb[181].mxu0  ;;  %v6400_v59 = vpop.f32.mrb[181].mxu1  ;;  %6883 = vmatmul.mubr.bf16.gmra.mrb[240].mxu0 %v6475_v46  ;;  %7044 = vmatmul.mubr.bf16.gmra.mrb[240].mxu1 %v6477_v10  ;;  %v8461_v9 = vadd.f32 %v6012_v41, %v12369_v45  ;;  %v8525_v16 = vadd.f32 %v6398_v47, %v12372_v62  ;;  %v12511_v41 = vld [vmem:[%s12565_s8] ss:$0 sm:$0xff]  ;;  %s9946_s8 = smov [#allocation5]  }
 0x5c9   :  { %v6016_v1 = vpop.f32.mrb[182].mxu0  ;;  %v6402_v43 = vpop.f32.mrb[182].mxu1  ;;  %v8462_v44 = vadd.f32 %v6014_v12, %v12375_v38  ;;  %v8526_v22 = vadd.f32 %v6400_v59, %v12378_v54  ;;  %s7241_s24 = sshll.u32 %s9946_s8, 4  ;;  %s7242_s24 = int_to_ptr.vmem [resolvable:$true] %s7241_s24 }
 0x5ca   :  { %v8463_v56 = vadd.f32 %v6016_v1, %v12369_v45  ;;  %v8527_v23 = vadd.f32 %v6402_v43, %v12372_v62  ;;  %v6018_v27 = vpop.f32.mrb[183].mxu0  ;;  %v6404_v42 = vpop.f32.mrb[183].mxu1  ;;  %s9916_s25 = scalar_lea.vmem %s7242_s24, 2048  ;;  %p9921_p9 = scmp.lt.s32.totalorder %s7242_s24, %s7242_s24 }
 0x5cb   :  { %v8464_v11 = vadd.f32 %v6018_v27, %v12375_v38  ;;  %v8528_v37 = vadd.f32 %v6404_v42, %v12378_v54  ;;  %p9917_p8 = scmp.ne.s32.totalorder %s7242_s24, %s9916_s25  ;;  %p9922_p10 = scmp.lt.s32.totalorder %s9916_s25, %s9916_s25 }
 0x5cc   :  { %v6479_v5 = vpack.c.bf16 %v8463_v56, %v8461_v9  ;;  %v6481_v15 = vpack.c.bf16 %v8527_v23, %v8525_v16 }
 0x5cd   :  { %v6480_v19 = vpack.c.bf16 %v8464_v11, %v8462_v44  ;;  %v6482_v32 = vpack.c.bf16 %v8528_v37, %v8526_v22  ;;  %p9923_p11 = por %p9922_p10, %p9921_p9 }
 0x5cf   :  { %v6022_v39 = vpop.f32.mrb[184].mxu0  ;;  %v6408_v30 = vpop.f32.mrb[184].mxu1  ;;  %6890 = vmatprep.mubr.bf16.mxu0 %v6480_v19  ;;  %7051 = vmatprep.mubr.bf16.mxu1 %v6482_v32  ;;  %p9924_p12 = pnand %p9923_p11, %p9917_p8 }
 0x5d0   :  { %v6024_v35 = vpop.f32.mrb[185].mxu0  ;;  %v6410_v3 = vpop.f32.mrb[185].mxu1  ;;  %6891 = vmatmul.mubr.bf16.gmra.mrb[244].mxu0 %v6479_v5  ;;  %7052 = vmatmul.mubr.bf16.gmra.mrb[244].mxu1 %v6481_v15  ;;  %v8465_v60 = vadd.f32 %v6022_v39, %v12369_v45  ;;  %v8529_v51 = vadd.f32 %v6408_v30, %v12372_v62 }
 0x5d1   :  { %v6026_v36 = vpop.f32.mrb[186].mxu0  ;;  %v6412_v49 = vpop.f32.mrb[186].mxu1  ;;  %v8466_v50 = vadd.f32 %v6024_v35, %v12375_v38  ;;  %v8530_v33 = vadd.f32 %v6410_v3, %v12378_v54 }
 0x5d2   :  { %v8467_v55 = vadd.f32 %v6026_v36, %v12369_v45  ;;  %v8531_v57 = vadd.f32 %v6412_v49, %v12372_v62  ;;  %v6028_v63 = vpop.f32.mrb[187].mxu0  ;;  %v6414_v53 = vpop.f32.mrb[187].mxu1 }
 0x5d3   :  { %v8468_v18 = vadd.f32 %v6028_v63, %v12375_v38  ;;  %v8532_v4 = vadd.f32 %v6414_v53, %v12378_v54 }
 0x5d4   :  { %v6483_v7 = vpack.c.bf16 %v8467_v55, %v8465_v60  ;;  %v6485_v58 = vpack.c.bf16 %v8531_v57, %v8529_v51 }
 0x5d5   :  { %v6484_v0 = vpack.c.bf16 %v8468_v18, %v8466_v50  ;;  %v6486_v6 = vpack.c.bf16 %v8532_v4, %v8530_v33 }
 0x5d7   :  { %v6032_v2 = vpop.f32.mrb[188].mxu0  ;;  %v6418_v14 = vpop.f32.mrb[188].mxu1  ;;  %6898 = vmatprep.mubr.bf16.mxu0 %v6484_v0  ;;  %7059 = vmatprep.mubr.bf16.mxu1 %v6486_v6 }
 0x5d8   :  { %v6034_v13 = vpop.f32.mrb[189].mxu0  ;;  %v6420_v17 = vpop.f32.mrb[189].mxu1  ;;  %6899 = vmatmul.mubr.bf16.gmra.mrb[248].mxu0 %v6483_v7  ;;  %7060 = vmatmul.mubr.bf16.gmra.mrb[248].mxu1 %v6485_v58  ;;  %v8469_v40 = vadd.f32 %v6032_v2, %v12369_v45  ;;  %v8533_v25 = vadd.f32 %v6418_v14, %v12372_v62 }
 0x5d9   :  { %v6036_v48 = vpop.f32.mrb[190].mxu0  ;;  %v6422_v24 = vpop.f32.mrb[190].mxu1  ;;  %v8470_v28 = vadd.f32 %v6034_v13, %v12375_v38  ;;  %v8534_v31 = vadd.f32 %v6420_v17, %v12378_v54 }
 0x5da   :  { %v8471_v20 = vadd.f32 %v6036_v48, %v12369_v45  ;;  %v8535_v26 = vadd.f32 %v6422_v24, %v12372_v62  ;;  %v6038_v21 = vpop.f32.mrb[191].mxu0  ;;  %v6424_v61 = vpop.f32.mrb[191].mxu1 }
 0x5db   :  { %v8472_v29 = vadd.f32 %v6038_v21, %v12375_v38  ;;  %v8536_v34 = vadd.f32 %v6424_v61, %v12378_v54 }
 0x5dc   :  { %v6487_v46 = vpack.c.bf16 %v8471_v20, %v8469_v40  ;;  %v6489_v10 = vpack.c.bf16 %v8535_v26, %v8533_v25 }
 0x5dd   :  { %v6488_v52 = vpack.c.bf16 %v8472_v29, %v8470_v28  ;;  %v6490_v8 = vpack.c.bf16 %v8536_v34, %v8534_v31 }
 0x5df   :  { %6906 = vmatprep.mubr.bf16.mxu0 %v6488_v52  ;;  %7067 = vmatprep.mubr.bf16.mxu1 %v6490_v8 }
 0x5e0   :  { %6907 = vmatmul.mubr.bf16.gmra.mrb[252].mxu0 %v6487_v46  ;;  %7068 = vmatmul.mubr.bf16.gmra.mrb[252].mxu1 %v6489_v10 }
 0x63b   :  { %v7945_v45 = vpop.f32.mrb[192].mxu0  ;;  %v8057_v62 = vpop.f32.mrb[192].mxu1 }
 0x63c   :  { %v7946_v47 = vpop.f32.mrb[193].mxu0  ;;  %v8058_v12 = vpop.f32.mrb[193].mxu1 }
 0x63d   :  { %v7947_v38 = vadd.f32 %v7946_v47, %v7945_v45  ;;  %v8059_v59 = vadd.f32 %v8058_v12, %v8057_v62  ;;  %v7948_v54 = vpop.f32.mrb[194].mxu0  ;;  %v8060_v1 = vpop.f32.mrb[194].mxu1 }
 0x63e   :  { %v7949_v43 = vpop.f32.mrb[195].mxu0  ;;  %v8061_v9 = vpop.f32.mrb[195].mxu1 }
 0x63f   :  { %v6789_v16 = vadd.f32 %v7947_v38, %v12511_v41  ;;  %v7950_v56 = vadd.f32 %v7949_v43, %v7948_v54  ;;  %v8062_v23 = vadd.f32 %v8061_v9, %v8060_v1 }
 0x641   :  { %v6950_v27 = vadd.f32 %v8059_v59, %v6789_v16  ;;  %v6792_v42 = vadd.f32 %v7950_v56, %v12511_v41 }
 0x643   :  { %v6953_v44 = vadd.f32 %v8062_v23, %v6792_v42  ;;  %v7951_v22 = vpop.f32.mrb[196].mxu0  ;;  %v8063_v11 = vpop.f32.mrb[196].mxu1 }
 0x644   :  { %v7952_v37 = vpop.f32.mrb[197].mxu0  ;;  %v8064_v5 = vpop.f32.mrb[197].mxu1 }
 0x645   :  { %v7837_v15 = vpack.c.bf16 %v6953_v44, %v6950_v27  ;;  %v7953_v19 = vadd.f32 %v7952_v37, %v7951_v22  ;;  %v8065_v32 = vadd.f32 %v8064_v5, %v8063_v11  ;;  %v7954_v39 = vpop.f32.mrb[198].mxu0  ;;  %v8066_v30 = vpop.f32.mrb[198].mxu1 }
 0x646   :  { %v7955_v35 = vpop.f32.mrb[199].mxu0  ;;  %v8067_v3 = vpop.f32.mrb[199].mxu1 }
 0x647   :  { %7838 = vst [vmem:[#allocation5] sm:$0xff] %v7837_v15   ;;  %v6797_v36 = vadd.f32 %v7953_v19, %v12511_v41  ;;  %v7956_v49 = vadd.f32 %v7955_v35, %v7954_v39  ;;  %v8068_v60 = vadd.f32 %v8067_v3, %v8066_v30 }
 0x649   :  { %v6958_v51 = vadd.f32 %v8065_v32, %v6797_v36  ;;  %v6800_v55 = vadd.f32 %v7956_v49, %v12511_v41 }
 0x64b   :  { %v6961_v57 = vadd.f32 %v8068_v60, %v6800_v55  ;;  %v7957_v63 = vpop.f32.mrb[200].mxu0  ;;  %v8069_v53 = vpop.f32.mrb[200].mxu1 }
 0x64c   :  { %v7958_v50 = vpop.f32.mrb[201].mxu0  ;;  %v8070_v33 = vpop.f32.mrb[201].mxu1 }
 0x64d   :  { %v7842_v18 = vpack.c.bf16 %v6961_v57, %v6958_v51  ;;  %v7959_v4 = vadd.f32 %v7958_v50, %v7957_v63  ;;  %v8071_v7 = vadd.f32 %v8070_v33, %v8069_v53  ;;  %v7960_v58 = vpop.f32.mrb[202].mxu0  ;;  %v8072_v0 = vpop.f32.mrb[202].mxu1 }
 0x64e   :  { %v7961_v6 = vpop.f32.mrb[203].mxu0  ;;  %v8073_v2 = vpop.f32.mrb[203].mxu1 }
 0x64f   :  { %7914 = vst [vmem:[#allocation5 + $0x8] sm:$0xff] %v7842_v18   ;;  %v6805_v14 = vadd.f32 %v7959_v4, %v12511_v41  ;;  %v7962_v13 = vadd.f32 %v7961_v6, %v7960_v58  ;;  %v8074_v17 = vadd.f32 %v8073_v2, %v8072_v0 }
 0x651   :  { %v6966_v48 = vadd.f32 %v8071_v7, %v6805_v14  ;;  %v6808_v24 = vadd.f32 %v7962_v13, %v12511_v41 }
 0x653   :  { %v6969_v40 = vadd.f32 %v8074_v17, %v6808_v24  ;;  %v7963_v25 = vpop.f32.mrb[204].mxu0  ;;  %v8075_v20 = vpop.f32.mrb[204].mxu1 }
 0x654   :  { %v7964_v26 = vpop.f32.mrb[205].mxu0  ;;  %v8076_v21 = vpop.f32.mrb[205].mxu1 }
 0x655   :  { %v7847_v61 = vpack.c.bf16 %v6969_v40, %v6966_v48  ;;  %v7965_v28 = vadd.f32 %v7964_v26, %v7963_v25  ;;  %v8077_v31 = vadd.f32 %v8076_v21, %v8075_v20  ;;  %v7966_v29 = vpop.f32.mrb[206].mxu0  ;;  %v8078_v34 = vpop.f32.mrb[206].mxu1 }
 0x656   :  { %v7967_v46 = vpop.f32.mrb[207].mxu0  ;;  %v8079_v10 = vpop.f32.mrb[207].mxu1 }
 0x657   :  { %7915 = vst [vmem:[#allocation5 + $0x10] sm:$0xff] %v7847_v61   ;;  %v6813_v52 = vadd.f32 %v7965_v28, %v12511_v41  ;;  %v7968_v8 = vadd.f32 %v7967_v46, %v7966_v29  ;;  %v8080_v45 = vadd.f32 %v8079_v10, %v8078_v34 }
 0x659   :  { %v6974_v62 = vadd.f32 %v8077_v31, %v6813_v52  ;;  %v6816_v47 = vadd.f32 %v7968_v8, %v12511_v41 }
 0x65b   :  { %v6977_v12 = vadd.f32 %v8080_v45, %v6816_v47  ;;  %v7969_v38 = vpop.f32.mrb[208].mxu0  ;;  %v8081_v59 = vpop.f32.mrb[208].mxu1 }
 0x65c   :  { %v7970_v54 = vpop.f32.mrb[209].mxu0  ;;  %v8082_v1 = vpop.f32.mrb[209].mxu1 }
 0x65d   :  { %v7852_v43 = vpack.c.bf16 %v6977_v12, %v6974_v62  ;;  %v7971_v9 = vadd.f32 %v7970_v54, %v7969_v38  ;;  %v8083_v16 = vadd.f32 %v8082_v1, %v8081_v59  ;;  %v7972_v56 = vpop.f32.mrb[210].mxu0  ;;  %v8084_v23 = vpop.f32.mrb[210].mxu1 }
 0x65e   :  { %v7973_v27 = vpop.f32.mrb[211].mxu0  ;;  %v8085_v42 = vpop.f32.mrb[211].mxu1 }
 0x65f   :  { %7916 = vst [vmem:[#allocation5 + $0x18] sm:$0xff] %v7852_v43   ;;  %v6821_v44 = vadd.f32 %v7971_v9, %v12511_v41  ;;  %v7974_v22 = vadd.f32 %v7973_v27, %v7972_v56  ;;  %v8086_v11 = vadd.f32 %v8085_v42, %v8084_v23 }
 0x661   :  { %v6982_v37 = vadd.f32 %v8083_v16, %v6821_v44  ;;  %v6824_v5 = vadd.f32 %v7974_v22, %v12511_v41 }
 0x663   :  { %v6985_v15 = vadd.f32 %v8086_v11, %v6824_v5  ;;  %v7975_v19 = vpop.f32.mrb[212].mxu0  ;;  %v8087_v32 = vpop.f32.mrb[212].mxu1 }
 0x664   :  { %v7976_v39 = vpop.f32.mrb[213].mxu0  ;;  %v8088_v30 = vpop.f32.mrb[213].mxu1 }
 0x665   :  { %v7857_v35 = vpack.c.bf16 %v6985_v15, %v6982_v37  ;;  %v7977_v3 = vadd.f32 %v7976_v39, %v7975_v19  ;;  %v8089_v36 = vadd.f32 %v8088_v30, %v8087_v32  ;;  %v7978_v49 = vpop.f32.mrb[214].mxu0  ;;  %v8090_v60 = vpop.f32.mrb[214].mxu1 }
 0x666   :  { %v7979_v51 = vpop.f32.mrb[215].mxu0  ;;  %v8091_v55 = vpop.f32.mrb[215].mxu1 }
 0x667   :  { %7917 = vst [vmem:[#allocation5 + $0x20] sm:$0xff] %v7857_v35   ;;  %v6829_v57 = vadd.f32 %v7977_v3, %v12511_v41  ;;  %v7980_v63 = vadd.f32 %v7979_v51, %v7978_v49  ;;  %v8092_v53 = vadd.f32 %v8091_v55, %v8090_v60 }
 0x669   :  { %v6990_v50 = vadd.f32 %v8089_v36, %v6829_v57  ;;  %v6832_v33 = vadd.f32 %v7980_v63, %v12511_v41 }
 0x66b   :  { %v6993_v18 = vadd.f32 %v8092_v53, %v6832_v33  ;;  %v7981_v4 = vpop.f32.mrb[216].mxu0  ;;  %v8093_v7 = vpop.f32.mrb[216].mxu1 }
 0x66c   :  { %v7982_v58 = vpop.f32.mrb[217].mxu0  ;;  %v8094_v0 = vpop.f32.mrb[217].mxu1 }
 0x66d   :  { %v7862_v6 = vpack.c.bf16 %v6993_v18, %v6990_v50  ;;  %v7983_v2 = vadd.f32 %v7982_v58, %v7981_v4  ;;  %v8095_v14 = vadd.f32 %v8094_v0, %v8093_v7  ;;  %v7984_v13 = vpop.f32.mrb[218].mxu0  ;;  %v8096_v17 = vpop.f32.mrb[218].mxu1 }
 0x66e   :  { %v7985_v48 = vpop.f32.mrb[219].mxu0  ;;  %v8097_v24 = vpop.f32.mrb[219].mxu1 }
 0x66f   :  { %7918 = vst [vmem:[#allocation5 + $0x28] sm:$0xff] %v7862_v6   ;;  %v6837_v40 = vadd.f32 %v7983_v2, %v12511_v41  ;;  %v7986_v25 = vadd.f32 %v7985_v48, %v7984_v13  ;;  %v8098_v20 = vadd.f32 %v8097_v24, %v8096_v17 }
 0x671   :  { %v6998_v26 = vadd.f32 %v8095_v14, %v6837_v40  ;;  %v6840_v21 = vadd.f32 %v7986_v25, %v12511_v41 }
 0x673   :  { %v7001_v61 = vadd.f32 %v8098_v20, %v6840_v21  ;;  %v7987_v28 = vpop.f32.mrb[220].mxu0  ;;  %v8099_v31 = vpop.f32.mrb[220].mxu1 }
 0x674   :  { %v7988_v29 = vpop.f32.mrb[221].mxu0  ;;  %v8100_v34 = vpop.f32.mrb[221].mxu1 }
 0x675   :  { %v7867_v46 = vpack.c.bf16 %v7001_v61, %v6998_v26  ;;  %v7989_v10 = vadd.f32 %v7988_v29, %v7987_v28  ;;  %v8101_v52 = vadd.f32 %v8100_v34, %v8099_v31  ;;  %v7990_v8 = vpop.f32.mrb[222].mxu0  ;;  %v8102_v45 = vpop.f32.mrb[222].mxu1 }
 0x676   :  { %v7991_v62 = vpop.f32.mrb[223].mxu0  ;;  %v8103_v47 = vpop.f32.mrb[223].mxu1 }
 0x677   :  { %7919 = vst [vmem:[#allocation5 + $0x30] sm:$0xff] %v7867_v46   ;;  %v6845_v12 = vadd.f32 %v7989_v10, %v12511_v41  ;;  %v7992_v38 = vadd.f32 %v7991_v62, %v7990_v8  ;;  %v8104_v59 = vadd.f32 %v8103_v47, %v8102_v45 }
 0x679   :  { %v7006_v54 = vadd.f32 %v8101_v52, %v6845_v12  ;;  %v6848_v1 = vadd.f32 %v7992_v38, %v12511_v41 }
 0x67b   :  { %v7009_v43 = vadd.f32 %v8104_v59, %v6848_v1  ;;  %v7993_v9 = vpop.f32.mrb[224].mxu0  ;;  %v8105_v16 = vpop.f32.mrb[224].mxu1 }
 0x67c   :  { %v7994_v56 = vpop.f32.mrb[225].mxu0  ;;  %v8106_v23 = vpop.f32.mrb[225].mxu1 }
 0x67d   :  { %v7872_v27 = vpack.c.bf16 %v7009_v43, %v7006_v54  ;;  %v7995_v42 = vadd.f32 %v7994_v56, %v7993_v9  ;;  %v8107_v44 = vadd.f32 %v8106_v23, %v8105_v16  ;;  %v7996_v22 = vpop.f32.mrb[226].mxu0  ;;  %v8108_v11 = vpop.f32.mrb[226].mxu1 }
 0x67e   :  { %v7997_v37 = vpop.f32.mrb[227].mxu0  ;;  %v8109_v5 = vpop.f32.mrb[227].mxu1 }
 0x67f   :  { %7920 = vst [vmem:[#allocation5 + $0x38] sm:$0xff] %v7872_v27   ;;  %v6853_v15 = vadd.f32 %v7995_v42, %v12511_v41  ;;  %v7998_v19 = vadd.f32 %v7997_v37, %v7996_v22  ;;  %v8110_v32 = vadd.f32 %v8109_v5, %v8108_v11 }
 0x681   :  { %v7014_v39 = vadd.f32 %v8107_v44, %v6853_v15  ;;  %v6856_v30 = vadd.f32 %v7998_v19, %v12511_v41 }
 0x683   :  { %v7017_v35 = vadd.f32 %v8110_v32, %v6856_v30  ;;  %v7999_v3 = vpop.f32.mrb[228].mxu0  ;;  %v8111_v36 = vpop.f32.mrb[228].mxu1 }
 0x684   :  { %v8000_v49 = vpop.f32.mrb[229].mxu0  ;;  %v8112_v60 = vpop.f32.mrb[229].mxu1 }
 0x685   :  { %v7877_v51 = vpack.c.bf16 %v7017_v35, %v7014_v39  ;;  %v8001_v55 = vadd.f32 %v8000_v49, %v7999_v3  ;;  %v8113_v57 = vadd.f32 %v8112_v60, %v8111_v36  ;;  %v8002_v63 = vpop.f32.mrb[230].mxu0  ;;  %v8114_v53 = vpop.f32.mrb[230].mxu1 }
 0x686   :  { %v8003_v50 = vpop.f32.mrb[231].mxu0  ;;  %v8115_v33 = vpop.f32.mrb[231].mxu1 }
 0x687   :  { %7921 = vst [vmem:[#allocation5 + $0x40] sm:$0xff] %v7877_v51   ;;  %v6861_v18 = vadd.f32 %v8001_v55, %v12511_v41  ;;  %v8004_v4 = vadd.f32 %v8003_v50, %v8002_v63  ;;  %v8116_v7 = vadd.f32 %v8115_v33, %v8114_v53 }
 0x689   :  { %v7022_v58 = vadd.f32 %v8113_v57, %v6861_v18  ;;  %v6864_v0 = vadd.f32 %v8004_v4, %v12511_v41 }
 0x68b   :  { %v7025_v6 = vadd.f32 %v8116_v7, %v6864_v0  ;;  %v8005_v2 = vpop.f32.mrb[232].mxu0  ;;  %v8117_v14 = vpop.f32.mrb[232].mxu1 }
 0x68c   :  { %v8006_v13 = vpop.f32.mrb[233].mxu0  ;;  %v8118_v17 = vpop.f32.mrb[233].mxu1 }
 0x68d   :  { %v7882_v48 = vpack.c.bf16 %v7025_v6, %v7022_v58  ;;  %v8007_v24 = vadd.f32 %v8006_v13, %v8005_v2  ;;  %v8119_v40 = vadd.f32 %v8118_v17, %v8117_v14  ;;  %v8008_v25 = vpop.f32.mrb[234].mxu0  ;;  %v8120_v20 = vpop.f32.mrb[234].mxu1 }
 0x68e   :  { %v8009_v26 = vpop.f32.mrb[235].mxu0  ;;  %v8121_v21 = vpop.f32.mrb[235].mxu1 }
 0x68f   :  { %7922 = vst [vmem:[#allocation5 + $0x48] sm:$0xff] %v7882_v48   ;;  %v6869_v61 = vadd.f32 %v8007_v24, %v12511_v41  ;;  %v8010_v28 = vadd.f32 %v8009_v26, %v8008_v25  ;;  %v8122_v31 = vadd.f32 %v8121_v21, %v8120_v20 }
 0x691   :  { %v7030_v29 = vadd.f32 %v8119_v40, %v6869_v61  ;;  %v6872_v34 = vadd.f32 %v8010_v28, %v12511_v41 }
 0x693   :  { %v7033_v46 = vadd.f32 %v8122_v31, %v6872_v34  ;;  %v8011_v10 = vpop.f32.mrb[236].mxu0  ;;  %v8123_v52 = vpop.f32.mrb[236].mxu1 }
 0x694   :  { %v8012_v8 = vpop.f32.mrb[237].mxu0  ;;  %v8124_v45 = vpop.f32.mrb[237].mxu1 }
 0x695   :  { %v7887_v62 = vpack.c.bf16 %v7033_v46, %v7030_v29  ;;  %v8013_v47 = vadd.f32 %v8012_v8, %v8011_v10  ;;  %v8125_v12 = vadd.f32 %v8124_v45, %v8123_v52  ;;  %v8014_v38 = vpop.f32.mrb[238].mxu0  ;;  %v8126_v59 = vpop.f32.mrb[238].mxu1 }
 0x696   :  { %v8015_v54 = vpop.f32.mrb[239].mxu0  ;;  %v8127_v1 = vpop.f32.mrb[239].mxu1 }
 0x697   :  { %7923 = vst [vmem:[#allocation5 + $0x50] sm:$0xff] %v7887_v62   ;;  %v6877_v43 = vadd.f32 %v8013_v47, %v12511_v41  ;;  %v8016_v9 = vadd.f32 %v8015_v54, %v8014_v38  ;;  %v8128_v16 = vadd.f32 %v8127_v1, %v8126_v59 }
 0x699   :  { %v7038_v56 = vadd.f32 %v8125_v12, %v6877_v43  ;;  %v6880_v23 = vadd.f32 %v8016_v9, %v12511_v41 }
 0x69b   :  { %v7041_v27 = vadd.f32 %v8128_v16, %v6880_v23  ;;  %v8017_v42 = vpop.f32.mrb[240].mxu0  ;;  %v8129_v44 = vpop.f32.mrb[240].mxu1 }
 0x69c   :  { %v8018_v22 = vpop.f32.mrb[241].mxu0  ;;  %v8130_v11 = vpop.f32.mrb[241].mxu1 }
 0x69d   :  { %v7892_v37 = vpack.c.bf16 %v7041_v27, %v7038_v56  ;;  %v8019_v5 = vadd.f32 %v8018_v22, %v8017_v42  ;;  %v8131_v15 = vadd.f32 %v8130_v11, %v8129_v44  ;;  %v8020_v19 = vpop.f32.mrb[242].mxu0  ;;  %v8132_v32 = vpop.f32.mrb[242].mxu1 }
 0x69e   :  { %v8021_v39 = vpop.f32.mrb[243].mxu0  ;;  %v8133_v30 = vpop.f32.mrb[243].mxu1 }
 0x69f   :  { %7924 = vst [vmem:[#allocation5 + $0x58] sm:$0xff] %v7892_v37   ;;  %v6885_v35 = vadd.f32 %v8019_v5, %v12511_v41  ;;  %v8022_v3 = vadd.f32 %v8021_v39, %v8020_v19  ;;  %v8134_v36 = vadd.f32 %v8133_v30, %v8132_v32 }
 0x6a1   :  { %v7046_v49 = vadd.f32 %v8131_v15, %v6885_v35  ;;  %v6888_v60 = vadd.f32 %v8022_v3, %v12511_v41 }
 0x6a3   :  { %v7049_v51 = vadd.f32 %v8134_v36, %v6888_v60  ;;  %v8023_v55 = vpop.f32.mrb[244].mxu0  ;;  %v8135_v57 = vpop.f32.mrb[244].mxu1 }
 0x6a4   :  { %v8024_v63 = vpop.f32.mrb[245].mxu0  ;;  %v8136_v53 = vpop.f32.mrb[245].mxu1 }
 0x6a5   :  { %v7897_v50 = vpack.c.bf16 %v7049_v51, %v7046_v49  ;;  %v8025_v33 = vadd.f32 %v8024_v63, %v8023_v55  ;;  %v8137_v18 = vadd.f32 %v8136_v53, %v8135_v57  ;;  %v8026_v4 = vpop.f32.mrb[246].mxu0  ;;  %v8138_v7 = vpop.f32.mrb[246].mxu1 }
 0x6a6   :  { %v8027_v58 = vpop.f32.mrb[247].mxu0  ;;  %v8139_v0 = vpop.f32.mrb[247].mxu1 }
 0x6a7   :  { %7925 = vst [vmem:[#allocation5 + $0x60] sm:$0xff] %v7897_v50   ;;  %v6893_v6 = vadd.f32 %v8025_v33, %v12511_v41  ;;  %v8028_v2 = vadd.f32 %v8027_v58, %v8026_v4  ;;  %v8140_v14 = vadd.f32 %v8139_v0, %v8138_v7 }
 0x6a9   :  { %v7054_v13 = vadd.f32 %v8137_v18, %v6893_v6  ;;  %v6896_v17 = vadd.f32 %v8028_v2, %v12511_v41 }
 0x6ab   :  { %v7057_v48 = vadd.f32 %v8140_v14, %v6896_v17  ;;  %v8029_v24 = vpop.f32.mrb[248].mxu0  ;;  %v8141_v40 = vpop.f32.mrb[248].mxu1 }
 0x6ac   :  { %v8030_v25 = vpop.f32.mrb[249].mxu0  ;;  %v8142_v20 = vpop.f32.mrb[249].mxu1 }
 0x6ad   :  { %v7902_v26 = vpack.c.bf16 %v7057_v48, %v7054_v13  ;;  %v8031_v21 = vadd.f32 %v8030_v25, %v8029_v24  ;;  %v8143_v61 = vadd.f32 %v8142_v20, %v8141_v40  ;;  %v8032_v28 = vpop.f32.mrb[250].mxu0  ;;  %v8144_v31 = vpop.f32.mrb[250].mxu1 }
 0x6ae   :  { %v8033_v29 = vpop.f32.mrb[251].mxu0  ;;  %v8145_v34 = vpop.f32.mrb[251].mxu1 }
 0x6af   :  { %7926 = vst [vmem:[#allocation5 + $0x68] sm:$0xff] %v7902_v26   ;;  %v6901_v46 = vadd.f32 %v8031_v21, %v12511_v41  ;;  %v8034_v10 = vadd.f32 %v8033_v29, %v8032_v28  ;;  %v8146_v52 = vadd.f32 %v8145_v34, %v8144_v31 }
 0x6b1   :  { %v7062_v8 = vadd.f32 %v8143_v61, %v6901_v46  ;;  %v6904_v45 = vadd.f32 %v8034_v10, %v12511_v41 }
 0x6b3   :  { %v7065_v62 = vadd.f32 %v8146_v52, %v6904_v45  ;;  %v8035_v47 = vpop.f32.mrb[252].mxu0  ;;  %v8147_v12 = vpop.f32.mrb[252].mxu1 }
 0x6b4   :  { %v8036_v38 = vpop.f32.mrb[253].mxu0  ;;  %v8148_v59 = vpop.f32.mrb[253].mxu1 }
 0x6b5   :  { %v7907_v54 = vpack.c.bf16 %v7065_v62, %v7062_v8  ;;  %v8037_v1 = vadd.f32 %v8036_v38, %v8035_v47  ;;  %v8149_v43 = vadd.f32 %v8148_v59, %v8147_v12  ;;  %v8038_v9 = vpop.f32.mrb[254].mxu0  ;;  %v8150_v16 = vpop.f32.mrb[254].mxu1 }
 0x6b6   :  { %v8039_v56 = vpop.f32.mrb[255].mxu0  ;;  %v8151_v23 = vpop.f32.mrb[255].mxu1 }
 0x6b7   :  { %7927 = vst [vmem:[#allocation5 + $0x70] sm:$0xff] %v7907_v54   ;;  %v6909_v27 = vadd.f32 %v8037_v1, %v12511_v41  ;;  %v8040_v42 = vadd.f32 %v8039_v56, %v8038_v9  ;;  %v8152_v44 = vadd.f32 %v8151_v23, %v8150_v16 }
 0x6b9   :  { %v7070_v22 = vadd.f32 %v8149_v43, %v6909_v27  ;;  %v6912_v11 = vadd.f32 %v8040_v42, %v12511_v41 }
 0x6bb   :  { %v7073_v37 = vadd.f32 %v8152_v44, %v6912_v11 }
 0x6bd   :  { %v7912_v5 = vpack.c.bf16 %v7073_v37, %v7070_v22 }
 0x6bf   :  { %7928 = vst [vmem:[#allocation5 + $0x78] sm:$0xff] %v7912_v5  }
 0x6c0   :  { %9927 = shalt.err (!%p9924_p12)
}
 0x6c1   :  { %s9928_s28 = scalar_lea.hbm %s12566_s9, 2048 }
 0x6c2   :  { %p9929_p13 = scmp.ne.s32.totalorder %s12566_s9, %s9928_s28  ;;  %p9932_p0 = scmp.lt.u32.totalorder %s9928_s28, %s12566_s9 }
 0x6c4   :  { %p9934_p1 = pnand %p9932_p0, %p9929_p13 }
 0x6c6   :  { %9937 = shalt.err (!%p9934_p1)
}
 0x6c7   :  { %s9947_s10 = smov 64   ;;  %s9948_s11 = smov 4  }
 0x6c8   :  { %7247 = dma.vmem_to_hbm [thread:$0]  %s7242_s24, 2048, %s12566_s9, [#allocation4], %s9947_s10, %s9947_s10, %s9948_s11  }
 0x6c9   :  { %9940 = dma.done.wait [#allocation4], 2048  }
 0x6ca   :  { %9941 = vsyncadd [#allocation4], 4294965248 }
 0x6cb   :  { %7251 = vsyncpa [#allocation3], 1 }
 0x6cc   :  { %7252 = vsyncpa [#allocation4], 1 }

</bundles_post_ra>
